<compile_context>
chip_gen: v5e
topology: v5e:2x2
jax: 0.10.0
libtpu: 0.0.40
codegen_flags: <defaults>
</compile_context>

<pallas_src>
import jax
import jax.numpy as jnp
from jax import lax
from jax.experimental import pallas as pl
from jax.experimental.pallas import tpu as pltpu

KSIZE = 3  # kernel_size=3, stride=1, pad=1


def conv_bn_relu3d_kernel(x_ref, w_ref, b_ref, o_ref):
    """Fused 3x3x3 conv + folded-BN bias + ReLU for one (batch, depth) step.

    x_ref: (1, Cin, D+2, H+2, W+2)  whole padded volume of one batch element
                                    (fetched once per n, reused across d).
    w_ref: (Cout, 27*Cin)           BN-scale-folded weights, K ordered
                                    (kh, kw, ci, kd).
    b_ref: (Cout, 1)                folded BN bias.
    o_ref: (1, 1, Cout, H*W)        lane-dense output block for (n, d).
    """
    _, cin, _, hp, wp = x_ref.shape
    h, w = hp - 2, wp - 2
    dd = pl.program_id(1)  # output depth index == start of padded depth window

    # Depth window for this output slice: padded depths [dd, dd + 3).
    xw = x_ref[0, :, pl.ds(dd, KSIZE), :, :]            # (Cin, 3, Hp, Wp)

    # im2col once per grid step -> single large-K MXU contraction.
    slabs = []
    for kh in range(KSIZE):
        for kw in range(KSIZE):
            slab = xw[:, :, kh:kh + h, kw:kw + w]       # (Cin, 3, H, W)
            slabs.append(slab.reshape(cin * KSIZE, h * w))
    patches = jnp.concatenate(slabs, axis=0)            # (27*Cin, H*W)

    # One MXU push: (Cout, 27*Cin) @ (27*Cin, H*W) -> (Cout, H*W), f32 acc.
    acc = jnp.dot(w_ref[...], patches, preferred_element_type=jnp.float32)

    y = jnp.maximum(acc + b_ref[...], 0.0)              # bias + ReLU epilogue
    o_ref[0, 0] = y.astype(o_ref.dtype)


@jax.jit
def conv_bn_relu3d(x, w, gamma, beta, running_mean, running_var, eps=1e-5):
    """x: (N, Cin, D, H, W) NCDHW;  w: (Cout, Cin, 3, 3, 3) OIDHW (torch)."""
    N, Cin, D, H, W = x.shape
    Cout = w.shape[0]
    K = KSIZE * KSIZE * KSIZE * Cin

    # Fold eval-mode BN into the conv: w' = w * scale, bias = beta - mean*scale.
    scale = gamma / jnp.sqrt(running_var + eps)                     # (Cout,)
    bias = (beta - running_mean * scale).astype(jnp.float32).reshape(Cout, 1)
    # (Cout, Cin, kd, kh, kw) -> (Cout, kh, kw, ci, kd) -> (Cout, 27*Cin)
    w_mat = (jnp.transpose(w, (0, 3, 4, 1, 2)).reshape(Cout, K)
             * scale[:, None]).astype(x.dtype)

    # Zero pad D/H/W by 1 (conv pad=1). Activations stay channels-first: no
    # NCDHW<->channels-last transpose passes on the big tensor.
    x_pad = jnp.pad(x, ((0, 0), (0, 0), (1, 1), (1, 1), (1, 1)))
    Dp, Hp, Wp = D + 2, H + 2, W + 2
    HW = H * W

    out = pl.pallas_call(
        conv_bn_relu3d_kernel,
        out_shape=jax.ShapeDtypeStruct((N, D, Cout, HW), x.dtype),
        grid_spec=pltpu.PrefetchScalarGridSpec(
            num_scalar_prefetch=0,
            grid=(N, D),
            in_specs=[
                # Whole padded volume per batch element; constant block index
                # across d => DMA'd once per n and reused for all depths.
                pl.BlockSpec((1, Cin, Dp, Hp, Wp), lambda n, d: (n, 0, 0, 0, 0)),
                pl.BlockSpec((Cout, K), lambda n, d: (0, 0)),
                pl.BlockSpec((Cout, 1), lambda n, d: (0, 0)),
            ],
            out_specs=pl.BlockSpec((1, 1, Cout, HW), lambda n, d: (n, d, 0, 0)),
        ),
        compiler_params=pltpu.CompilerParams(
            dimension_semantics=("parallel", "arbitrary")),
    )(x_pad, w_mat, bias)

    # (N, D, Cout, H*W) -> (N, Cout, D, H, W)  (matches torch output layout)
    return jnp.transpose(out, (0, 2, 1, 3)).reshape(N, Cout, D, H, W)


def reference(x, w, gamma, beta, running_mean, running_var, eps=1e-5):
    """Pure-JAX reference (XLA 3-D conv + eval-mode BN + ReLU)."""
    y = lax.conv_general_dilated(
        x, w, window_strides=(1, 1, 1),
        padding=((1, 1), (1, 1), (1, 1)),
        dimension_numbers=("NCDHW", "OIDHW", "NCDHW"))
    scale = (gamma / jnp.sqrt(running_var + eps)).reshape(1, -1, 1, 1, 1)
    bias = (beta - running_mean * gamma / jnp.sqrt(running_var + eps)
            ).reshape(1, -1, 1, 1, 1)
    return jnp.maximum(y * scale + bias, 0.0)


if __name__ == "__main__":
    # Small shapes consistent with ConvBnReLU3D(in_channels=4, out_channels=8).
    N, Cin, D, H, W = 2, 4, 8, 16, 16
    Cout = 8

    key = jax.random.PRNGKey(0)
    kx, kw, kg, kb, km, kv = jax.random.split(key, 6)

    x = jax.random.normal(kx, (N, Cin, D, H, W), dtype=jnp.float32)
    w = 0.1 * jax.random.normal(kw, (Cout, Cin, KSIZE, KSIZE, KSIZE),
                                dtype=jnp.float32)
    gamma = 1.0 + 0.1 * jax.random.normal(kg, (Cout,), dtype=jnp.float32)
    beta = 0.1 * jax.random.normal(kb, (Cout,), dtype=jnp.float32)
    running_mean = 0.1 * jax.random.normal(km, (Cout,), dtype=jnp.float32)
    running_var = jnp.abs(1.0 + 0.1 * jax.random.normal(kv, (Cout,),
                                                        dtype=jnp.float32))

    out = conv_bn_relu3d(x, w, gamma, beta, running_mean, running_var)
    out = jax.block_until_ready(out)

    ref = reference(x, w, gamma, beta, running_mean, running_var)
    assert out.shape == (N, Cout, D, H, W)
    assert jnp.allclose(out, ref, atol=1e-4, rtol=1e-4), (
        float(jnp.max(jnp.abs(out - ref))))

    print("KERNEL_OK")
</pallas_src>

<mosaic_0001>
module attributes {stable_mosaic.version = 11 : i64} {
  func.func @conv_bn_relu3d_kernel(%arg0: i32, %arg1: i32, %arg2: memref<1x4x10x18x18xf32, #tpu.memory_space<vmem>>, %arg3: memref<8x108xf32, #tpu.memory_space<vmem>>, %arg4: memref<8x1xf32, #tpu.memory_space<vmem>>, %arg5: memref<1x1x8x256xf32, #tpu.memory_space<vmem>>) attributes {dimension_semantics = [#tpu.dimension_semantics<parallel>, #tpu.dimension_semantics<arbitrary>], iteration_bounds = array<i64: 2, 8>, scalar_prefetch = 0 : i64, scratch_operands = 0 : i64, tpu.core_type = #tpu.core_type<tc>, window_params = [{transform_indices = @transform_0, window_bounds = array<i64: 1, 4, 10, 18, 18>}, {pipeline_mode = #tpu.pipeline_mode<synchronous>, transform_indices = @transform_1, window_bounds = array<i64: 8, 108>}, {pipeline_mode = #tpu.pipeline_mode<synchronous>, transform_indices = @transform_2, window_bounds = array<i64: 8, 1>}, {transform_indices = @transform_3, window_bounds = array<i64: 1, 1, 8, 256>}]} {
    %c0 = arith.constant 0 : index
    %c0_0 = arith.constant 0 : index
    %0 = arith.index_cast %arg1 : i32 to index
    %c0_1 = arith.constant 0 : index
    %c0_2 = arith.constant 0 : index
    %1 = vector.load %arg2[%c0, %c0_0, %0, %c0_1, %c0_2] : memref<1x4x10x18x18xf32, #tpu.memory_space<vmem>>, vector<1x4x3x18x18xf32>
    %2 = vector.shape_cast %1 : vector<1x4x3x18x18xf32> to vector<4x3x18x18xf32>
    %3 = vector.extract_strided_slice %2 {offsets = [0, 0, 0, 0], sizes = [4, 3, 16, 16], strides = [1, 1, 1, 1]} : vector<4x3x18x18xf32> to vector<4x3x16x16xf32>
    %4 = vector.shape_cast %3 : vector<4x3x16x16xf32> to vector<12x256xf32>
    %5 = vector.extract_strided_slice %2 {offsets = [0, 0, 0, 1], sizes = [4, 3, 16, 16], strides = [1, 1, 1, 1]} : vector<4x3x18x18xf32> to vector<4x3x16x16xf32>
    %6 = vector.shape_cast %5 : vector<4x3x16x16xf32> to vector<12x256xf32>
    %7 = vector.extract_strided_slice %2 {offsets = [0, 0, 0, 2], sizes = [4, 3, 16, 16], strides = [1, 1, 1, 1]} : vector<4x3x18x18xf32> to vector<4x3x16x16xf32>
    %8 = vector.shape_cast %7 : vector<4x3x16x16xf32> to vector<12x256xf32>
    %9 = vector.extract_strided_slice %2 {offsets = [0, 0, 1, 0], sizes = [4, 3, 16, 16], strides = [1, 1, 1, 1]} : vector<4x3x18x18xf32> to vector<4x3x16x16xf32>
    %10 = vector.shape_cast %9 : vector<4x3x16x16xf32> to vector<12x256xf32>
    %11 = vector.extract_strided_slice %2 {offsets = [0, 0, 1, 1], sizes = [4, 3, 16, 16], strides = [1, 1, 1, 1]} : vector<4x3x18x18xf32> to vector<4x3x16x16xf32>
    %12 = vector.shape_cast %11 : vector<4x3x16x16xf32> to vector<12x256xf32>
    %13 = vector.extract_strided_slice %2 {offsets = [0, 0, 1, 2], sizes = [4, 3, 16, 16], strides = [1, 1, 1, 1]} : vector<4x3x18x18xf32> to vector<4x3x16x16xf32>
    %14 = vector.shape_cast %13 : vector<4x3x16x16xf32> to vector<12x256xf32>
    %15 = vector.extract_strided_slice %2 {offsets = [0, 0, 2, 0], sizes = [4, 3, 16, 16], strides = [1, 1, 1, 1]} : vector<4x3x18x18xf32> to vector<4x3x16x16xf32>
    %16 = vector.shape_cast %15 : vector<4x3x16x16xf32> to vector<12x256xf32>
    %17 = vector.extract_strided_slice %2 {offsets = [0, 0, 2, 1], sizes = [4, 3, 16, 16], strides = [1, 1, 1, 1]} : vector<4x3x18x18xf32> to vector<4x3x16x16xf32>
    %18 = vector.shape_cast %17 : vector<4x3x16x16xf32> to vector<12x256xf32>
    %19 = vector.extract_strided_slice %2 {offsets = [0, 0, 2, 2], sizes = [4, 3, 16, 16], strides = [1, 1, 1, 1]} : vector<4x3x18x18xf32> to vector<4x3x16x16xf32>
    %20 = vector.shape_cast %19 : vector<4x3x16x16xf32> to vector<12x256xf32>
    %21 = tpu.concatenate %4, %6, %8, %10, %12, %14, %16, %18, %20 in 0 : vector<12x256xf32>, vector<12x256xf32>, vector<12x256xf32>, vector<12x256xf32>, vector<12x256xf32>, vector<12x256xf32>, vector<12x256xf32>, vector<12x256xf32>, vector<12x256xf32> -> vector<108x256xf32>
    %c0_3 = arith.constant 0 : index
    %c0_4 = arith.constant 0 : index
    %22 = vector.load %arg3[%c0_3, %c0_4] : memref<8x108xf32, #tpu.memory_space<vmem>>, vector<8x108xf32>
    %cst = arith.constant dense<0.000000e+00> : vector<8x256xf32>
    %23 = tpu.matmul %22, %21, %cst {dimension_numbers = #tpu.dot_dimension_numbers<[1], [0], [0], [1], [0, 0, 1, 1], [], []>} : vector<8x108xf32>, vector<108x256xf32>, vector<8x256xf32> -> vector<8x256xf32>
    %c0_5 = arith.constant 0 : index
    %c0_6 = arith.constant 0 : index
    %24 = vector.load %arg4[%c0_5, %c0_6] : memref<8x1xf32, #tpu.memory_space<vmem>>, vector<8x1xf32>
    %25 = vector.broadcast %24 : vector<8x1xf32> to vector<8x256xf32>
    %26 = arith.addf %23, %25 : vector<8x256xf32>
    %cst_7 = arith.constant 0.000000e+00 : f32
    %27 = vector.broadcast %cst_7 : f32 to vector<8x256xf32>
    %28 = arith.maximumf %26, %27 : vector<8x256xf32>
    %c0_8 = arith.constant 0 : index
    %c0_9 = arith.constant 0 : index
    %c0_10 = arith.constant 0 : index
    %c0_11 = arith.constant 0 : index
    %29 = vector.load %arg5[%c0_8, %c0_9, %c0_10, %c0_11] : memref<1x1x8x256xf32, #tpu.memory_space<vmem>>, vector<1x1x8x256xf32>
    %30 = vector.shape_cast %29 : vector<1x1x8x256xf32> to vector<8x256xf32>
    %31 = vector.shape_cast %28 : vector<8x256xf32> to vector<1x1x8x256xf32>
    tpu.vector_store %arg5[%c0_8, %c0_9, %c0_10, %c0_11], %31 {strides = array<i32>} : memref<1x1x8x256xf32, #tpu.memory_space<vmem>>, vector<1x1x8x256xf32>,
    return
  }
  func.func @transform_0(%arg0: i32, %arg1: i32) -> (i32, i32, i32, i32, i32) {
    %c0_i32 = arith.constant 0 : i32
    %c0_i32_0 = arith.constant 0 : i32
    %c0_i32_1 = arith.constant 0 : i32
    %c0_i32_2 = arith.constant 0 : i32
    %c0_i32_3 = arith.constant 0 : i32
    return %arg0, %c0_i32, %c0_i32_0, %c0_i32_1, %c0_i32_2 : i32, i32, i32, i32, i32
  }
  func.func @transform_1(%arg0: i32, %arg1: i32) -> (i32, i32) {
    %c0_i32 = arith.constant 0 : i32
    %c0_i32_0 = arith.constant 0 : i32
    %c0_i32_1 = arith.constant 0 : i32
    return %c0_i32, %c0_i32_0 : i32, i32
  }
  func.func @transform_2(%arg0: i32, %arg1: i32) -> (i32, i32) {
    %c0_i32 = arith.constant 0 : i32
    %c0_i32_0 = arith.constant 0 : i32
    %c0_i32_1 = arith.constant 0 : i32
    return %c0_i32, %c0_i32_0 : i32, i32
  }
  func.func @transform_3(%arg0: i32, %arg1: i32) -> (i32, i32, i32, i32) {
    %c0_i32 = arith.constant 0 : i32
    %c0_i32_0 = arith.constant 0 : i32
    %c0_i32_1 = arith.constant 0 : i32
    return %arg0, %arg1, %c0_i32, %c0_i32_0 : i32, i32, i32, i32
  }
}

</mosaic_0001>

<bundles_post_ra>
// kernel: conv_bn_relu3d.1
= control target key start
LH: loop header
LB: loop body
LE: loop exit
PB: predicated region body
PF: predicated region fallthrough
CT: control target
= control target key end

     0   :  { %s6512_s12 = smov 0   ;;  %s6514_s13 = smov 0   ;;  %s10907_s0 = inlined_call_operand.vmem [shape: f32[2,4,10,18,18], index: 0, kind: input, shape index: {}]   ;;  %s10908_s1 = inlined_call_operand.vmem [shape: f32[8,108], index: 1, kind: input, shape index: {}]   ;;  %s10909_s2 = inlined_call_operand.vmem [shape: f32[8,1], index: 2, kind: input, shape index: {}]   ;;  %s10910_s3 = inlined_call_operand.vmem [shape: f32[2,8,8,256], index: 3, kind: output, shape index: {}]  }
   0x1   :  { %s6516_s14 = smov 0   ;;  %s6518_s15 = smov 0  }
   0x2   :  { %s6520_s16 = smov 0  }
   0x3 LB: > { %s22_s17 = sadd.s32 1, %s6470_s14  ;;  %s25_s18 = sadd.s32 1, %s6474_s15  ;;  %s6478_s16 = sphi %s6520_s16, %s13_s16   ;;  %s6474_s15 = sphi %s6518_s15, %s11432_s15   ;;  %s6470_s14 = sphi %s6516_s14, %s11431_s14   ;;  %s6466_s13 = sphi %s6514_s13, %s11430_s13   ;;  %s6462_s12 = sphi %s6512_s12, %s11429_s12  }
   0x4   : > { %p23_p0 = scmp.ge.s32.totalorder %s22_s17, 8  ;;  %p5379_p1 = scmp.ge.s32.totalorder %s6478_s16, 1 }
   0x5   : > { %p151_p2 = scmp.lt.s32.totalorder %s6478_s16, 17 }
   0x6   : > { %s11434_s17 = smov (%p23_p0, %s22_s17), 0  ;;  %s11436_s18 = smov (!%p23_p0, %s25_s18), %s6474_s15 }
   0x7   : > { %p152_p3 = pnand %p5379_p1, %p151_p2  ;;  %p27_p4 = scmp.ge.s32.totalorder %s11436_s18, 2 }
   0x9   : > { %s11438_s18 = smov (%p27_p4, %s11436_s18), 0  ;;  %155 = sbr.rel (%p152_p3) target bundleno = 1402 (0x57a), region = 32 }
   0xe   : > { %p179_p5 = scmp.lt.s32.totalorder %s6466_s13, 1  ;;  %s193_s19 = smul.u32 24, %s6462_s12  ;;  %v6480_v0 = vmov 1983009808   ;;  %v6481_v2 = vmov 1934713408  }
   0xf   : > { %v237_v1 = vunpack.c.l.s4 %v6480_v0  ;;  %v285_v3 = vunpack.c.l.s4 %v6481_v2  ;;  %vm232_vm0 = vcmask 1047556   ;;  %s6482_s25 = smov 48   ;;  %s6483_s26 = smov 16   ;;  %vm1847_vm1 = vcmask 1046528  }
  0x10   : > { %s11440_s13 = smov (!%p179_p5, %s6466_s13), 1  ;;  %s6484_s27 = smov 64   ;;  %vm680_vm2 = vcmask 130048   ;;  %vm683_vm3 = vcmask 261120   ;;  %vm686_vm4 = vcmask 392192   ;;  %vm689_vm5 = vcmask 523264  }
  0x11   : > { %s5390_s20 = smul.u32 960, %s11440_s13  ;;  %v6559_v6 = vunpack.c.0.s8 %v237_v1  ;;  %v6582_v16 = vunpack.c.0.s8 %v285_v3  ;;  %s6485_s28 = smov 32   ;;  %vm692_vm6 = vcmask 654336   ;;  %vm695_vm7 = vcmask 785408  }
  0x12   : > { %s6486_s29 = smov 112   ;;  %s6487_s30 = smov 80   ;;  %vm698_vm8 = vcmask 916480   ;;  %vm5165_vm9 = vcmask 1043456   ;;  %vm3504_vm10 = vcmask 1045504   ;;  %vm5233_vm11 = vcmask 883712  }
  0x13   : > { %s183_s23 = scalar_lea.vmem %s10907_s0, %s5390_s20  ;;  %s6488_s4 = smov 96  }
  0x14   : > { %s6551_s24 = scalar_lea.vmem %s183_s23, %s193_s19  ;;  %s6489_s5 = smov 127  }
  0x15   : > { %v6554_v4 = vld [vmem:[%s6551_s24] sm:$0xff]  ;;  %v6557_v5 = vld [vmem:[%s6551_s24 + $0x30] sm:$0xff]  ;;  %v6562_v7 = vld [vmem:[%s6551_s24 + $0x18] sm:$0xff]  ;;  %s6490_s6 = smov 126   ;;  %p186_p6 = scmp.lt.s32.totalorder %s6462_s12, 7 }
  0x16   : > { %v6565_v8 = vld [vmem:[%s6551_s24 + $0xf0] sm:$0xff]  ;;  %v6568_v9 = vld [vmem:[%s6551_s24 + $0x108] sm:$0xff]  ;;  %v231_v10 = vrot.slane %v6557_v5, 4  ;;  %v234_v11 = vrot.slane %v6554_v4, 4  ;;  %v6573_v12 = vld [vmem:[%s6551_s24 + $0x120] sm:$0xff]  ;;  %v246_v17 = vrot.slane %v6562_v7, 4 }
  0x17   : > { %v6576_v13 = vld [vmem:[%s6551_s24 + $0x1e0] sm:$0xff]  ;;  %v6579_v14 = vld [vmem:[%s6551_s24 + $0x1f8] sm:$0xff]  ;;  %v244_v15 = vrot.slane %v6565_v8, 4  ;;  %v258_v18 = vrot.slane %v6568_v9, 4  ;;  %v6587_v19 = vld [vmem:[%s6551_s24 + $0x210] sm:$0xff]  ;;  %v270_v25 = vrot.slane %v6573_v12, 4 }
  0x18   : > { %v6590_v20 = vld [vmem:[%s6551_s24 + $0x2e8] sm:$0xff]  ;;  %v6593_v21 = vld [vmem:[%s6551_s24 + $0x300] sm:$0xff]  ;;  %v233_v22 = vsel %vm232_vm0, %v231_v10, %v6554_v4  ;;  %v256_v23 = vrot.slane %v6576_v13, 4  ;;  %v268_v24 = vrot.slane %v6579_v14, 4  ;;  %v6601_v26 = vld [vmem:[%s6551_s24 + $0x2d0] sm:$0xff]  ;;  %v235_v34 = vsel %vm232_vm0, %v6557_v5, %v234_v11  ;;  %s11442_s12 = smov (!%p186_p6, %s6462_s12), 7 }
  0x19   : > { %v239_v27 = vperm.slane %v233_v22, %v6559_v6  ;;  %v245_v28 = vsel %vm232_vm0, %v244_v15, %v6562_v7  ;;  %v344_v29 = vrot.slane %v6590_v20, 4  ;;  %v356_v30 = vrot.slane %v6593_v21, 4  ;;  %v6656_v3 = vld [vmem:[%s6551_s24 + $0x38] sm:$0xff]  ;;  %s5381_s11 = sshll.u32 %s11442_s12, 1  ;;  %s5382_s19 = sshll.u32 %s11440_s13, 4 }
  0x1a   : > { %v251_v31 = vperm.slane %v245_v28, %v6559_v6  ;;  %v257_v32 = vsel %vm232_vm0, %v256_v23, %v6568_v9  ;;  %v269_v33 = vsel %vm232_vm0, %v268_v24, %v6573_v12  ;;  %v247_v42 = vsel %vm232_vm0, %v6565_v8, %v246_v17  ;;  %s190_s20 = sadd.s32 %s5382_s19, %s5381_s11 }
  0x1b   : > { %v263_v35 = vperm.slane %v257_v32, %v6559_v6  ;;  %v275_v36 = vperm.slane %v269_v33, %v6559_v6  ;;  %v282_v37 = vrot.slane %v239_v27, 4  ;;  %v345_v38 = vsel %vm232_vm0, %v344_v29, %v6587_v19  ;;  %s5383_s21 = sshll.u32 %s190_s20, 3 }
  0x1c   : > { %v351_v39 = vperm.slane %v345_v38, %v6559_v6  ;;  %v357_v40 = vsel %vm232_vm0, %v356_v30, %v6601_v26  ;;  %v280_v41 = vrot.slane %v251_v31, 4  ;;  %v6629_v50 = vperm.slane %v247_v42, %v6559_v6 }
  0x1d   : > { %v283_v43 = vsel %vm232_vm0, %v251_v31, %v282_v37  ;;  %v306_v44 = vrot.slane %v263_v35, 4  ;;  %v363_v45 = vperm.slane %v357_v40, %v6559_v6  ;;  %v304_v46 = vrot.slane %v275_v36, 4 }
  0x1e   : > { %v291_v47 = vperm.slane %v283_v43, %v6582_v16  ;;  %v370_v48 = vrot.slane %v351_v39, 4  ;;  %v281_v49 = vsel %vm232_vm0, %v280_v41, %v239_v27  ;;  %v259_v62 = vsel %vm232_vm0, %v6576_v13, %v258_v18  ;;  %v6699_v41 = vld [vmem:[%s6551_s24 + $0x200] sm:$0xff] }
  0x1f   : > { %v307_v51 = vsel %vm232_vm0, %v275_v36, %v306_v44  ;;  %v6633_v52 = vperm.slane %v281_v49, %v6582_v16  ;;  %v305_v53 = vsel %vm232_vm0, %v304_v46, %v263_v35  ;;  %v368_v54 = vrot.slane %v363_v45, 4  ;;  %v6686_v35 = vld [vmem:[%s6551_s24 + $0xf8] sm:$0xff]  ;;  %v6689_v36 = vld [vmem:[%s6551_s24 + $0x1e8] sm:$0xff]  ;;  %v6709_v46 = vld [vmem:[%s6551_s24 + $0x20] sm:$0xff] }
  0x20   : > { %v315_v55 = vperm.slane %v307_v51, %v6582_v16  ;;  %v334_v56 = vrot.slane %v291_v47, 4  ;;  %v371_v57 = vsel %vm232_vm0, %v363_v45, %v370_v48  ;;  %v6639_v58 = vperm.slane %v305_v53, %v6582_v16  ;;  %v6715_v48 = vld [vmem:[%s6551_s24 + $0x2f0] sm:$0xff]  ;;  %v6720_v51 = vld [vmem:[%s6551_s24 + $0x128] sm:$0xff] }
  0x21   : > { %11056 = vst [vmem:[#allocation2_spill] sm:$0xff] %v6633_v52  ;;  %v6642_v59 = vperm.slane %v371_v57, %v6582_v16  ;;  %v330_v60 = vrot.slane %v6633_v52, 4  ;;  %v369_v61 = vsel %vm232_vm0, %v368_v54, %v351_v39  ;;  %v6653_v2 = vperm.slane %v235_v34, %v6559_v6  ;;  %v6683_v34 = vld [vmem:[%s6551_s24 + $0x8] sm:$0xff] }
  0x22   : > { %11057 = vst [vmem:[#allocation3_spill] sm:$0xff] %v6639_v58  ;;  %v332_v63 = vrot.slane %v315_v55, 4  ;;  %v335_v0 = vsel %vm232_vm0, %v315_v55, %v334_v56  ;;  %v6650_v1 = vperm.slane %v369_v61, %v6582_v16  ;;  %v6662_v15 = vperm.slane %v259_v62, %v6559_v6 }
  0x23   : > { %v394_v10 = vrot.slane %v6642_v59, 4  ;;  %v331_v11 = vsel %vm232_vm0, %v6639_v58, %v330_v60  ;;  %v271_v17 = vsel %vm232_vm0, %v6579_v14, %v270_v25  ;;  %v292_v23 = vrot.slane %v6629_v50, 4  ;;  %v230_v58 = vld [vmem:[%s6551_s24 + $0x310] sm:$0x3] }
  0x24   : > { %11058 = vst [vmem:[#allocation4_spill] sm:$0xff] %v6650_v1  ;;  %v392_v18 = vrot.slane %v6650_v1, 4  ;;  %v6668_v22 = vperm.slane %v271_v17, %v6559_v6  ;;  %v346_v24 = vrot.slane %v6587_v19, 4  ;;  %v358_v28 = vrot.slane %v6601_v26, 4 }
  0x25   : > { %v395_v27 = vsel %vm232_vm0, 0.0, %v394_v10  ;;  %v6675_v29 = vsel %vm232_vm0, %v332_v63, %v291_v47  ;;  %v400_v30 = vrot.slane %v6656_v3, 4  ;;  %v293_v32 = vsel %vm232_vm0, %v292_v23, %v6653_v2  ;;  %v6712_v47 = vld [vmem:[%s6551_s24 + $0x110] sm:$0xff]  ;;  %v6734_v63 = vld [vmem:[%s6551_s24 + $0x308] sm:$0xff] }
  0x26   : > { %v5453_v25 = vpack.i.bf16 %v395_v27, %v335_v0  ;;  %v393_v31 = vsel %vm232_vm0, 0.0, %v392_v18  ;;  %v316_v33 = vrot.slane %v6668_v22, 4  ;;  %v6692_v38 = vperm.slane %v293_v32, %v6582_v16 }
  0x27   : > { %v5443_v37 = vpack.i.bf16 %v393_v31, %v331_v11  ;;  %v347_v39 = vsel %vm232_vm0, %v6590_v20, %v346_v24  ;;  %v359_v40 = vsel %vm232_vm0, %v6593_v21, %v358_v28  ;;  %v5448_v45 = vpack.i.bf16 %v6642_v59, %v6675_v29  ;;  %v6727_v59 = vld [vmem:[%s6551_s24 + $0x218] sm:$0xff] }
  0x28   : > { %5454 = vrot.lane.b32.xlu1 %v5453_v25, %s6482_s25  ;;  %v317_v42 = vsel %vm232_vm0, %v316_v33, %v6662_v15  ;;  %v355_v43 = vperm.slane %v347_v39, %v6559_v6  ;;  %v367_v44 = vperm.slane %v359_v40, %v6559_v6  ;;  %v401_v53 = vsel %vm232_vm0, %v400_v30, %v6683_v34  ;;  %v6754_v29 = vld [vmem:[%s6551_s24 + $0x2d8] sm:$0xff] }
  0x29   : > { %5444 = vrot.lane.b32.xlu0 %v5443_v37, %s6483_s26  ;;  %v323_v49 = vperm.slane %v317_v42, %v6582_v16  ;;  %v412_v54 = vrot.slane %v6686_v35, 4  ;;  %v424_v55 = vrot.slane %v6689_v36, 4  ;;  %v6730_v60 = vperm.slane %v401_v53, %v6559_v6 }
  0x2a   : > { %v380_v56 = vrot.slane %v367_v44, 4  ;;  %v382_v57 = vrot.slane %v355_v43, 4  ;;  %v436_v61 = vrot.slane %v6699_v41, 4  ;;  %v512_v11 = vrot.slane %v6715_v48, 4 }
  0x2b   : > { %v336_v62 = vrot.slane %v323_v49, 4  ;;  %v413_v0 = vsel %vm232_vm0, %v412_v54, %v6709_v46  ;;  %v425_v10 = vsel %vm232_vm0, %v424_v55, %v6712_v47  ;;  %v524_v33 = vrot.slane %v6734_v63, 4 }
  0x2c   : > { %v381_v17 = vsel %vm232_vm0, %v380_v56, %v355_v43  ;;  %v6743_v18 = vperm.slane %v413_v0, %v6559_v6  ;;  %v6746_v23 = vperm.slane %v425_v10, %v6559_v6  ;;  %v437_v24 = vsel %vm232_vm0, %v436_v61, %v6720_v51 }
  0x2d   : > { %v337_v27 = vsel %vm232_vm0, %v336_v62, %v6692_v38  ;;  %v387_v28 = vperm.slane %v381_v17, %v6582_v16  ;;  %v6757_v30 = vperm.slane %v437_v24, %v6559_v6  ;;  %v513_v25 = vsel %vm232_vm0, %v512_v11, %v6727_v59 }
  0x2e   : > { %v448_v31 = vrot.slane %v6743_v18, 4  ;;  %v6763_v32 = vperm.slane %v513_v25, %v6559_v6  ;;  %v294_v37 = vrot.slane %v6653_v2, 4  ;;  %v318_v42 = vrot.slane %v6662_v15, 4 }
  0x2f   : > { %v5458_v39 = vpack.i.bf16 %v387_v28, %v337_v27  ;;  %v472_v40 = vrot.slane %v6757_v30, 4  ;;  %v383_v43 = vsel %vm232_vm0, %v367_v44, %v382_v57  ;;  %v525_v54 = vsel %vm232_vm0, %v524_v33, %v6754_v29 }
  0x30   : > { %v449_v53 = vsel %vm232_vm0, %v448_v31, %v6730_v60  ;;  %v295_v55 = vsel %vm232_vm0, %v6629_v50, %v294_v37  ;;  %v6777_v56 = vperm.slane %v383_v43, %v6582_v16  ;;  %v531_v44 = vperm.slane %v525_v54, %v6559_v6 }
  0x31   : > { %5459 = vrot.lane.b32.xlu1 %v5458_v39, %s6484_s27  ;;  %5449 = vrot.lane.b32.xlu0 %v5448_v45, %s6485_s28  ;;  %v6782_v2 = vperm.slane %v449_v53, %v6582_v16  ;;  %v473_v15 = vsel %vm232_vm0, %v472_v40, %v6746_v23  ;;  %v338_v57 = vrot.slane %v6692_v38, 4  ;;  %v6792_v61 = vperm.slane %v295_v55, %v6582_v16 }
  0x32   : > { %v6789_v50 = vperm.slane %v473_v15, %v6582_v16  ;;  %v319_v62 = vsel %vm232_vm0, %v6668_v22, %v318_v42  ;;  %v398_v45 = vrot.slane %v6777_v56, 4  ;;  %v536_v10 = vrot.slane %v531_v44, 4 }
  0x33   : > { %11059 = vst [vmem:[#allocation5_spill] sm:$0xff] %v6782_v2  ;;  %v498_v0 = vrot.slane %v6782_v2, 4  ;;  %v327_v11 = vperm.slane %v319_v62, %v6582_v16  ;;  %v342_v17 = vrot.slane %v6792_v61, 4  ;;  %v339_v24 = vsel %vm232_vm0, %v323_v49, %v338_v57 }
  0x34   : > { %11060 = vst [vmem:[#allocation6_spill] sm:$0xff] %v6789_v50  ;;  %v399_v38 = vsel %vm232_vm0, 0.0, %v398_v45  ;;  %v396_v27 = vrot.slane %v387_v28, 4  ;;  %v537_v22 = vsel %vm232_vm0, %v536_v10, %v6763_v32  ;;  %v402_v31 = vrot.slane %v6683_v34, 4 }
  0x35   : > { %v499_v25 = vsel %vm232_vm0, %v6789_v50, %v498_v0  ;;  %v414_v33 = vrot.slane %v6709_v46, 4  ;;  %v6809_v37 = vperm.slane %v537_v22, %v6582_v16  ;;  %v343_v39 = vsel %vm232_vm0, %v327_v11, %v342_v17  ;;  %v221_v50 = vld [vmem:[%s6551_s24 + $0x220] sm:$0x3] }
  0x36   : > { %v397_v40 = vsel %vm232_vm0, 0.0, %v396_v27  ;;  %v426_v49 = vrot.slane %v6712_v47, 4  ;;  %v5473_v28 = vpack.i.bf16 %v399_v38, %v343_v39  ;;  %v403_v43 = vsel %vm232_vm0, %v6656_v3, %v402_v31 }
  0x37   : > { %11061 = vst [vmem:[#allocation7_spill] sm:$0xff] %v6809_v37  ;;  %v5463_v42 = vpack.i.bf16 %v397_v40, %v339_v24  ;;  %v415_v53 = vsel %vm232_vm0, %v6686_v35, %v414_v33  ;;  %v560_v54 = vrot.slane %v6809_v37, 4  ;;  %v411_v55 = vperm.slane %v403_v43, %v6559_v6 }
  0x38   : > { %v423_v15 = vperm.slane %v415_v53, %v6559_v6  ;;  %v427_v57 = vsel %vm232_vm0, %v6689_v36, %v426_v49  ;;  %v438_v45 = vrot.slane %v6720_v51, 4  ;;  %v514_v0 = vrot.slane %v6727_v59, 4 }
  0x39   : > { %5474 = vrot.lane.b32.xlu0 %v5473_v28, %s6486_s29  ;;  %5464 = vrot.lane.b32.xlu2 %v5463_v42, %s6487_s30  ;;  %v435_v62 = vperm.slane %v427_v57, %v6559_v6  ;;  %v526_v10 = vrot.slane %v6754_v29, 4  ;;  %v561_v17 = vsel %vm232_vm0, 0.0, %v560_v54  ;;  %v450_v24 = vrot.slane %v6730_v60, 4 }
  0x3a   : > { %v460_v38 = vrot.slane %v423_v15, 4  ;;  %v474_v27 = vrot.slane %v6746_v23, 4  ;;  %v5478_v22 = vpack.i.bf16 %v561_v17, %v499_v25  ;;  %v439_v31 = vsel %vm232_vm0, %v6699_v41, %v438_v45 }
  0x3b   : > { %v515_v33 = vsel %vm232_vm0, %v6715_v48, %v514_v0  ;;  %v527_v39 = vsel %vm232_vm0, %v6734_v63, %v526_v10  ;;  %v447_v40 = vperm.slane %v439_v31, %v6559_v6  ;;  %v451_v25 = vsel %vm232_vm0, %v6743_v18, %v450_v24 }
  0x3c   : > { %v461_v49 = vsel %vm232_vm0, %v460_v38, %v411_v55  ;;  %v523_v28 = vperm.slane %v515_v33, %v6559_v6  ;;  %v535_v60 = vperm.slane %v527_v39, %v6559_v6  ;;  %5479 = vrot.lane.b32.xlu1 %v5478_v22, %s6483_s26  ;;  %v475_v42 = vsel %vm232_vm0, %v6757_v30, %v474_v27 }
  0x3d   : > { %v467_v23 = vperm.slane %v461_v49, %v6582_v16  ;;  %v538_v43 = vrot.slane %v6763_v32, 4  ;;  %v484_v53 = vrot.slane %v447_v40, 4  ;;  %v459_v45 = vperm.slane %v451_v25, %v6582_v16 }
  0x3e   : > { %v548_v54 = vrot.slane %v535_v60, 4  ;;  %v550_v57 = vrot.slane %v523_v28, 4  ;;  %v483_v0 = vperm.slane %v475_v42, %v6582_v16  ;;  %v340_v17 = vrot.slane %v327_v11, 4 }
  0x3f   : > { %v539_v10 = vsel %vm232_vm0, %v531_v44, %v538_v43  ;;  %v462_v38 = vrot.slane %v411_v55, 4  ;;  %v485_v22 = vsel %vm232_vm0, %v484_v53, %v435_v62  ;;  %v502_v24 = vrot.slane %v459_v45, 4 }
  0x40   : > { %v549_v18 = vsel %vm232_vm0, %v548_v54, %v523_v28  ;;  %v547_v30 = vperm.slane %v539_v10, %v6582_v16  ;;  %v491_v32 = vperm.slane %v485_v22, %v6582_v16  ;;  %v341_v31 = vsel %vm232_vm0, %v340_v17, %v6792_v61 }
  0x41   : > { %v555_v27 = vperm.slane %v549_v18, %v6582_v16  ;;  %v463_v33 = vsel %vm232_vm0, %v423_v15, %v462_v38  ;;  %v503_v44 = vsel %vm232_vm0, %v483_v0, %v502_v24  ;;  %v5468_v55 = vpack.i.bf16 %v6777_v56, %v341_v31 }
  0x42   : > { %v562_v11 = vrot.slane %v547_v30, 4  ;;  %v471_v39 = vperm.slane %v463_v33, %v6582_v16  ;;  %v504_v49 = vrot.slane %v491_v32, 4  ;;  %v486_v28 = vrot.slane %v435_v62, 4 }
  0x43   : > { %v551_v25 = vsel %vm232_vm0, %v535_v60, %v550_v57  ;;  %v500_v42 = vrot.slane %v483_v0, 4  ;;  %5469 = vrot.lane.b32.xlu2 %v5468_v55, %s6488_s4  ;;  %v506_v18 = vrot.slane %v467_v23, 4  ;;  %v564_v24 = vrot.slane %v555_v27, 4 }
  0x44   : > { %v563_v43 = vsel %vm232_vm0, 0.0, %v562_v11  ;;  %v510_v61 = vrot.slane %v471_v39, 4  ;;  %v559_v15 = vperm.slane %v551_v25, %v6582_v16  ;;  %v505_v53 = vsel %vm232_vm0, %v504_v49, %v467_v23 }
  0x45   : > { %v5488_v54 = vpack.i.bf16 %v563_v43, %v503_v44  ;;  %v487_v56 = vsel %vm232_vm0, %v447_v40, %v486_v28  ;;  %v501_v10 = vsel %vm232_vm0, %v500_v42, %v459_v45  ;;  %v5493_v17 = vpack.i.bf16 %v555_v27, %v505_v53 }
  0x46   : > { %v495_v62 = vperm.slane %v487_v56, %v6582_v16  ;;  %v566_v60 = vrot.slane %v559_v15, 4  ;;  %v5483_v0 = vpack.i.bf16 %v547_v30, %v501_v10  ;;  %v507_v33 = vsel %vm232_vm0, %v491_v32, %v506_v18 }
  0x47   : > { %5489 = vrot.lane.b32.xlu0 %v5488_v54, %s6482_s25  ;;  %5494 = vrot.lane.b32.xlu1 %v5493_v17, %s6484_s27  ;;  %v565_v44 = vsel %vm232_vm0, 0.0, %v564_v24  ;;  %v5518_v11 = vpack.i.bf16 %v6709_v46, %v6562_v7  ;;  %v5523_v23 = vpack.i.bf16 %v6656_v3, %v6557_v5  ;;  %v5513_v32 = vpack.i.bf16 %v6683_v34, %v6554_v4 }
  0x48   : > { %v508_v57 = vrot.slane %v495_v62, 4  ;;  %v511_v38 = vsel %vm232_vm0, %v495_v62, %v510_v61  ;;  %v567_v22 = vsel %vm232_vm0, 0.0, %v566_v60  ;;  %v5498_v30 = vpack.i.bf16 %v565_v44, %v507_v33 }
  0x49   : > { %v5508_v45 = vpack.i.bf16 %v567_v22, %v511_v38  ;;  %v5533_v27 = vpack.i.bf16 %v6712_v47, %v6568_v9  ;;  %v5538_v55 = vpack.i.bf16 %v6720_v51, %v6573_v12  ;;  %v5528_v5 = vpack.i.bf16 %v6686_v35, %v6565_v8 }
  0x4a   : > { %v509_v40 = vsel %vm232_vm0, %v508_v57, %v471_v39  ;;  %v5548_v7 = vpack.i.bf16 %v6699_v41, %v6579_v14  ;;  %v5553_v4 = vpack.i.bf16 %v6727_v59, %v6587_v19  ;;  %v5543_v9 = vpack.i.bf16 %v6689_v36, %v6576_v13 }
  0x4b   : > { %v5503_v31 = vpack.i.bf16 %v559_v15, %v509_v40  ;;  %5484 = vrot.lane.b32.xlu2 %v5483_v0, %s6485_s28  ;;  %v5563_v12 = vpack.i.bf16 %v6715_v48, %v6590_v20  ;;  %v5568_v8 = vpack.i.bf16 %v6734_v63, %v6593_v21  ;;  %v5558_v14 = vpack.i.bf16 %v6754_v29, %v6601_v26 }
  0x4f   : > { %5504 = vrot.lane.b32.xlu0 %v5503_v31, %s6488_s4  ;;  %5509 = vrot.lane.b32.xlu1 %v5508_v45, %s6486_s29 }
  0x53   : > { %5499 = vrot.lane.b32.xlu2 %v5498_v30, %s6487_s30 }
  0x57   : > { %5519 = vrot.lane.b32.xlu0 %v5518_v11, %s6489_s5  ;;  %5524 = vrot.lane.b32.xlu1 %v5523_v23, %s6489_s5 }
  0x5b   : > { %5514 = vrot.lane.b32.xlu2 %v5513_v32, %s6489_s5 }
  0x5f   : > { %5534 = vrot.lane.b32.xlu0 %v5533_v27, %s6489_s5  ;;  %5539 = vrot.lane.b32.xlu1 %v5538_v55, %s6489_s5 }
  0x63   : > { %5529 = vrot.lane.b32.xlu2 %v5528_v5, %s6489_s5 }
  0x67   : > { %5549 = vrot.lane.b32.xlu0 %v5548_v7, %s6489_s5  ;;  %5554 = vrot.lane.b32.xlu1 %v5553_v4, %s6489_s5 }
  0x6b   : > { %5544 = vrot.lane.b32.xlu2 %v5543_v9, %s6489_s5 }
  0x6f   : > { %5564 = vrot.lane.b32.xlu0 %v5563_v12, %s6489_s5  ;;  %5569 = vrot.lane.b32.xlu1 %v5568_v8, %s6489_s5 }
  0x73   : > { %5559 = vrot.lane.b32.xlu2 %v5558_v14, %s6489_s5 }
  0x77   : > { %5584 = vrot.lane.b32.xlu0 %v5523_v23, %s6490_s6  ;;  %5574 = vrot.lane.b32.xlu1 %v5513_v32, %s6490_s6 }
  0x7b   : > { %5579 = vrot.lane.b32.xlu2 %v5518_v11, %s6490_s6 }
  0x7f   : > { %5599 = vrot.lane.b32.xlu0 %v5538_v55, %s6490_s6  ;;  %5589 = vrot.lane.b32.xlu1 %v5528_v5, %s6490_s6 }
  0x83   : > { %5594 = vrot.lane.b32.xlu2 %v5533_v27, %s6490_s6 }
  0x87   : > { %5614 = vrot.lane.b32.xlu0 %v5553_v4, %s6490_s6  ;;  %5604 = vrot.lane.b32.xlu1 %v5543_v9, %s6490_s6 }
  0x8b   : > { %5609 = vrot.lane.b32.xlu2 %v5548_v7, %s6490_s6 }
  0x8f   : > { %5629 = vrot.lane.b32.xlu0 %v5568_v8, %s6490_s6  ;;  %5619 = vrot.lane.b32.xlu1 %v5558_v14, %s6490_s6 }
  0x93   : > { %5624 = vrot.lane.b32.xlu2 %v5563_v12, %s6490_s6  ;;  %v6930_v13 = vpop.permute.xlu2 %5464 }
  0x94   : > { %11062 = vst [vmem:[#allocation8_spill] sm:$0xff] %v6930_v13 }
  0x9a   : > { %v6934_v20 = vpop.permute.xlu1 %5454 }
  0x9b   : > { %v6932_v19 = vpop.permute.xlu0 %5444  ;;  %11064 = vst [vmem:[#allocation10_spill] sm:$0xff] %v6934_v20 }
  0x9c   : > { %11063 = vst [vmem:[#allocation9_spill] sm:$0xff] %v6932_v19 }
  0x9d   : > { %v6936_v21 = vpop.permute.xlu2 %5469 }
  0x9e   : > { %11065 = vst [vmem:[#allocation11_spill] sm:$0xff] %v6936_v21 }
  0xa3   : > { %v6938_v26 = vpop.permute.xlu0 %5449  ;;  %v6940_v3 = vpop.permute.xlu1 %5459 }
  0xa4   : > { %11066 = vst [vmem:[#allocation12_spill] sm:$0xff] %v6938_v26 }
  0xa5   : > { %11067 = vst [vmem:[#allocation13_spill] sm:$0xff] %v6940_v3  ;;  %v6942_v34 = vpop.permute.xlu2 %5484 }
  0xa6   : > { %11068 = vst [vmem:[#allocation14_spill] sm:$0xff] %v6942_v34 }
  0xab   : > { %v6946_v36 = vpop.permute.xlu0 %5474 }
  0xac   : > { %11070 = vst [vmem:[#allocation16_spill] sm:$0xff] %v6946_v36 }
  0xad   : > { %v6944_v35 = vpop.permute.xlu2 %5499 }
  0xae   : > { %11069 = vst [vmem:[#allocation15_spill] sm:$0xff] %v6944_v35  ;;  %v6948_v41 = vpop.permute.xlu1 %5479 }
  0xaf   : > { %11071 = vst [vmem:[#allocation17_spill] sm:$0xff] %v6948_v41 }
  0xb5   : > { %v5515_v46 = vpop.permute.xlu2 %5514 }
  0xb6   : > { %v5517_v39 = vunpack.i.h.bf16 %v5515_v46  ;;  %v5516_v49 = vunpack.i.l.bf16 %v5515_v46 }
  0xb8   : > { %v981_v43 = vrot.slane %v5517_v39, 4  ;;  %v813_v61 = vrot.slane %v5516_v49, 4 }
  0xb9   : > { %v6950_v47 = vpop.permute.xlu0 %5489  ;;  %v6952_v48 = vpop.permute.xlu1 %5494 }
  0xba   : > { %11072 = vst [vmem:[#allocation18_spill] sm:$0xff] %v6950_v47 }
  0xbb   : > { %11073 = vst [vmem:[#allocation19_spill] sm:$0xff] %v6952_v48 }
  0xbd   : > { %v5530_v51 = vpop.permute.xlu2 %5529 }
  0xbe   : > { %v5532_v29 = vunpack.i.h.bf16 %v5530_v51  ;;  %v5531_v28 = vunpack.i.l.bf16 %v5530_v51 }
  0xc0   : > { %v991_v42 = vrot.slane %v5532_v29, 4  ;;  %v823_v53 = vrot.slane %v5531_v28, 4 }
  0xc1   : > { %v6954_v59 = vpop.permute.xlu0 %5504  ;;  %v6956_v63 = vpop.permute.xlu1 %5509 }
  0xc2   : > { %11074 = vst [vmem:[#allocation20_spill] sm:$0xff] %v6954_v59 }
  0xc3   : > { %11075 = vst [vmem:[#allocation21_spill] sm:$0xff] %v6956_v63 }
  0xc5   : > { %v5545_v25 = vpop.permute.xlu2 %5544 }
  0xc6   : > { %v5547_v60 = vunpack.i.h.bf16 %v5545_v25  ;;  %v5546_v22 = vunpack.i.l.bf16 %v5545_v25 }
  0xc8   : > { %v1003_v5 = vrot.slane %v5547_v60, 4  ;;  %v835_v7 = vrot.slane %v5546_v22, 4 }
  0xc9   : > { %v5520_v15 = vpop.permute.xlu0 %5519  ;;  %v5525_v54 = vpop.permute.xlu1 %5524 }
  0xca   : > { %v5522_v56 = vunpack.i.h.bf16 %v5520_v15  ;;  %v5521_v10 = vunpack.i.l.bf16 %v5520_v15  ;;  %v5527_v17 = vunpack.i.h.bf16 %v5525_v54  ;;  %v5526_v62 = vunpack.i.l.bf16 %v5525_v54 }
  0xcc   : > { %v992_v57 = vsel %vm232_vm0, %v991_v42, %v5522_v56  ;;  %v993_v0 = vrot.slane %v5522_v56, 4  ;;  %v825_v38 = vrot.slane %v5521_v10, 4  ;;  %v979_v18 = vrot.slane %v5527_v17, 4 }
  0xcd   : > { %v982_v24 = vsel %vm232_vm0, %v5527_v17, %v981_v43  ;;  %v811_v40 = vrot.slane %v5526_v62, 4  ;;  %v814_v31 = vsel %vm232_vm0, %v5526_v62, %v813_v61  ;;  %v824_v30 = vsel %vm232_vm0, %v823_v53, %v5521_v10  ;;  %v6969_v11 = vpop.permute.xlu2 %5559 }
  0xce   : > { %v6962_v45 = vperm.slane %v982_v24, %v6559_v6  ;;  %v6965_v33 = vperm.slane %v814_v31, %v6559_v6  ;;  %v994_v44 = vsel %vm232_vm0, %v5532_v29, %v993_v0  ;;  %v980_v23 = vsel %vm232_vm0, %v979_v18, %v5517_v39 }
  0xcf   : > { %v812_v32 = vsel %vm232_vm0, %v811_v40, %v5516_v49  ;;  %v6974_v27 = vperm.slane %v992_v57, %v6559_v6  ;;  %v826_v55 = vsel %vm232_vm0, %v5531_v28, %v825_v38  ;;  %v6978_v4 = vperm.slane %v980_v23, %v6559_v6 }
  0xd0   : > { %v818_v9 = vperm.slane %v812_v32, %v6559_v6  ;;  %v6982_v12 = vperm.slane %v994_v44, %v6559_v6  ;;  %v830_v8 = vperm.slane %v824_v30, %v6559_v6  ;;  %v873_v51 = vrot.slane %v6965_v33, 4 }
  0xd1   : > { %v5535_v14 = vpop.permute.xlu0 %5534  ;;  %v5540_v29 = vpop.permute.xlu1 %5539  ;;  %v6989_v25 = vperm.slane %v826_v55, %v6559_v6  ;;  %v10914_v18 = vunpack.i.h.bf16 %v6969_v11 }
  0xd2   : > { %v5537_v39 = vunpack.i.h.bf16 %v5535_v14  ;;  %v5536_v49 = vunpack.i.l.bf16 %v5535_v14  ;;  %v5542_v42 = vunpack.i.h.bf16 %v5540_v29  ;;  %v5541_v43 = vunpack.i.l.bf16 %v5540_v29 }
  0xd3   : > { %v861_v56 = vrot.slane %v818_v9, 4  ;;  %v859_v10 = vrot.slane %v830_v8, 4  ;;  %v871_v31 = vrot.slane %v6989_v25, 4 }
  0xd4   : > { %v1004_v61 = vsel %vm232_vm0, %v1003_v5, %v5537_v39  ;;  %v1005_v15 = vrot.slane %v5537_v39, 4  ;;  %v836_v53 = vsel %vm232_vm0, %v835_v7, %v5536_v49  ;;  %v837_v54 = vrot.slane %v5536_v49, 4 }
  0xd5   : > { %v6994_v17 = vperm.slane %v1004_v61, %v6559_v6  ;;  %v6997_v62 = vperm.slane %v836_v53, %v6559_v6  ;;  %v7003_v24 = vpop.permute.xlu2 %5579  ;;  %v1017_v44 = vrot.slane %v5542_v42, 4  ;;  %v849_v30 = vrot.slane %v5541_v43, 4 }
  0xd6   : > { %v1006_v0 = vsel %vm232_vm0, %v5547_v60, %v1005_v15  ;;  %v838_v38 = vsel %vm232_vm0, %v5546_v22, %v837_v54  ;;  %v10913_v60 = vunpack.i.l.bf16 %v6969_v11  ;;  %v1105_v5 = vrot.slane %v10914_v18, 4 }
  0xd7   : > { %v7008_v23 = vperm.slane %v1006_v0, %v6559_v6  ;;  %v7012_v55 = vperm.slane %v838_v38, %v6559_v6  ;;  %v885_v22 = vrot.slane %v6997_v62, 4  ;;  %v862_v14 = vsel %vm232_vm0, %v830_v8, %v861_v56 }
  0xd8   : > { %v860_v29 = vsel %vm232_vm0, %v859_v10, %v818_v9  ;;  %v10912_v15 = vunpack.i.h.bf16 %v7003_v24  ;;  %v10911_v53 = vunpack.i.l.bf16 %v7003_v24  ;;  %v7023_v38 = vperm.slane %v862_v14, %v6582_v16 }
  0xd9   : > { %v5550_v7 = vpop.permute.xlu0 %5549  ;;  %v5555_v39 = vpop.permute.xlu1 %5554  ;;  %v7026_v46 = vperm.slane %v860_v29, %v6582_v16  ;;  %v872_v29 = vsel %vm232_vm0, %v871_v31, %v6965_v33 }
  0xda   : > { %v5552_v49 = vunpack.i.h.bf16 %v5550_v7  ;;  %v5551_v61 = vunpack.i.l.bf16 %v5550_v7  ;;  %v5557_v54 = vunpack.i.h.bf16 %v5555_v39  ;;  %v5556_v0 = vunpack.i.l.bf16 %v5555_v39 }
  0xdb   : > { %11076 = vst [vmem:[#allocation22_spill] sm:$0xff] %v7026_v46  ;;  %v937_v7 = vrot.slane %v10913_v60, 4  ;;  %v11081_v1 = vrot.slane %v7023_v38, 4 }
  0xdc   : > { %v1015_v57 = vrot.slane %v5552_v49, 4  ;;  %v1018_v8 = vsel %vm232_vm0, %v5552_v49, %v1017_v44  ;;  %v847_v56 = vrot.slane %v5551_v61, 4  ;;  %v850_v9 = vsel %vm232_vm0, %v5551_v61, %v849_v30 }
  0xdd   : > { %v7034_v32 = vperm.slane %v1018_v8, %v6559_v6  ;;  %v7037_v14 = vperm.slane %v850_v9, %v6559_v6  ;;  %v7044_v30 = vrot.slane %v10912_v15, 4  ;;  %v1093_v49 = vrot.slane %v5557_v54, 4  ;;  %v7054_v10 = vpop.permute.xlu2 %5594 }
  0xde   : > { %v1016_v39 = vsel %vm232_vm0, %v1015_v57, %v5542_v42  ;;  %v848_v44 = vsel %vm232_vm0, %v847_v56, %v5541_v43  ;;  %v7052_v9 = vrot.slane %v10911_v53, 4  ;;  %v925_v40 = vrot.slane %v5556_v0, 4 }
  0xdf   : > { %v7047_v61 = vperm.slane %v1016_v39, %v6559_v6  ;;  %v854_v8 = vperm.slane %v848_v44, %v6559_v6  ;;  %v7069_v42 = vsel %vm232_vm0, %v6989_v25, %v873_v51  ;;  %v7074_v53 = vperm.slane %v872_v29, %v6582_v16 }
  0xe0   : > { %v11078_v29 = vunpack.i.h.bf16 %v6969_v11 }
  0xe1   : > { %v5565_v28 = vpop.permute.xlu0 %5564  ;;  %v5570_v15 = vpop.permute.xlu1 %5569  ;;  %v883_v57 = vrot.slane %v854_v8, 4  ;;  %v886_v39 = vsel %vm232_vm0, %v854_v8, %v885_v22 }
  0xe2   : > { %v5567_v60 = vunpack.i.h.bf16 %v5565_v28  ;;  %v5566_v18 = vunpack.i.l.bf16 %v5565_v28  ;;  %v5572_v56 = vunpack.i.h.bf16 %v5570_v15  ;;  %v5571_v43 = vunpack.i.l.bf16 %v5570_v15 }
  0xe4   : > { %v1091_v44 = vrot.slane %v5567_v60, 4  ;;  %v1094_v63 = vsel %vm232_vm0, %v5567_v60, %v1093_v49  ;;  %v923_v31 = vrot.slane %v5566_v18, 4  ;;  %v1103_v59 = vrot.slane %v5572_v56, 4 }
  0xe5   : > { %v1106_v28 = vsel %vm232_vm0, %v5572_v56, %v1105_v5  ;;  %v935_v33 = vrot.slane %v5571_v43, 4  ;;  %v938_v48 = vsel %vm232_vm0, %v5571_v43, %v937_v7  ;;  %v11077_v60 = vunpack.i.h.bf16 %v7054_v10 }
  0xe6   : > { %v7079_v51 = vperm.slane %v1106_v28, %v6559_v6  ;;  %v7082_v25 = vperm.slane %v938_v48, %v6559_v6  ;;  %v1092_v22 = vsel %vm232_vm0, %v1091_v44, %v5557_v54  ;;  %v1104_v49 = vsel %vm232_vm0, %v1103_v59, %v11078_v29 }
  0xe7   : > { %v7087_v15 = vrot.slane %v11077_v60, 4  ;;  %v11079_v5 = vunpack.i.l.bf16 %v6969_v11  ;;  %v7096_v8 = vperm.slane %v1094_v63, %v6559_v6  ;;  %v924_v48 = vsel %vm232_vm0, %v923_v31, %v5556_v0 }
  0xe8   : > { %v926_v43 = vsel %vm232_vm0, %v5566_v18, %v925_v40  ;;  %v11080_v54 = vunpack.i.l.bf16 %v7054_v10  ;;  %v894_v44 = vperm.slane %v886_v39, %v6582_v16  ;;  %v884_v59 = vsel %vm232_vm0, %v883_v57, %v6997_v62  ;;  %v7117_v40 = vpop.permute.xlu2 %5609 }
  0xe9   : > { %v936_v7 = vsel %vm232_vm0, %v935_v33, %v11079_v5  ;;  %v7108_v11 = vperm.slane %v1104_v49, %v6559_v6  ;;  %v7112_v63 = vperm.slane %v1092_v22, %v6559_v6  ;;  %v7115_v0 = vperm.slane %v924_v48, %v6559_v6  ;;  %v5585_v18 = vpop.permute.xlu0 %5584  ;;  %v5575_v62 = vpop.permute.xlu1 %5574 }
  0xea   : > { %v7102_v56 = vrot.slane %v11080_v54, 4  ;;  %v7120_v31 = vperm.slane %v936_v7, %v6559_v6  ;;  %v5587_v57 = vunpack.i.h.bf16 %v5585_v18  ;;  %v5586_v33 = vunpack.i.l.bf16 %v5585_v18 }
  0xeb   : > { %v7125_v29 = vperm.slane %v926_v43, %v6559_v6  ;;  %v5577_v22 = vunpack.i.h.bf16 %v5575_v62  ;;  %v5576_v49 = vunpack.i.l.bf16 %v5575_v62  ;;  %v5612_v54 = vunpack.i.h.bf16 %v7117_v40 }
  0xec   : > { %v1527_v5 = vrot.slane %v5587_v57, 4  ;;  %v1359_v48 = vrot.slane %v5586_v33, 4  ;;  %v5611_v28 = vunpack.i.l.bf16 %v7117_v40  ;;  %v911_v36 = vrot.slane %v894_v44, 4 }
  0xed   : > { %v1529_v7 = vrot.slane %v5577_v22, 4  ;;  %v1361_v35 = vrot.slane %v5576_v49, 4  ;;  %v949_v39 = vrot.slane %v7115_v0, 4  ;;  %v947_v60 = vrot.slane %v7120_v31, 4 }
  0xee   : > { %v1528_v43 = vsel %vm232_vm0, %v1527_v5, %v5577_v22  ;;  %v1360_v47 = vsel %vm232_vm0, %v1359_v48, %v5576_v49  ;;  %v1563_v34 = vrot.slane %v5612_v54, 4  ;;  %v1395_v21 = vrot.slane %v5611_v28, 4 }
  0xef   : > { %v1530_v37 = vsel %vm232_vm0, %v5587_v57, %v1529_v7  ;;  %v7137_v3 = vperm.slane %v1528_v43, %v6559_v6  ;;  %v1362_v40 = vsel %vm232_vm0, %v5586_v33, %v1361_v35  ;;  %v950_v18 = vsel %vm232_vm0, %v7120_v31, %v949_v39 }
  0xf0   : > { %v914_v22 = vsel %vm232_vm0, %v894_v44, %v11081_v1  ;;  %v7146_v49 = vperm.slane %v1530_v37, %v6559_v6  ;;  %v7149_v5 = vperm.slane %v1360_v47, %v6559_v6  ;;  %v912_v57 = vsel %vm232_vm0, %v911_v36, %v7023_v38 }
  0xf1   : > { %v958_v35 = vperm.slane %v950_v18, %v6582_v16  ;;  %v5600_v33 = vpop.permute.xlu0 %5599  ;;  %v7155_v48 = vperm.slane %v1362_v40, %v6559_v6  ;;  %v5590_v31 = vpop.permute.xlu1 %5589  ;;  %v7158_v1 = vperm.slane %v884_v59, %v6582_v16 }
  0xf2   : > { %v5602_v39 = vunpack.i.h.bf16 %v5600_v33  ;;  %v5601_v7 = vunpack.i.l.bf16 %v5600_v33  ;;  %v5592_v47 = vunpack.i.h.bf16 %v5590_v31  ;;  %v5591_v43 = vunpack.i.l.bf16 %v5590_v31 }
  0xf3   : > { %11082 = vst [vmem:[#allocation23_spill] sm:$0xff] %v7158_v1  ;;  %v5638_v44 = vpack.i.bf16 %v958_v35, %v912_v57  ;;  %v973_v18 = vrot.slane %v958_v35, 4 }
  0xf4   : > { %v1564_v62 = vsel %vm232_vm0, %v1563_v34, %v5602_v39  ;;  %v1565_v36 = vrot.slane %v5602_v39, 4  ;;  %v1397_v38 = vrot.slane %v5601_v7, 4  ;;  %v1539_v40 = vrot.slane %v5592_v47, 4 }
  0xf5   : > { %5639 = vrot.lane.b32.xlu0 %v5638_v44, %s6485_s28  ;;  %v1542_v20 = vsel %vm232_vm0, %v5592_v47, %v7044_v30  ;;  %v1371_v33 = vrot.slane %v5591_v43, 4  ;;  %v1374_v59 = vsel %vm232_vm0, %v5591_v43, %v7052_v9  ;;  %v7175_v35 = vperm.slane %v1564_v62, %v6559_v6 }
  0xf6   : > { %v7168_v37 = vperm.slane %v1542_v20, %v6559_v6  ;;  %v7171_v57 = vperm.slane %v1374_v59, %v6559_v6  ;;  %v1566_v34 = vsel %vm232_vm0, %v5612_v54, %v1565_v36  ;;  %v11083_v39 = vunpack.i.h.bf16 %v7003_v24  ;;  %v7200_v59 = vpop.permute.xlu2 %5624 }
  0xf7   : > { %v11084_v44 = vunpack.i.l.bf16 %v7003_v24  ;;  %v7185_v20 = vperm.slane %v1566_v34, %v6559_v6  ;;  %v1396_v62 = vsel %vm232_vm0, %v1395_v21, %v5601_v7  ;;  %v1398_v43 = vsel %vm232_vm0, %v5611_v28, %v1397_v38 }
  0xf8   : > { %v1540_v30 = vsel %vm232_vm0, %v1539_v40, %v11083_v39  ;;  %v974_v21 = vsel %vm232_vm0, 0.0, %v973_v18  ;;  %v7208_v38 = vperm.slane %v1396_v62, %v6559_v6  ;;  %v5627_v36 = vunpack.i.h.bf16 %v7200_v59 }
  0xf9   : > { %v1372_v9 = vsel %vm232_vm0, %v1371_v33, %v11084_v44  ;;  %v7188_v47 = vperm.slane %v1540_v30, %v6559_v6  ;;  %v948_v33 = vsel %vm232_vm0, %v947_v60, %v7115_v0  ;;  %v5605_v28 = vpop.permute.xlu1 %5604  ;;  %v7211_v44 = vperm.slane %v1398_v43, %v6559_v6  ;;  %v5615_v39 = vpop.permute.xlu0 %5614 }
  0xfa   : > { %v7191_v54 = vperm.slane %v1372_v9, %v6559_v6  ;;  %v5643_v0 = vpack.i.bf16 %v974_v21, %v914_v22  ;;  %v7215_v9 = vperm.slane %v948_v33, %v6582_v16  ;;  %v11086_v18 = vrot.slane %v7037_v14, 4 }
  0xfb   : > { %v11087_v62 = vrot.slane %v7026_v46, 4  ;;  %v5626_v22 = vunpack.i.l.bf16 %v7200_v59  ;;  %v11088_v33 = vrot.slane %v7082_v25, 4  ;;  %v5607_v24 = vunpack.i.h.bf16 %v5605_v28 }
  0xfc   : > { %11085 = vst [vmem:[#allocation24_spill] sm:$0xff] %v7215_v9  ;;  %v896_v30 = vsel %vm232_vm0, %v11086_v18, %v7012_v55  ;;  %5644 = vrot.lane.b32.xlu1 %v5643_v0, %s6482_s25  ;;  %v971_v7 = vrot.slane %v7215_v9, 4  ;;  %v917_v0 = vrot.slane %v7074_v53, 4  ;;  %v1639_v34 = vrot.slane %v5627_v36, 4 }
  0xfd   : > { %v910_v43 = vsel %vm232_vm0, %v7158_v1, %v11087_v62  ;;  %v960_v21 = vsel %vm232_vm0, %v11088_v33, %v7125_v29  ;;  %v902_v18 = vperm.slane %v896_v30, %v6582_v16  ;;  %v1551_v31 = vrot.slane %v5607_v24, 4 }
  0xfe   : > { %v966_v40 = vperm.slane %v960_v21, %v6582_v16  ;;  %v1554_v59 = vsel %vm232_vm0, %v5607_v24, %v7087_v15  ;;  %v5606_v62 = vunpack.i.l.bf16 %v5605_v28  ;;  %v972_v60 = vsel %vm232_vm0, 0.0, %v971_v7 }
  0xff   : > { %v7240_v33 = vperm.slane %v1554_v59, %v6559_v6  ;;  %v5617_v1 = vunpack.i.h.bf16 %v5615_v39  ;;  %v5633_v9 = vpack.i.bf16 %v972_v60, %v910_v43  ;;  %v11089_v30 = vunpack.i.h.bf16 %v7054_v10 }
 0x100   : > { %v975_v46 = vrot.slane %v966_v40, 4  ;;  %v1383_v41 = vrot.slane %v5606_v62, 4  ;;  %v1386_v21 = vsel %vm232_vm0, %v5606_v62, %v7102_v56  ;;  %v918_v2 = vsel %vm232_vm0, %v902_v18, %v917_v0 }
 0x101   : > { %v1552_v13 = vsel %vm232_vm0, %v1551_v31, %v11089_v30  ;;  %v7253_v28 = vperm.slane %v1386_v21, %v6559_v6  ;;  %5634 = vrot.lane.b32.xlu2 %v5633_v9, %s6483_s26  ;;  %v11090_v60 = vunpack.i.l.bf16 %v7054_v10  ;;  %v1640_v43 = vsel %vm232_vm0, %v1639_v34, %v5617_v1 }
 0x102   : > { %v976_v15 = vsel %vm232_vm0, 0.0, %v975_v46  ;;  %v7250_v24 = vperm.slane %v1552_v13, %v6559_v6  ;;  %v1641_v56 = vrot.slane %v5617_v1, 4  ;;  %v1471_v59 = vrot.slane %v5626_v22, 4 }
 0x103   : > { %v5653_v7 = vpack.i.bf16 %v976_v15, %v918_v2  ;;  %v1384_v31 = vsel %vm232_vm0, %v1383_v41, %v11090_v60  ;;  %v5616_v10 = vunpack.i.l.bf16 %v5615_v39  ;;  %v11091_v41 = vrot.slane %v7012_v55, 4 }
 0x104   : > { %v7263_v13 = vperm.slane %v1384_v31, %v6559_v6  ;;  %v1642_v62 = vsel %vm232_vm0, %v5627_v36, %v1641_v56  ;;  %v7275_v30 = vperm.slane %v1640_v43, %v6559_v6  ;;  %v11092_v39 = vrot.slane %v7125_v29, 4 }
 0x105   : > { %5654 = vrot.lane.b32.xlu0 %v5653_v7, %s6487_s30  ;;  %v898_v1 = vsel %vm232_vm0, %v7037_v14, %v11091_v41  ;;  %v1473_v15 = vrot.slane %v5616_v10, 4  ;;  %v882_v7 = vperm.slane %v7069_v42, %v6582_v16  ;;  %v915_v14 = vrot.slane %v902_v18, 4 }
 0x106   : > { %v7278_v21 = vperm.slane %v898_v1, %v6582_v16  ;;  %v962_v55 = vsel %vm232_vm0, %v7082_v25, %v11092_v39  ;;  %v11093_v43 = vrot.slane %v6974_v27, 4  ;;  %v7294_v41 = vperm.slane %v1642_v62, %v6559_v6  ;;  %v5620_v1 = vpop.permute.xlu1 %5619  ;;  %v5630_v39 = vpop.permute.xlu0 %5629 }
 0x107   : > { %v970_v31 = vperm.slane %v962_v55, %v6582_v16  ;;  %v916_v42 = vsel %vm232_vm0, %v915_v14, %v7074_v53  ;;  %v11095_v29 = vrot.slane %v7047_v61, 4  ;;  %v1472_v55 = vsel %vm232_vm0, %v1471_v59, %v5616_v10 }
 0x108   : > { %v919_v36 = vrot.slane %v7278_v21, 4  ;;  %v1028_v56 = vsel %vm232_vm0, %v11093_v43, %v6978_v4  ;;  %v1474_v43 = vsel %vm232_vm0, %v5626_v22, %v1473_v15  ;;  %v5648_v2 = vpack.i.bf16 %v966_v40, %v916_v42 }
 0x109   : > { %v7299_v25 = vperm.slane %v1028_v56, %v6582_v16  ;;  %v1052_v18 = vsel %vm232_vm0, %v11095_v29, %v6994_v17  ;;  %v11097_v56 = vrot.slane %v7108_v11, 4  ;;  %v5622_v22 = vunpack.i.h.bf16 %v5620_v1 }
 0x10a   : > { %v920_v62 = vsel %vm232_vm0, %v919_v36, %v882_v7  ;;  %v7310_v14 = vperm.slane %v1052_v18, %v6582_v16  ;;  %5649 = vrot.lane.b32.xlu2 %v5648_v2, %s6484_s27  ;;  %v5621_v10 = vunpack.i.l.bf16 %v5620_v1  ;;  %v5632_v15 = vunpack.i.h.bf16 %v5630_v39 }
 0x10b   : > { %11094 = vst [vmem:[#allocation25_spill] sm:$0xff] %v7299_v25  ;;  %v5658_v53 = vpack.i.bf16 %v970_v31, %v920_v62  ;;  %v1116_v29 = vsel %vm232_vm0, %v11097_v56, %v7112_v63  ;;  %v7321_v40 = vperm.slane %v1472_v55, %v6559_v6  ;;  %v7324_v36 = vperm.slane %v1474_v43, %v6559_v6 }
 0x10c   : > { %11096 = vst [vmem:[#allocation26_spill] sm:$0xff] %v7310_v14  ;;  %v7318_v59 = vperm.slane %v1116_v29, %v6582_v16  ;;  %v1077_v42 = vrot.slane %v7299_v25, 4  ;;  %v5631_v18 = vunpack.i.l.bf16 %v5630_v39  ;;  %v1653_v2 = vrot.slane %v5622_v22, 4 }
 0x10d   : > { %5659 = vrot.lane.b32.xlu1 %v5658_v53, %s6488_s4  ;;  %v1485_v56 = vrot.slane %v5621_v10, 4  ;;  %v1651_v29 = vrot.slane %v5632_v15, 4  ;;  %v11099_v1 = vrot.slane %v6978_v4, 4  ;;  %v11100_v34 = vrot.slane %v6994_v17, 4 }
 0x10e   : > { %11098 = vst [vmem:[#allocation27_spill] sm:$0xff] %v7318_v59  ;;  %v1139_v62 = vrot.slane %v7318_v59, 4  ;;  %v1483_v9 = vrot.slane %v5631_v18, 4  ;;  %v1117_v53 = vrot.slane %v7112_v63, 4  ;;  %v1078_v39 = vsel %vm232_vm0, %v7310_v14, %v1077_v42 }
 0x10f   : > { %v1030_v55 = vsel %vm232_vm0, %v6974_v27, %v11099_v1  ;;  %v1054_v43 = vsel %vm232_vm0, %v7047_v61, %v11100_v34  ;;  %v1652_v60 = vsel %vm232_vm0, %v1651_v29, %v5622_v22  ;;  %v1654_v0 = vsel %vm232_vm0, %v5632_v15, %v1653_v2 }
 0x110   : > { %v1140_v46 = vsel %vm232_vm0, 0.0, %v1139_v62  ;;  %v7344_v59 = vperm.slane %v1652_v60, %v6559_v6  ;;  %v1484_v27 = vsel %vm232_vm0, %v1483_v9, %v5621_v10  ;;  %v1486_v17 = vsel %vm232_vm0, %v5631_v18, %v1485_v56 }
 0x111   : > { %v5668_v4 = vpack.i.bf16 %v1140_v46, %v1078_v39  ;;  %v1497_v61 = vrot.slane %v7321_v40, 4  ;;  %v1038_v63 = vperm.slane %v1030_v55, %v6582_v16  ;;  %v1062_v34 = vperm.slane %v1054_v43, %v6582_v16 }
 0x112   : > { %v1118_v42 = vsel %vm232_vm0, %v7108_v11, %v1117_v53  ;;  %v7355_v46 = vperm.slane %v1654_v0, %v6559_v6  ;;  %v1490_v60 = vperm.slane %v1484_v27, %v6559_v6  ;;  %v921_v22 = vrot.slane %v882_v7, 4 }
 0x113   : > { %5669 = vrot.lane.b32.xlu0 %v5668_v4, %s6483_s26  ;;  %v1126_v9 = vperm.slane %v1118_v42, %v6582_v16  ;;  %v1663_v10 = vrot.slane %v7344_v59, 4  ;;  %v7361_v15 = vperm.slane %v1486_v17, %v6559_v6  ;;  %v1079_v18 = vrot.slane %v1062_v34, 4 }
 0x114   : > { %v977_v62 = vrot.slane %v970_v31, 4  ;;  %v922_v11 = vsel %vm232_vm0, %v7278_v21, %v921_v22  ;;  %v11101_v2 = vrot.slane %v6982_v12, 4  ;;  %v11102_v56 = vrot.slane %v7034_v32, 4 }
 0x115   : > { %v11103_v29 = vrot.slane %v7079_v51, 4  ;;  %v1080_v31 = vsel %vm232_vm0, %v1079_v18, %v1038_v63  ;;  %v1495_v53 = vrot.slane %v1490_v60, 4  ;;  %v1081_v42 = vrot.slane %v1038_v63, 4 }
 0x116   : > { %v1040_v0 = vsel %vm232_vm0, %v11101_v2, %v6962_v45  ;;  %v1064_v7 = vsel %vm232_vm0, %v11102_v56, %v7008_v23  ;;  %v978_v55 = vsel %vm232_vm0, 0.0, %v977_v62  ;;  %v5673_v39 = vpack.i.bf16 %v1126_v9, %v1080_v31 }
 0x117   : > { %v1128_v1 = vsel %vm232_vm0, %v11103_v29, %v7096_v8  ;;  %v1046_v21 = vperm.slane %v1040_v0, %v6582_v16  ;;  %v1070_v43 = vperm.slane %v1064_v7, %v6582_v16  ;;  %v5663_v4 = vpack.i.bf16 %v978_v55, %v922_v11 }
 0x118   : > { %v1134_v27 = vperm.slane %v1128_v1, %v6582_v16  ;;  %v1141_v22 = vrot.slane %v1126_v9, 4  ;;  %v11104_v2 = vrot.slane %v6962_v45, 4  ;;  %5674 = vrot.lane.b32.xlu1 %v5673_v39, %s6485_s28  ;;  %v11105_v11 = vrot.slane %v7008_v23, 4 }
 0x119   : > { %v1083_v17 = vrot.slane %v1070_v43, 4  ;;  %5664 = vrot.lane.b32.xlu2 %v5663_v4, %s6486_s29  ;;  %v1085_v18 = vrot.slane %v1046_v21, 4  ;;  %v1507_v63 = vrot.slane %v7361_v15, 4  ;;  %v1082_v55 = vsel %vm232_vm0, %v1062_v34, %v1081_v42 }
 0x11a   : > { %v1042_v56 = vsel %vm232_vm0, %v6982_v12, %v11104_v2  ;;  %v1143_v62 = vrot.slane %v1134_v27, 4  ;;  %v1066_v7 = vsel %vm232_vm0, %v7034_v32, %v11105_v11  ;;  %v1142_v9 = vsel %vm232_vm0, 0.0, %v1141_v22 }
 0x11b   : > { %v1050_v0 = vperm.slane %v1042_v56, %v6582_v16  ;;  %v1084_v45 = vsel %vm232_vm0, %v1083_v17, %v1046_v21  ;;  %v1074_v12 = vperm.slane %v1066_v7, %v6582_v16  ;;  %v1086_v1 = vsel %vm232_vm0, %v1070_v43, %v1085_v18 }
 0x11c   : > { %v5683_v29 = vpack.i.bf16 %v1134_v27, %v1084_v45  ;;  %v1144_v31 = vsel %vm232_vm0, 0.0, %v1143_v62  ;;  %v5678_v39 = vpack.i.bf16 %v1142_v9, %v1082_v55  ;;  %v11106_v23 = vrot.slane %v7096_v8, 4 }
 0x11d   : > { %v11107_v21 = vrot.slane %v7191_v54, 4  ;;  %v11108_v27 = vrot.slane %v7208_v38, 4  ;;  %v1089_v17 = vrot.slane %v1050_v0, 4  ;;  %v1496_v42 = vsel %vm232_vm0, %v1495_v53, %v7321_v40 }
 0x11e   : > { %v1130_v32 = vsel %vm232_vm0, %v7079_v51, %v11106_v23  ;;  %5684 = vrot.lane.b32.xlu0 %v5683_v29, %s6484_s27  ;;  %v1087_v22 = vrot.slane %v1074_v12, 4  ;;  %v11111_v2 = vrot.slane %v7149_v5, 4  ;;  %v11112_v18 = vrot.slane %v7263_v13, 4 }
 0x11f   : > { %v1408_v4 = vsel %vm232_vm0, %v11107_v21, %v7149_v5  ;;  %v1432_v43 = vsel %vm232_vm0, %v11108_v27, %v7263_v13  ;;  %v1138_v34 = vperm.slane %v1130_v32, %v6582_v16  ;;  %v5688_v11 = vpack.i.bf16 %v1144_v31, %v1086_v1 }
 0x120   : > { %v7415_v8 = vperm.slane %v1408_v4, %v6582_v16  ;;  %v7418_v51 = vperm.slane %v1432_v43, %v6582_v16  ;;  %v1410_v56 = vsel %vm232_vm0, %v7191_v54, %v11111_v2  ;;  %v1434_v62 = vsel %vm232_vm0, %v7208_v38, %v11112_v18 }
 0x121   : > { %v1145_v7 = vrot.slane %v1138_v34, 4  ;;  %v7432_v9 = vperm.slane %v1496_v42, %v6582_v16  ;;  %v1090_v53 = vsel %vm232_vm0, %v1074_v12, %v1089_v17  ;;  %v1418_v29 = vperm.slane %v1410_v56, %v6582_v16  ;;  %5689 = vrot.lane.b32.xlu1 %v5688_v11, %s6487_s30  ;;  %5679 = vrot.lane.b32.xlu2 %v5678_v39, %s6482_s25 }
 0x122   : > { %11109 = vst [vmem:[#allocation28_spill] sm:$0xff] %v7415_v8  ;;  %v1457_v45 = vrot.slane %v7415_v8, 4  ;;  %v1442_v5 = vperm.slane %v1434_v62, %v6582_v16  ;;  %v1498_v54 = vsel %vm232_vm0, %v1490_v60, %v1497_v61  ;;  %v1088_v12 = vsel %vm232_vm0, %v1087_v22, %v1050_v0 }
 0x123   : > { %11110 = vst [vmem:[#allocation29_spill] sm:$0xff] %v7418_v51  ;;  %v1146_v38 = vsel %vm232_vm0, 0.0, %v1145_v7  ;;  %v1519_v1 = vrot.slane %v7432_v9, 4  ;;  %v1461_v55 = vrot.slane %v1418_v29, 4  ;;  %v7448_v23 = vperm.slane %v1498_v54, %v6582_v16 }
 0x124   : > { %11113 = vst [vmem:[#allocation30_spill] sm:$0xff] %v7432_v9  ;;  %v1458_v13 = vsel %vm232_vm0, %v7418_v51, %v1457_v45  ;;  %v5698_v31 = vpack.i.bf16 %v1146_v38, %v1090_v53  ;;  %v11114_v40 = vrot.slane %v7171_v57, 4  ;;  %v11115_v32 = vrot.slane %v7211_v44, 4 }
 0x125   : > { %v1520_v60 = vsel %vm232_vm0, 0.0, %v1519_v1  ;;  %v1508_v0 = vsel %vm232_vm0, %v1507_v63, %v7324_v36  ;;  %v1462_v27 = vsel %vm232_vm0, %v1442_v5, %v1461_v55  ;;  %v1521_v43 = vrot.slane %v7448_v23, 4 }
 0x126   : > { %v1420_v61 = vsel %vm232_vm0, %v11114_v40, %v7155_v48  ;;  %v1444_v21 = vsel %vm232_vm0, %v11115_v32, %v7253_v28  ;;  %v5703_v4 = vpack.i.bf16 %v1520_v60, %v1458_v13  ;;  %5699 = vrot.lane.b32.xlu0 %v5698_v31, %s6486_s29  ;;  %v1514_v42 = vperm.slane %v1508_v0, %v6582_v16 }
 0x127   : > { %v1426_v39 = vperm.slane %v1420_v61, %v6582_v16  ;;  %v1450_v17 = vperm.slane %v1444_v21, %v6582_v16  ;;  %v1459_v22 = vrot.slane %v1442_v5, 4  ;;  %v11116_v2 = vrot.slane %v7155_v48, 4 }
 0x128   : > { %v11117_v18 = vrot.slane %v7253_v28, 4  ;;  %v1522_v62 = vsel %vm232_vm0, 0.0, %v1521_v43  ;;  %v1675_v53 = vrot.slane %v7355_v46, 4  ;;  %v5693_v5 = vpack.i.bf16 %v1138_v34, %v1088_v12 }
 0x129   : > { %v1422_v56 = vsel %vm232_vm0, %v7171_v57, %v11116_v2  ;;  %v1463_v11 = vrot.slane %v1450_v17, 4  ;;  %v5713_v54 = vpack.i.bf16 %v1522_v62, %v1462_v27  ;;  %v1509_v48 = vrot.slane %v7324_v36, 4  ;;  %5704 = vrot.lane.b32.xlu1 %v5703_v4, %s6483_s26 }
 0x12a   : > { %v1446_v63 = vsel %vm232_vm0, %v7211_v44, %v11117_v18  ;;  %v1430_v7 = vperm.slane %v1422_v56, %v6582_v16  ;;  %v1460_v28 = vsel %vm232_vm0, %v1459_v22, %v1418_v29  ;;  %v1465_v13 = vrot.slane %v1426_v39, 4  ;;  %5694 = vrot.lane.b32.xlu2 %v5693_v5, %s6488_s4 }
 0x12b   : > { %v1454_v45 = vperm.slane %v1446_v63, %v6582_v16  ;;  %v1464_v57 = vsel %vm232_vm0, %v1463_v11, %v1426_v39  ;;  %v5708_v44 = vpack.i.bf16 %v7448_v23, %v1460_v28  ;;  %v1510_v1 = vsel %vm232_vm0, %v7361_v15, %v1509_v48 }
 0x12c   : > { %v1469_v31 = vrot.slane %v1430_v7, 4  ;;  %v1523_v34 = vrot.slane %v1514_v42, 4  ;;  %v5718_v12 = vpack.i.bf16 %v1514_v42, %v1464_v57  ;;  %v1518_v36 = vperm.slane %v1510_v1, %v6582_v16 }
 0x12d   : > { %v1467_v38 = vrot.slane %v1454_v45, 4  ;;  %v7489_v55 = vsel %vm232_vm0, %v1450_v17, %v1465_v13  ;;  %v11118_v29 = vrot.slane %v7137_v3, 4  ;;  %v11119_v60 = vrot.slane %v7250_v24, 4 }
 0x12e   : > { %v11120_v39 = vrot.slane %v7275_v30, 4  ;;  %v1470_v21 = vsel %vm232_vm0, %v1454_v45, %v1469_v31  ;;  %v1525_v0 = vrot.slane %v1518_v36, 4  ;;  %v1524_v4 = vsel %vm232_vm0, 0.0, %v1523_v34  ;;  %5714 = vrot.lane.b32.xlu0 %v5713_v54, %s6482_s25 }
 0x12f   : > { %v1578_v40 = vsel %vm232_vm0, %v7188_v47, %v11118_v29  ;;  %v1468_v61 = vsel %vm232_vm0, %v1467_v38, %v1430_v7  ;;  %v1602_v15 = vsel %vm232_vm0, %v7175_v35, %v11119_v60  ;;  %v11121_v42 = vrot.slane %v7188_v47, 4 }
 0x130   : > { %v1586_v23 = vperm.slane %v1578_v40, %v6582_v16  ;;  %v1666_v32 = vsel %vm232_vm0, %v7344_v59, %v11120_v39  ;;  %v1610_v27 = vperm.slane %v1602_v15, %v6582_v16  ;;  %v5728_v43 = vpack.i.bf16 %v1518_v36, %v1468_v61 }
 0x131   : > { %v7510_v17 = vperm.slane %v1666_v32, %v6582_v16  ;;  %v1576_v22 = vsel %vm232_vm0, %v11121_v42, %v7137_v3  ;;  %v11122_v2 = vrot.slane %v7175_v35, 4  ;;  %v1526_v18 = vsel %vm232_vm0, 0.0, %v1525_v0  ;;  %5719 = vrot.lane.b32.xlu1 %v5718_v12, %s6484_s27  ;;  %v6380_v32 = vld [vmem:[%s6551_s24] sm:$0xff] }
 0x132   : > { %v1627_v63 = vrot.slane %v1610_v27, 4  ;;  %v1629_v62 = vrot.slane %v1586_v23, 4  ;;  %v7522_v11 = vperm.slane %v1576_v22, %v6582_v16  ;;  %v5723_v7 = vpack.i.bf16 %v1524_v4, %v7489_v55  ;;  %5709 = vrot.lane.b32.xlu2 %v5708_v44, %s6485_s28  ;;  %v6382_v22 = vld [vmem:[%s6551_s24 + $0x18] sm:$0xff] }
 0x133   : > { %v1600_v56 = vsel %vm232_vm0, %v11122_v2, %v7250_v24  ;;  %v1689_v45 = vrot.slane %v7510_v17, 4  ;;  %v1664_v3 = vsel %vm232_vm0, %v1663_v10, %v7275_v30  ;;  %v5733_v35 = vpack.i.bf16 %v1526_v18, %v1470_v21 }
 0x134   : > { %11123 = vst [vmem:[#allocation31_spill] sm:$0xff] %v7522_v11  ;;  %v7527_v47 = vperm.slane %v1600_v56, %v6582_v16  ;;  %v7534_v24 = vsel %vm232_vm0, %v1627_v63, %v1586_v23  ;;  %v7537_v5 = vsel %vm232_vm0, %v1610_v27, %v1629_v62  ;;  %v7540_v54 = vperm.slane %v1664_v3, %v6582_v16  ;;  %v7626_v63 = vld [vmem:[%s6551_s24 + $0x20] sm:$0xff] }
 0x135   : > { %v7545_v48 = vsel %vm232_vm0, 0.0, %v1689_v45  ;;  %v1625_v59 = vrot.slane %v7522_v11, 4  ;;  %v11125_v30 = vrot.slane %v7168_v37, 4  ;;  %v11126_v57 = vrot.slane %v7185_v20, 4  ;;  %v6384_v45 = vld [vmem:[%s6551_s24 + $0x30] sm:$0xff] }
 0x136   : > { %11124 = vst [vmem:[#allocation32_spill] sm:$0xff] %v7540_v54  ;;  %v5743_v38 = vpack.i.bf16 %v7510_v17, %v7534_v24  ;;  %v5748_v13 = vpack.i.bf16 %v7545_v48, %v7537_v5  ;;  %v1687_v44 = vrot.slane %v7540_v54, 4  ;;  %v1676_v34 = vsel %vm232_vm0, %v1675_v53, %v7294_v41  ;;  %5729 = vrot.lane.b32.xlu0 %v5728_v43, %s6488_s4 }
 0x137   : > { %v1588_v10 = vsel %vm232_vm0, %v11125_v30, %v7146_v49  ;;  %v1612_v28 = vsel %vm232_vm0, %v11126_v57, %v7240_v33  ;;  %v11127_v12 = vrot.slane %v7146_v49, 4  ;;  %v11128_v55 = vrot.slane %v7240_v33, 4  ;;  %v7643_v57 = vld [vmem:[%s6551_s24 + $0xf8] sm:$0xff] }
 0x138   : > { %v1594_v1 = vperm.slane %v1588_v10, %v6582_v16  ;;  %v1618_v31 = vperm.slane %v1612_v28, %v6582_v16  ;;  %v7575_v40 = vsel %vm232_vm0, %v7527_v47, %v1625_v59  ;;  %v7578_v61 = vsel %vm232_vm0, 0.0, %v1687_v44  ;;  %v6386_v59 = vld [vmem:[%s6551_s24 + $0xf0] sm:$0xff]  ;;  %v6388_v44 = vld [vmem:[%s6551_s24 + $0x108] sm:$0xff] }
 0x139   : > { %v1590_v36 = vsel %vm232_vm0, %v7168_v37, %v11127_v12  ;;  %v1614_v29 = vsel %vm232_vm0, %v7185_v20, %v11128_v55  ;;  %v7581_v53 = vperm.slane %v1676_v34, %v6582_v16  ;;  %v1677_v20 = vrot.slane %v7294_v41, 4  ;;  %v7602_v41 = vld [vmem:[%s6551_s24 + $0x8] sm:$0xff]  ;;  %5734 = vrot.lane.b32.xlu1 %v5733_v35, %s6486_s29  ;;  %v7636_v35 = vld [vmem:[%s6551_s24 + $0x38] sm:$0xff] }
 0x13a   : > { %v1633_v23 = vrot.slane %v1594_v1, 4  ;;  %v7585_v49 = vperm.slane %v1590_v36, %v6582_v16  ;;  %v7588_v37 = vperm.slane %v1614_v29, %v6582_v16  ;;  %v1631_v33 = vrot.slane %v1618_v31, 4  ;;  %5724 = vrot.lane.b32.xlu2 %v5723_v7, %s6487_s30  ;;  %v6390_v36 = vld [vmem:[%s6551_s24 + $0x120] sm:$0xff]  ;;  %v7658_v29 = vld [vmem:[%s6551_s24 + $0x128] sm:$0xff] }
 0x13b   : > { %v5738_v60 = vpack.i.bf16 %v7578_v61, %v7575_v40  ;;  %v1691_v39 = vrot.slane %v7581_v53, 4  ;;  %v1848_v21 = vrot.slane %v6380_v32, 1  ;;  %v1678_v4 = vsel %vm232_vm0, %v7355_v46, %v1677_v20  ;;  %v6392_v20 = vld [vmem:[%s6551_s24 + $0x1e0] sm:$0xff] }
 0x13c   : > { %v7594_v15 = vsel %vm232_vm0, %v1618_v31, %v1633_v23  ;;  %v1635_v0 = vrot.slane %v7588_v37, 4  ;;  %v10939_v27 = vrot.slane %v7602_v41, 1  ;;  %v7609_v17 = vperm.slane %v1678_v4, %v6582_v16  ;;  %v7648_v31 = vld [vmem:[%s6551_s24 + $0x110] sm:$0xff]  ;;  %v6394_v4 = vld [vmem:[%s6551_s24 + $0x1f8] sm:$0xff] }
 0x13d   : > { %v7606_v43 = vsel %vm232_vm0, 0.0, %v1691_v39  ;;  %v7612_v42 = vsel %vm232_vm0, %v1631_v33, %v1594_v1  ;;  %v1853_v2 = vrot.slane %v6382_v22, 1  ;;  %v10937_v62 = vrot.slane %v7626_v63, 1 }
 0x13e   : > { %v5758_v46 = vpack.i.bf16 %v7606_v43, %v7594_v15  ;;  %v7621_v56 = vsel %vm232_vm0, %v1635_v0, %v7585_v49  ;;  %v7632_v7 = vsel %vm1847_vm1, %v1848_v21, %v10939_v27  ;;  %v1858_v3 = vrot.slane %v6384_v45, 1  ;;  %5744 = vrot.lane.b32.xlu0 %v5743_v38, %s6485_s28  ;;  %v7674_v21 = vld [vmem:[%s6551_s24 + $0x1e8] sm:$0xff] }
 0x13f   : > { %v10936_v24 = vrot.slane %v7636_v35, 1  ;;  %v1863_v30 = vrot.slane %v6386_v59, 1  ;;  %v5763_v10 = vpack.i.bf16 %v7609_v17, %v7621_v56  ;;  %v10935_v28 = vrot.slane %v7643_v57, 1 }
 0x140   : > { %v1868_v1 = vrot.slane %v6388_v44, 1  ;;  %v10934_v34 = vrot.slane %v7648_v31, 1  ;;  %v7654_v12 = vsel %vm1847_vm1, %v1853_v2, %v10937_v62  ;;  %v1873_v55 = vrot.slane %v6390_v36, 1  ;;  %v7684_v2 = vld [vmem:[%s6551_s24 + $0x200] sm:$0xff] }
 0x141   : > { %v10940_v23 = vrot.slane %v7658_v29, 1  ;;  %v1878_v33 = vrot.slane %v6392_v20, 1  ;;  %v7666_v39 = vsel %vm1847_vm1, %v1858_v3, %v10936_v24  ;;  %v7671_v32 = vsel %vm1847_vm1, %v1863_v30, %v10935_v28  ;;  %v6396_v3 = vld [vmem:[%s6551_s24 + $0x210] sm:$0xff]  ;;  %v7689_v30 = vld [vmem:[%s6551_s24 + $0x218] sm:$0xff]  ;;  %v6400_v28 = vld [vmem:[%s6551_s24 + $0x2e8] sm:$0xff]  ;;  %5749 = vrot.lane.b32.xlu1 %v5748_v13, %s6482_s25 }
 0x142   : > { %v10938_v0 = vrot.slane %v7674_v21, 1  ;;  %v1883_v22 = vrot.slane %v6394_v4, 1  ;;  %v7681_v38 = vsel %vm1847_vm1, %v1868_v1, %v10934_v34  ;;  %v10945_v45 = vrot.slane %v7684_v2, 1  ;;  %v6398_v1 = vld [vmem:[%s6551_s24 + $0x2d0] sm:$0xff]  ;;  %v7699_v4 = vld [vmem:[%s6551_s24 + $0x2d8] sm:$0xff]  ;;  %5739 = vrot.lane.b32.xlu2 %v5738_v60, %s6483_s26 }
 0x143   : > { %v1888_v59 = vrot.slane %v6396_v3, 1  ;;  %v10943_v44 = vrot.slane %v7689_v30, 1  ;;  %v1893_v20 = vrot.slane %v6398_v1, 1  ;;  %v10941_v34 = vrot.slane %v7699_v4, 1 }
 0x144   : > { %v7695_v36 = vsel %vm1847_vm1, %v1878_v33, %v10938_v0  ;;  %v1898_v24 = vrot.slane %v6400_v28, 1  ;;  %v7706_v3 = vsel %vm1847_vm1, %v1873_v55, %v10940_v23  ;;  %v7711_v62 = vsel %vm1847_vm1, %v1883_v22, %v10945_v45  ;;  %v7714_v33 = vld [vmem:[%s6551_s24 + $0x2f0] sm:$0xff]  ;;  %v6402_v0 = vld [vmem:[%s6551_s24 + $0x300] sm:$0xff]  ;;  %v7732_v55 = vld [vmem:[%s6551_s24 + $0x308] sm:$0xff] }
 0x145   : > { %v10942_v1 = vrot.slane %v7714_v33, 1  ;;  %v1903_v27 = vrot.slane %v6402_v0, 1  ;;  %v7729_v28 = vsel %vm1847_vm1, %v1888_v59, %v10943_v44  ;;  %v10944_v22 = vrot.slane %v7732_v55, 1 }
 0x146   : > { %v1932_v0 = vrot.slane %v7666_v39, 4  ;;  %v1944_v23 = vrot.slane %v7671_v32, 4  ;;  %v7740_v5 = vsel %vm1847_vm1, %v1893_v20, %v10941_v34  ;;  %v1956_v13 = vrot.slane %v7695_v36, 4  ;;  %5759 = vrot.lane.b32.xlu0 %v5758_v46, %s6487_s30 }
 0x147   : > { %v7745_v48 = vsel %vm1847_vm1, %v1898_v24, %v10942_v1  ;;  %v1968_v40 = vrot.slane %v7711_v62, 4  ;;  %v7752_v61 = vsel %vm1847_vm1, %v1903_v27, %v10944_v22  ;;  %v1693_v46 = vrot.slane %v7609_v17, 4 }
 0x148   : > { %v1933_v60 = vsel %vm232_vm0, %v1932_v0, %v7632_v7  ;;  %v1945_v59 = vsel %vm232_vm0, %v1944_v23, %v7654_v12  ;;  %v2044_v20 = vrot.slane %v7745_v48, 4  ;;  %v1957_v1 = vsel %vm232_vm0, %v1956_v13, %v7681_v38 }
 0x149   : > { %v1939_v24 = vperm.slane %v1933_v60, %v6559_v6  ;;  %v1951_v34 = vperm.slane %v1945_v59, %v6559_v6  ;;  %v1969_v44 = vsel %vm232_vm0, %v1968_v40, %v7706_v3  ;;  %v1963_v27 = vperm.slane %v1957_v1, %v6559_v6  ;;  %5764 = vrot.lane.b32.xlu1 %v5763_v10, %s6488_s4 }
 0x14a   : > { %v1975_v23 = vperm.slane %v1969_v44, %v6559_v6  ;;  %v2045_v0 = vsel %vm232_vm0, %v2044_v20, %v7729_v28  ;;  %v2056_v60 = vrot.slane %v7752_v61, 4  ;;  %v1637_v40 = vrot.slane %v7585_v49, 4 }
 0x14b   : > { %v1980_v59 = vrot.slane %v1951_v34, 4  ;;  %v2051_v13 = vperm.slane %v2045_v0, %v6559_v6  ;;  %v1982_v22 = vrot.slane %v1939_v24, 4  ;;  %v2006_v43 = vrot.slane %v1963_v27, 4 }
 0x14c   : > { %v2004_v45 = vrot.slane %v1975_v23, 4  ;;  %v2057_v15 = vsel %vm232_vm0, %v2056_v60, %v7740_v5  ;;  %v11129_v49 = vpack.i.bf16 %v7581_v53, %v7612_v42  ;;  %v1638_v60 = vsel %vm232_vm0, %v7588_v37, %v1637_v40 }
 0x14d   : > { %v1981_v44 = vsel %vm232_vm0, %v1980_v59, %v1939_v24  ;;  %v2063_v1 = vperm.slane %v2057_v15, %v6559_v6  ;;  %v1983_v20 = vsel %vm232_vm0, %v1951_v34, %v1982_v22  ;;  %v2070_v18 = vrot.slane %v2051_v13, 4 }
 0x14e   : > { %5754 = vrot.lane.b32.xlu2 %v11129_v49, %s6484_s27  ;;  %v7791_v0 = vperm.slane %v1981_v44, %v6582_v16  ;;  %v2005_v24 = vsel %vm232_vm0, %v2004_v45, %v1963_v27  ;;  %v1694_v34 = vsel %vm232_vm0, 0.0, %v1693_v46  ;;  %v2007_v56 = vsel %vm232_vm0, %v1975_v23, %v2006_v43 }
 0x14f   : > { %v7798_v22 = vperm.slane %v2005_v24, %v6582_v16  ;;  %v2068_v17 = vrot.slane %v2063_v1, 4  ;;  %v2071_v10 = vsel %vm232_vm0, %v2063_v1, %v2070_v18  ;;  %v7804_v42 = vperm.slane %v1983_v20, %v6582_v16 }
 0x150   : > { %v2030_v53 = vrot.slane %v7791_v0, 4  ;;  %v7807_v45 = vperm.slane %v2007_v56, %v6582_v16  ;;  %v7810_v37 = vperm.slane %v2071_v10, %v6582_v16  ;;  %v5768_v59 = vpack.i.bf16 %v1694_v34, %v1638_v60 }
 0x151   : > { %v2069_v27 = vsel %vm232_vm0, %v2068_v17, %v2051_v13  ;;  %v1934_v40 = vrot.slane %v7632_v7, 4  ;;  %v1946_v23 = vrot.slane %v7654_v12, 4  ;;  %v1958_v46 = vrot.slane %v7681_v38, 4 }
 0x152   : > { %v2031_v18 = vsel %vm232_vm0, %v7798_v22, %v2030_v53  ;;  %v7818_v15 = vperm.slane %v2069_v27, %v6582_v16  ;;  %v2032_v43 = vrot.slane %v7807_v45, 4  ;;  %v1970_v1 = vrot.slane %v7706_v3, 4  ;;  %v197_v27 = vld [vmem:[%s6551_s24 + $0x10] sm:$0x3] }
 0x153   : > { %v1935_v44 = vsel %vm232_vm0, %v7666_v39, %v1934_v40  ;;  %v1947_v13 = vsel %vm232_vm0, %v7671_v32, %v1946_v23  ;;  %v2046_v20 = vrot.slane %v7729_v28, 4  ;;  %v1959_v56 = vsel %vm232_vm0, %v7695_v36, %v1958_v46 }
 0x154   : > { %v2092_v49 = vrot.slane %v7818_v15, 4  ;;  %v2033_v24 = vsel %vm232_vm0, %v2032_v43, %v7804_v42  ;;  %v1943_v60 = vperm.slane %v1935_v44, %v6559_v6  ;;  %v1955_v34 = vperm.slane %v1947_v13, %v6559_v6 }
 0x155   : > { %v5778_v17 = vpack.i.bf16 %v7810_v37, %v2033_v24  ;;  %v1971_v10 = vsel %vm232_vm0, %v7711_v62, %v1970_v1  ;;  %v2047_v53 = vsel %vm232_vm0, %v7745_v48, %v2046_v20  ;;  %v1967_v23 = vperm.slane %v1959_v56, %v6559_v6 }
 0x156   : > { %v2093_v40 = vsel %vm232_vm0, 0.0, %v2092_v49  ;;  %5769 = vrot.lane.b32.xlu2 %v5768_v59, %s6486_s29  ;;  %v1979_v43 = vperm.slane %v1971_v10, %v6559_v6  ;;  %v1992_v44 = vrot.slane %v1955_v34, 4  ;;  %v2055_v46 = vperm.slane %v2047_v53, %v6559_v6  ;;  %v200_v53 = vld [vmem:[%s6551_s24 + $0x28] sm:$0x3] }
 0x157   : > { %v5773_v13 = vpack.i.bf16 %v2093_v40, %v2031_v18  ;;  %5779 = vrot.lane.b32.xlu1 %v5778_v17, %s6485_s28  ;;  %v2058_v1 = vrot.slane %v7740_v5, 4  ;;  %v1994_v20 = vrot.slane %v1943_v60, 4  ;;  %v2018_v9 = vrot.slane %v1967_v23, 4 }
 0x158   : > { %v1993_v24 = vsel %vm232_vm0, %v1992_v44, %v1943_v60  ;;  %v2016_v49 = vrot.slane %v1979_v43, 4  ;;  %v1851_v59 = vrot.slane %v197_v27, 1  ;;  %v2082_v17 = vrot.slane %v2055_v46, 4 }
 0x159   : > { %5774 = vrot.lane.b32.xlu0 %v5773_v13, %s6483_s26  ;;  %v1999_v56 = vperm.slane %v1993_v24, %v6582_v16  ;;  %v2059_v18 = vsel %vm232_vm0, %v7752_v61, %v2058_v1  ;;  %v1995_v10 = vsel %vm232_vm0, %v1955_v34, %v1994_v20  ;;  %v2019_v44 = vsel %vm232_vm0, %v1979_v43, %v2018_v9  ;;  %v203_v13 = vld [vmem:[%s6551_s24 + $0x40] sm:$0x3]  ;;  %v212_v43 = vld [vmem:[%s6551_s24 + $0x130] sm:$0x3] }
 0x15a   : > { %v2017_v40 = vsel %vm232_vm0, %v2016_v49, %v1967_v23  ;;  %v2067_v60 = vperm.slane %v2059_v18, %v6559_v6  ;;  %v7858_v27 = vperm.slane %v1995_v10, %v6582_v16  ;;  %v7864_v8 = vperm.slane %v2019_v44, %v6582_v16  ;;  %v206_v34 = vld [vmem:[%s6551_s24 + $0x100] sm:$0x3]  ;;  %v209_v18 = vld [vmem:[%s6551_s24 + $0x118] sm:$0x3] }
 0x15b   : > { %v2023_v24 = vperm.slane %v2017_v40, %v6582_v16  ;;  %v2038_v1 = vrot.slane %v1999_v56, 4  ;;  %v1856_v10 = vrot.slane %v200_v53, 1  ;;  %v215_v40 = vld [vmem:[%s6551_s24 + $0x1f0] sm:$0x3]  ;;  %v11130_v44 = vrot.slane %v7602_v41, 1 }
 0x15c   : > { %v2080_v20 = vrot.slane %v2067_v60, 4  ;;  %v2042_v23 = vrot.slane %v7858_v27, 4  ;;  %v2083_v49 = vsel %vm232_vm0, %v2067_v60, %v2082_v17  ;;  %v1861_v14 = vrot.slane %v203_v13, 1  ;;  %v218_v60 = vld [vmem:[%s6551_s24 + $0x208] sm:$0x3] }
 0x15d   : > { %v2036_v25 = vrot.slane %v2023_v24, 4  ;;  %v7871_v9 = vperm.slane %v2083_v49, %v6582_v16  ;;  %v7878_v51 = vsel %vm1847_vm1, %v11130_v44, %v1851_v59  ;;  %v2039_v17 = vsel %vm232_vm0, %v2023_v24, %v2038_v1  ;;  %v224_v59 = vld [vmem:[%s6551_s24 + $0x2e0] sm:$0x3]  ;;  %v227_v24 = vld [vmem:[%s6551_s24 + $0x2f8] sm:$0x3] }
 0x15e   : > { %v2081_v26 = vsel %vm232_vm0, %v2080_v20, %v2055_v46  ;;  %v2043_v53 = vsel %vm232_vm0, %v7864_v8, %v2042_v23  ;;  %v1866_v49 = vrot.slane %v206_v34, 1  ;;  %v11131_v13 = vrot.slane %v7626_v63, 1 }
 0x15f   : > { %v2037_v52 = vsel %vm232_vm0, %v2036_v25, %v1999_v56  ;;  %v2087_v19 = vperm.slane %v2081_v26, %v6582_v16  ;;  %v2098_v41 = vrot.slane %v7871_v9, 4  ;;  %v11132_v1 = vrot.slane %v7636_v35, 1 }
 0x160   : > { %v7893_v46 = vsel %vm1847_vm1, %v11131_v13, %v1856_v10  ;;  %v1871_v34 = vrot.slane %v209_v18, 1  ;;  %v1876_v23 = vrot.slane %v212_v43, 1  ;;  %v1881_v25 = vrot.slane %v215_v40, 1 }
 0x161   : > { %v7899_v20 = vsel %vm1847_vm1, %v11132_v1, %v1861_v14  ;;  %v5788_v56 = vpack.i.bf16 %v2087_v19, %v2037_v52  ;;  %v2096_v26 = vrot.slane %v2087_v19, 4  ;;  %v2099_v44 = vsel %vm232_vm0, 0.0, %v2098_v41 }
 0x162   : > { %v1886_v54 = vrot.slane %v218_v60, 1  ;;  %v5803_v11 = vpack.i.bf16 %v2099_v44, %v2043_v53  ;;  %v11133_v63 = vrot.slane %v7643_v57, 1  ;;  %v11134_v35 = vrot.slane %v7648_v31, 1 }
 0x163   : > { %v11135_v18 = vrot.slane %v7674_v21, 1  ;;  %5789 = vrot.lane.b32.xlu0 %v5788_v56, %s6484_s27  ;;  %v2097_v19 = vsel %vm232_vm0, 0.0, %v2096_v26  ;;  %v11136_v43 = vrot.slane %v7684_v2, 1  ;;  %v1891_v40 = vrot.slane %v221_v50, 1 }
 0x164   : > { %v7906_v10 = vsel %vm1847_vm1, %v11133_v63, %v1866_v49  ;;  %v7911_v14 = vsel %vm1847_vm1, %v11134_v35, %v1871_v34  ;;  %v1896_v53 = vrot.slane %v224_v59, 1  ;;  %v5793_v31 = vpack.i.bf16 %v2097_v19, %v2039_v17  ;;  %v7971_v19 = vpop.permute.xlu2 %5634 }
 0x165   : > { %v7916_v52 = vsel %vm1847_vm1, %v11135_v18, %v1881_v25  ;;  %v7923_v57 = vsel %vm1847_vm1, %v11136_v43, %v1886_v54  ;;  %v1901_v60 = vrot.slane %v227_v24, 1  ;;  %v1906_v49 = vrot.slane %v230_v58, 1  ;;  %11142 = vst [vmem:[#allocation33_spill] sm:$0xff] %v7971_v19 }
 0x166   : > { %v2100_v41 = vrot.slane %v7899_v20, 4  ;;  %v11137_v21 = vrot.slane %v7658_v29, 1  ;;  %v11138_v1 = vrot.slane %v7689_v30, 1  ;;  %v2112_v54 = vrot.slane %v7906_v10, 4  ;;  %5794 = vrot.lane.b32.xlu1 %v5793_v31, %s6487_s30 }
 0x167   : > { %v2124_v50 = vrot.slane %v7916_v52, 4  ;;  %v11139_v58 = vrot.slane %v7714_v33, 1  ;;  %v11140_v29 = vrot.slane %v7732_v55, 1  ;;  %v2136_v59 = vrot.slane %v7923_v57, 4 }
 0x168   : > { %v7929_v13 = vsel %vm1847_vm1, %v11137_v21, %v1876_v23  ;;  %v7934_v34 = vsel %vm1847_vm1, %v11138_v1, %v1891_v40  ;;  %v2101_v30 = vsel %vm232_vm0, %v2100_v41, %v7878_v51  ;;  %v11141_v24 = vrot.slane %v7699_v4, 1 }
 0x169   : > { %v7942_v2 = vsel %vm1847_vm1, %v11139_v58, %v1901_v60  ;;  %v7947_v17 = vsel %vm1847_vm1, %v11140_v29, %v1906_v49  ;;  %v2113_v33 = vsel %vm232_vm0, %v2112_v54, %v7893_v46  ;;  %v2125_v25 = vsel %vm232_vm0, %v2124_v50, %v7911_v14 }
 0x16a   : > { %v7955_v23 = vsel %vm1847_vm1, %v11141_v24, %v1896_v53  ;;  %v2212_v55 = vrot.slane %v7942_v2, 4  ;;  %v2107_v56 = vperm.slane %v2101_v30, %v6559_v6  ;;  %v2119_v26 = vperm.slane %v2113_v33, %v6559_v6 }
 0x16b   : > { %v2137_v44 = vsel %vm232_vm0, %v2136_v59, %v7929_v13  ;;  %v2224_v4 = vrot.slane %v7947_v17, 4  ;;  %v2131_v63 = vperm.slane %v2125_v25, %v6559_v6  ;;  %5804 = vrot.lane.b32.xlu0 %v5803_v11, %s6486_s29  ;;  %v2034_v41 = vrot.slane %v7804_v42, 4 }
 0x16c   : > { %v2143_v35 = vperm.slane %v2137_v44, %v6559_v6  ;;  %v2213_v18 = vsel %vm232_vm0, %v2212_v55, %v7934_v34  ;;  %v2148_v43 = vrot.slane %v2119_v26, 4  ;;  %v2094_v21 = vrot.slane %v7810_v37, 4 }
 0x16d   : > { %v2225_v40 = vsel %vm232_vm0, %v2224_v4, %v7955_v23  ;;  %v2219_v31 = vperm.slane %v2213_v18, %v6559_v6  ;;  %v2035_v11 = vsel %vm232_vm0, %v7807_v45, %v2034_v41  ;;  %v2150_v30 = vrot.slane %v2107_v56, 4 }
 0x16e   : > { %v2172_v53 = vrot.slane %v2143_v35, 4  ;;  %v2231_v60 = vperm.slane %v2225_v40, %v6559_v6  ;;  %v2149_v49 = vsel %vm232_vm0, %v2148_v43, %v2107_v56  ;;  %v2095_v29 = vsel %vm232_vm0, 0.0, %v2094_v21 }
 0x16f   : > { %v7982_v1 = vperm.slane %v2149_v49, %v6582_v16  ;;  %v5783_v37 = vpack.i.bf16 %v2095_v29, %v2035_v11  ;;  %v2174_v24 = vrot.slane %v2131_v63, 4  ;;  %v2151_v25 = vsel %vm232_vm0, %v2119_v26, %v2150_v30  ;;  %v8018_v49 = vpop.permute.xlu2 %5649 }
 0x170   : > { %v2173_v54 = vsel %vm232_vm0, %v2172_v53, %v2131_v63  ;;  %v2236_v50 = vrot.slane %v2231_v60, 4  ;;  %v2238_v55 = vrot.slane %v2219_v31, 4  ;;  %v8001_v45 = vperm.slane %v2151_v25, %v6582_v16  ;;  %11143 = vst [vmem:[#allocation34_spill] sm:$0xff] %v8018_v49  ;;  %v8035_v25 = vpop.permute.xlu0 %5639 }
 0x171   : > { %v7986_v58 = vperm.slane %v2173_v54, %v6582_v16  ;;  %v2198_v59 = vrot.slane %v7982_v1, 4  ;;  %5784 = vrot.lane.b32.xlu2 %v5783_v37, %s6482_s25  ;;  %v2175_v56 = vsel %vm232_vm0, %v2143_v35, %v2174_v24  ;;  %v2102_v4 = vrot.slane %v7878_v51, 4  ;;  %11144 = vst [vmem:[#allocation35_spill] sm:$0xff] %v8035_v25 }
 0x172   : > { %v2237_v42 = vsel %vm232_vm0, %v2236_v50, %v2219_v31  ;;  %v8007_v18 = vperm.slane %v2175_v56, %v6582_v16  ;;  %v2239_v26 = vsel %vm232_vm0, %v2231_v60, %v2238_v55  ;;  %v2114_v43 = vrot.slane %v7893_v46, 4 }
 0x173   : > { %v7994_v33 = vperm.slane %v2237_v42, %v6582_v16  ;;  %v2199_v44 = vsel %vm232_vm0, %v7986_v58, %v2198_v59  ;;  %v2202_v40 = vrot.slane %v8001_v45, 4  ;;  %v8013_v53 = vperm.slane %v2239_v26, %v6582_v16 }
 0x174   : > { %v2103_v31 = vsel %vm232_vm0, %v7899_v20, %v2102_v4  ;;  %v2126_v35 = vrot.slane %v7911_v14, 4  ;;  %v2115_v60 = vsel %vm232_vm0, %v7906_v10, %v2114_v43  ;;  %v2138_v54 = vrot.slane %v7929_v13, 4 }
 0x175   : > { %v2260_v63 = vrot.slane %v7994_v33, 4  ;;  %v2111_v21 = vperm.slane %v2103_v31, %v6559_v6  ;;  %v2203_v11 = vsel %vm232_vm0, %v8007_v18, %v2202_v40  ;;  %v2262_v29 = vrot.slane %v8013_v53, 4 }
 0x176   : > { %v2123_v30 = vperm.slane %v2115_v60, %v6559_v6  ;;  %v2127_v59 = vsel %vm232_vm0, %v7916_v52, %v2126_v35  ;;  %v2139_v42 = vsel %vm232_vm0, %v7923_v57, %v2138_v54  ;;  %v2214_v37 = vrot.slane %v7934_v34, 4 }
 0x177   : > { %v2261_v41 = vsel %vm232_vm0, 0.0, %v2260_v63  ;;  %v2226_v24 = vrot.slane %v7955_v23, 4  ;;  %v2263_v55 = vsel %vm232_vm0, 0.0, %v2262_v29  ;;  %v2147_v56 = vperm.slane %v2139_v42, %v6559_v6 }
 0x178   : > { %v5808_v50 = vpack.i.bf16 %v2261_v41, %v2199_v44  ;;  %v2135_v44 = vperm.slane %v2127_v59, %v6559_v6  ;;  %v2160_v4 = vrot.slane %v2123_v30, 4  ;;  %v5818_v63 = vpack.i.bf16 %v2263_v55, %v2203_v11 }
 0x179   : > { %v2215_v26 = vsel %vm232_vm0, %v7942_v2, %v2214_v37  ;;  %v2227_v43 = vsel %vm232_vm0, %v7947_v17, %v2226_v24  ;;  %v2184_v31 = vrot.slane %v2147_v56, 4  ;;  %v2040_v60 = vrot.slane %v7864_v8, 4 }
 0x17a   : > { %5809 = vrot.lane.b32.xlu1 %v5808_v50, %s6483_s26  ;;  %v2161_v40 = vsel %vm232_vm0, %v2160_v4, %v2111_v21  ;;  %v2223_v35 = vperm.slane %v2215_v26, %v6559_v6  ;;  %v2235_v41 = vperm.slane %v2227_v43, %v6559_v6  ;;  %5819 = vrot.lane.b32.xlu0 %v5818_v63, %s6482_s25  ;;  %v2162_v54 = vrot.slane %v2111_v21, 4  ;;  %v8056_v4 = vpop.permute.xlu1 %5644  ;;  %v8062_v26 = vpop.permute.xlu2 %5664 }
 0x17b   : > { %v2185_v50 = vsel %vm232_vm0, %v2184_v31, %v2135_v44  ;;  %v2186_v29 = vrot.slane %v2135_v44, 4  ;;  %v2167_v42 = vperm.slane %v2161_v40, %v6582_v16  ;;  %v2041_v24 = vsel %vm232_vm0, %v2040_v60, %v7858_v27  ;;  %11145 = vst [vmem:[#allocation36_spill] sm:$0xff] %v8056_v4 }
 0x17c   : > { %v2248_v11 = vrot.slane %v2235_v41, 4  ;;  %v2250_v59 = vrot.slane %v2223_v35, 4  ;;  %v2191_v37 = vperm.slane %v2185_v50, %v6582_v16  ;;  %v2163_v55 = vsel %vm232_vm0, %v2123_v30, %v2162_v54  ;;  %11146 = vst [vmem:[#allocation37_spill] sm:$0xff] %v8062_v26 }
 0x17d   : > { %v5798_v8 = vpack.i.bf16 %v7871_v9, %v2041_v24  ;;  %v2171_v21 = vperm.slane %v2163_v55, %v6582_v16  ;;  %v2187_v44 = vsel %vm232_vm0, %v2147_v56, %v2186_v29  ;;  %v8071_v56 = vpop.permute.xlu0 %5654 }
 0x17e   : > { %v2249_v63 = vsel %vm232_vm0, %v2248_v11, %v2223_v35  ;;  %v2204_v43 = vrot.slane %v2191_v37, 4  ;;  %v2195_v31 = vperm.slane %v2187_v44, %v6582_v16  ;;  %v2251_v27 = vsel %vm232_vm0, %v2235_v41, %v2250_v59  ;;  %11147 = vst [vmem:[#allocation38_spill] sm:$0xff] %v8071_v56 }
 0x17f   : > { %v2255_v40 = vperm.slane %v2249_v63, %v6582_v16  ;;  %5799 = vrot.lane.b32.xlu2 %v5798_v8, %s6488_s4  ;;  %v2259_v30 = vperm.slane %v2251_v27, %v6582_v16  ;;  %v2200_v35 = vrot.slane %v8007_v18, 4  ;;  %v2210_v54 = vrot.slane %v2171_v21, 4 }
 0x180   : > { %v2205_v9 = vsel %vm232_vm0, %v2204_v43, %v2167_v42  ;;  %v2208_v60 = vrot.slane %v2195_v31, 4  ;;  %v2206_v63 = vrot.slane %v2167_v42, 4 }
 0x181   : > { %v5823_v50 = vpack.i.bf16 %v2255_v40, %v2205_v9  ;;  %v2266_v11 = vrot.slane %v2259_v30, 4  ;;  %v2201_v29 = vsel %vm232_vm0, %v2200_v35, %v8001_v45  ;;  %v2211_v18 = vsel %vm232_vm0, %v2195_v31, %v2210_v54 }
 0x182   : > { %v2209_v24 = vsel %vm232_vm0, %v2208_v60, %v2171_v21  ;;  %v5813_v59 = vpack.i.bf16 %v8013_v53, %v2201_v29  ;;  %v2264_v8 = vrot.slane %v2255_v40, 4  ;;  %v8081_v44 = vpop.permute.xlu1 %5659  ;;  %v8084_v45 = vpop.permute.xlu2 %5679  ;;  %v2207_v21 = vsel %vm232_vm0, %v2191_v37, %v2206_v63 }
 0x183   : > { %5824 = vrot.lane.b32.xlu1 %v5823_v50, %s6484_s27  ;;  %v5833_v41 = vpack.i.bf16 %v2259_v30, %v2209_v24  ;;  %v2267_v55 = vsel %vm232_vm0, 0.0, %v2266_v11  ;;  %11148 = vst [vmem:[#allocation39_spill] sm:$0xff] %v8081_v44  ;;  %v8090_v53 = vpack.i.bf16 %v7893_v46, %v7654_v12  ;;  %v8099_v40 = vpack.i.bf16 %v7899_v20, %v7666_v39 }
 0x184   : > { %v5838_v43 = vpack.i.bf16 %v2267_v55, %v2211_v18  ;;  %11149 = vst [vmem:[#allocation40_spill] sm:$0xff] %v8084_v45  ;;  %v2265_v27 = vsel %vm232_vm0, 0.0, %v2264_v8  ;;  %v8106_v12 = vpack.i.bf16 %v7911_v14, %v7681_v38  ;;  %v8114_v30 = vpack.i.bf16 %v7878_v51, %v7632_v7 }
 0x185   : > { %5834 = vrot.lane.b32.xlu0 %v5833_v41, %s6488_s4  ;;  %v8092_v31 = vpop.permute.xlu0 %5669  ;;  %v5828_v42 = vpack.i.bf16 %v2265_v27, %v2207_v21  ;;  %v8122_v39 = vpack.i.bf16 %v7929_v13, %v7706_v3  ;;  %v8130_v20 = vpack.i.bf16 %v7923_v57, %v7711_v62  ;;  %v8138_v7 = vpack.i.bf16 %v7906_v10, %v7671_v32 }
 0x186   : > { %11150 = vst [vmem:[#allocation41_spill] sm:$0xff] %v8092_v31  ;;  %v8146_v14 = vpack.i.bf16 %v7934_v34, %v7729_v28  ;;  %v8154_v57 = vpack.i.bf16 %v7942_v2, %v7745_v48  ;;  %v8160_v32 = vpack.i.bf16 %v7916_v52, %v7695_v36  ;;  %v8170_v13 = vpack.i.bf16 %v7947_v17, %v7752_v61 }
 0x187   : > { %5814 = vrot.lane.b32.xlu2 %v5813_v59, %s6485_s28  ;;  %11155 = vst [vmem:[#allocation46_spill] sm:$0xff] %v8130_v20  ;;  %v8180_v36 = vpack.i.bf16 %v7955_v23, %v7740_v5  ;;  %v2028_v23 = vrot.slane %v7798_v22, 4 }
 0x188   : > { %11159 = vst [vmem:[#allocation50_spill] sm:$0xff] %v8154_v57 }
 0x189   : > { %11162 = vst [vmem:[#allocation53_spill] sm:$0xff] %v8170_v13  ;;  %v2029_v29 = vsel %vm232_vm0, %v2028_v23, %v7791_v0 }
 0x18a   : > { %v8102_v37 = vpop.permute.xlu1 %5674  ;;  %v8108_v46 = vpop.permute.xlu2 %5694 }
 0x18b   : > { %5839 = vrot.lane.b32.xlu1 %v5838_v43, %s6486_s29  ;;  %11151 = vst [vmem:[#allocation42_spill] sm:$0xff] %v8102_v37 }
 0x18c   : > { %11152 = vst [vmem:[#allocation43_spill] sm:$0xff] %v8108_v46 }
 0x18d   : > { %5849 = vrot.lane.b32.xlu0 %v8090_v53, %s6489_s5 }
 0x18f   : > { %5829 = vrot.lane.b32.xlu2 %v5828_v42, %s6487_s30 }
 0x190   : > { %v8116_v35 = vpop.permute.xlu0 %5684 }
 0x191   : > { %11153 = vst [vmem:[#allocation44_spill] sm:$0xff] %v8116_v35 }
 0x192   : > { %v8134_v51 = vpop.permute.xlu2 %5709 }
 0x193   : > { %5854 = vrot.lane.b32.xlu1 %v8099_v40, %s6489_s5  ;;  %v8126_v38 = vpop.permute.xlu1 %5689  ;;  %11156 = vst [vmem:[#allocation47_spill] sm:$0xff] %v8134_v51 }
 0x194   : > { %11154 = vst [vmem:[#allocation45_spill] sm:$0xff] %v8126_v38 }
 0x195   : > { %5864 = vrot.lane.b32.xlu0 %v8106_v12, %s6489_s5 }
 0x197   : > { %5844 = vrot.lane.b32.xlu2 %v8114_v30, %s6489_s5 }
 0x198   : > { %v8140_v3 = vpop.permute.xlu0 %5699 }
 0x199   : > { %11157 = vst [vmem:[#allocation48_spill] sm:$0xff] %v8140_v3 }
 0x19a   : > { %v8166_v28 = vpop.permute.xlu2 %5724 }
 0x19b   : > { %5869 = vrot.lane.b32.xlu1 %v8122_v39, %s6489_s5  ;;  %v8150_v62 = vpop.permute.xlu1 %5704  ;;  %11161 = vst [vmem:[#allocation52_spill] sm:$0xff] %v8166_v28 }
 0x19c   : > { %11158 = vst [vmem:[#allocation49_spill] sm:$0xff] %v8150_v62 }
 0x19d   : > { %5879 = vrot.lane.b32.xlu0 %v8130_v20, %s6489_s5 }
 0x19f   : > { %5859 = vrot.lane.b32.xlu2 %v8138_v7, %s6489_s5 }
 0x1a0   : > { %v8162_v10 = vpop.permute.xlu0 %5714 }
 0x1a1   : > { %11160 = vst [vmem:[#allocation51_spill] sm:$0xff] %v8162_v10 }
 0x1a2   : > { %v8184_v34 = vpop.permute.xlu2 %5739 }
 0x1a3   : > { %5884 = vrot.lane.b32.xlu1 %v8146_v14, %s6489_s5  ;;  %v8174_v48 = vpop.permute.xlu1 %5719 }
 0x1a4   : > { %11163 = vst [vmem:[#allocation54_spill] sm:$0xff] %v8174_v48 }
 0x1a5   : > { %5894 = vrot.lane.b32.xlu0 %v8154_v57, %s6489_s5 }
 0x1a7   : > { %5874 = vrot.lane.b32.xlu2 %v8160_v32, %s6489_s5 }
 0x1a8   : > { %v8182_v52 = vpop.permute.xlu0 %5729 }
 0x1a9   : > { %11164 = vst [vmem:[#allocation55_spill] sm:$0xff] %v8182_v52 }
 0x1aa   : > { %v8194_v9 = vpop.permute.xlu2 %5754 }
 0x1ab   : > { %5899 = vrot.lane.b32.xlu1 %v8170_v13, %s6489_s5  ;;  %v8188_v61 = vpop.permute.xlu1 %5734 }
 0x1ac   : > { %11165 = vst [vmem:[#allocation56_spill] sm:$0xff] %v8188_v61 }
 0x1af   : > { %5889 = vrot.lane.b32.xlu2 %v8180_v36, %s6489_s5 }
 0x1b0   : > { %v8190_v2 = vpop.permute.xlu0 %5744 }
 0x1b2   : > { %v8200_v5 = vpop.permute.xlu2 %5769 }
 0x1b3   : > { %v8192_v17 = vpop.permute.xlu1 %5749 }
 0x1b8   : > { %v8198_v54 = vpop.permute.xlu0 %5759 }
 0x1bb   : > { %v8196_v60 = vpop.permute.xlu1 %5764 }
 0x1c9   : > { %v5780_v50 = vpop.permute.xlu1 %5779 }
 0x1ca   : > { %v5782_v41 = vunpack.i.h.bf16 %v5780_v50  ;;  %v5781_v59 = vunpack.i.l.bf16 %v5780_v50 }
 0x1cb   : > { %v5785_v11 = vpop.permute.xlu2 %5784  ;;  %v5775_v24 = vpop.permute.xlu0 %5774 }
 0x1cc   : > { %v5787_v18 = vunpack.i.h.bf16 %v5785_v11  ;;  %v5786_v55 = vunpack.i.l.bf16 %v5785_v11  ;;  %v5777_v63 = vunpack.i.h.bf16 %v5775_v24  ;;  %v5776_v8 = vunpack.i.l.bf16 %v5775_v24 }
 0x1ce   : > { %v2381_v43 = vsel %vm680_vm2, %v7818_v15, %v5777_v63  ;;  %v2380_v21 = vsel %vm680_vm2, %v2029_v29, %v5776_v8 }
 0x1cf   : > { %v2382_v22 = vsel %vm683_vm3, %v2380_v21, %v5781_v59  ;;  %v2383_v27 = vsel %vm683_vm3, %v2381_v43, %v5782_v41  ;;  %v2196_v43 = vrot.slane %v7986_v58, 4 }
 0x1d0   : > { %v2384_v0 = vsel %vm686_vm4, %v2382_v22, %v5786_v55  ;;  %v2385_v42 = vsel %vm686_vm4, %v2383_v27, %v5787_v18 }
 0x1d1   : > { %v2197_v27 = vsel %vm232_vm0, %v2196_v43, %v7982_v1 }
 0x1d5   : > { %v5790_v23 = vpop.permute.xlu0 %5789 }
 0x1d6   : > { %v5792_v50 = vunpack.i.h.bf16 %v5790_v23  ;;  %v5791_v11 = vunpack.i.l.bf16 %v5790_v23 }
 0x1d8   : > { %v2386_v24 = vsel %vm689_vm5, %v2384_v0, %v5791_v11  ;;  %v2387_v61 = vsel %vm689_vm5, %v2385_v42, %v5792_v50  ;;  %v5795_v15 = vpop.permute.xlu1 %5794 }
 0x1d9   : > { %v8214_v63 = vpop.permute.xlu2 %5799  ;;  %v5797_v29 = vunpack.i.h.bf16 %v5795_v15  ;;  %v5796_v8 = vunpack.i.l.bf16 %v5795_v15 }
 0x1da   : > { %11166 = vst [vmem:[#allocation57_spill] sm:$0xff] %v8214_v63 }
 0x1db   : > { %v8217_v41 = vsel %vm692_vm6, %v2386_v24, %v5796_v8  ;;  %v8220_v59 = vsel %vm692_vm6, %v2387_v61, %v5797_v29 }
 0x1dc   : > { %11167 = vst [vmem:[#allocation58_spill] sm:$0xff] %v8217_v41 }
 0x1dd   : > { %11168 = vst [vmem:[#allocation59_spill] sm:$0xff] %v8220_v59  ;;  %v8222_v55 = vpop.permute.xlu0 %5804 }
 0x1de   : > { %11169 = vst [vmem:[#allocation60_spill] sm:$0xff] %v8222_v55 }
 0x1e1   : > { %v5815_v18 = vpop.permute.xlu2 %5814 }
 0x1e2   : > { %v5817_v21 = vunpack.i.h.bf16 %v5815_v18  ;;  %v5816_v22 = vunpack.i.l.bf16 %v5815_v18 }
 0x1e9   : > { %v5830_v42 = vpop.permute.xlu2 %5829 }
 0x1ea   : > { %v5832_v28 = vunpack.i.h.bf16 %v5830_v42 }
 0x1ec   : > { %v5810_v0 = vpop.permute.xlu1 %5809  ;;  %v5820_v24 = vpop.permute.xlu0 %5819 }
 0x1ed   : > { %v5812_v23 = vunpack.i.h.bf16 %v5810_v0  ;;  %v5811_v50 = vunpack.i.l.bf16 %v5810_v0  ;;  %v5822_v15 = vunpack.i.h.bf16 %v5820_v24  ;;  %v5821_v29 = vunpack.i.l.bf16 %v5820_v24 }
 0x1ee   : > { %v5831_v0 = vunpack.i.l.bf16 %v5830_v42 }
 0x1ef   : > { %v2395_v11 = vsel %vm680_vm2, %v7994_v33, %v5812_v23  ;;  %v2394_v61 = vsel %vm680_vm2, %v2197_v27, %v5811_v50 }
 0x1f0   : > { %v2396_v8 = vsel %vm683_vm3, %v2394_v61, %v5816_v22  ;;  %v2397_v58 = vsel %vm683_vm3, %v2395_v11, %v5817_v21 }
 0x1f1   : > { %v2398_v18 = vsel %vm686_vm4, %v2396_v8, %v5821_v29  ;;  %v2399_v1 = vsel %vm686_vm4, %v2397_v58, %v5822_v15  ;;  %v8234_v43 = vpop.permute.xlu2 %5844 }
 0x1f5   : > { %v5825_v52 = vpop.permute.xlu1 %5824 }
 0x1f6   : > { %v5827_v3 = vunpack.i.h.bf16 %v5825_v52  ;;  %v5826_v33 = vunpack.i.l.bf16 %v5825_v52 }
 0x1f7   : > { %v5835_v23 = vpop.permute.xlu0 %5834 }
 0x1f8   : > { %v2400_v27 = vsel %vm689_vm5, %v2398_v18, %v5826_v33  ;;  %v2401_v50 = vsel %vm689_vm5, %v2399_v1, %v5827_v3  ;;  %v5837_v24 = vunpack.i.h.bf16 %v5835_v23  ;;  %v5836_v22 = vunpack.i.l.bf16 %v5835_v23 }
 0x1f9   : > { %v2402_v21 = vsel %vm692_vm6, %v2400_v27, %v5831_v0  ;;  %v2403_v11 = vsel %vm692_vm6, %v2401_v50, %v5832_v28  ;;  %v5860_v52 = vpop.permute.xlu2 %5859  ;;  %v5846_v0 = vunpack.i.l.bf16 %v8234_v43 }
 0x1fa   : > { %v8241_v61 = vsel %vm695_vm7, %v2402_v21, %v5836_v22  ;;  %v8244_v42 = vsel %vm695_vm7, %v2403_v11, %v5837_v24  ;;  %v5861_v8 = vunpack.i.l.bf16 %v5860_v52  ;;  %v5862_v3 = vunpack.i.h.bf16 %v5860_v52 }
 0x1fb   : > { %11170 = vst [vmem:[#allocation61_spill] sm:$0xff] %v8241_v61  ;;  %v2482_v10 = vrot.slane %v5846_v0, 4 }
 0x1fc   : > { %11171 = vst [vmem:[#allocation62_spill] sm:$0xff] %v8244_v42  ;;  %v2492_v33 = vrot.slane %v5861_v8, 4  ;;  %v2660_v22 = vrot.slane %v5862_v3, 4 }
 0x1fd   : > { %v8246_v15 = vpop.permute.xlu1 %5839 }
 0x1fe   : > { %11172 = vst [vmem:[#allocation63_spill] sm:$0xff] %v8246_v15 }
 0x1ff   : > { %v5850_v29 = vpop.permute.xlu0 %5849 }
 0x200   : > { %v5851_v58 = vunpack.i.l.bf16 %v5850_v29  ;;  %v5852_v18 = vunpack.i.h.bf16 %v5850_v29  ;;  %v5847_v29 = vunpack.i.h.bf16 %v8234_v43 }
 0x201   : > { %v8249_v28 = vpop.permute.xlu2 %5874 }
 0x202   : > { %v2494_v23 = vrot.slane %v5851_v58, 4  ;;  %v2662_v24 = vrot.slane %v5852_v18, 4  ;;  %v2493_v21 = vsel %vm232_vm0, %v2492_v33, %v5851_v58  ;;  %v5877_v48 = vunpack.i.h.bf16 %v8249_v28 }
 0x203   : > { %v5876_v52 = vunpack.i.l.bf16 %v8249_v28  ;;  %v8257_v46 = vperm.slane %v2493_v21, %v6559_v6  ;;  %v2661_v58 = vsel %vm232_vm0, %v2660_v22, %v5852_v18  ;;  %v2650_v37 = vrot.slane %v5847_v29, 4 }
 0x204   : > { %v2495_v11 = vsel %vm232_vm0, %v5861_v8, %v2494_v23  ;;  %v2663_v8 = vsel %vm232_vm0, %v5862_v3, %v2662_v24  ;;  %v2672_v23 = vrot.slane %v5877_v48, 4  ;;  %v8266_v56 = vperm.slane %v2661_v58, %v6559_v6 }
 0x205   : > { %v5855_v1 = vpop.permute.xlu1 %5854  ;;  %v8260_v62 = vperm.slane %v2495_v11, %v6559_v6  ;;  %v2504_v44 = vrot.slane %v5876_v52, 4  ;;  %v2528_v18 = vrot.slane %v8257_v46, 4  ;;  %v8272_v3 = vperm.slane %v2663_v8, %v6559_v6 }
 0x206   : > { %v5856_v50 = vunpack.i.l.bf16 %v5855_v1  ;;  %v5857_v38 = vunpack.i.h.bf16 %v5855_v1 }
 0x207   : > { %v5865_v27 = vpop.permute.xlu0 %5864  ;;  %v2540_v22 = vrot.slane %v8260_v62, 4 }
 0x208   : > { %v5866_v51 = vunpack.i.l.bf16 %v5865_v27  ;;  %v2480_v35 = vrot.slane %v5856_v50, 4  ;;  %v5867_v28 = vunpack.i.h.bf16 %v5865_v27  ;;  %v2483_v43 = vsel %vm232_vm0, %v5856_v50, %v2482_v10 }
 0x209   : > { %v2648_v21 = vrot.slane %v5857_v38, 4  ;;  %v8275_v27 = vperm.slane %v2483_v43, %v6559_v6  ;;  %v8281_v49 = vpop.permute.xlu2 %5889  ;;  %v8286_v43 = vsel %vm232_vm0, %v5857_v38, %v2650_v37 }
 0x20a   : > { %v2506_v31 = vrot.slane %v5866_v51, 4  ;;  %v2481_v11 = vsel %vm232_vm0, %v2480_v35, %v5846_v0  ;;  %v2505_v10 = vsel %vm232_vm0, %v2504_v44, %v5866_v51  ;;  %v2673_v50 = vsel %vm232_vm0, %v2672_v23, %v5867_v28 }
 0x20b   : > { %v2487_v58 = vperm.slane %v2481_v11, %v6559_v6  ;;  %v2649_v8 = vsel %vm232_vm0, %v2648_v21, %v5847_v29  ;;  %v2674_v44 = vrot.slane %v5867_v28, 4  ;;  %v2511_v51 = vperm.slane %v2505_v10, %v6559_v6 }
 0x20c   : > { %v2507_v35 = vsel %vm232_vm0, %v5876_v52, %v2506_v31  ;;  %v8290_v23 = vperm.slane %v2673_v50, %v6559_v6  ;;  %v5892_v37 = vunpack.i.h.bf16 %v8281_v49  ;;  %v5891_v38 = vunpack.i.l.bf16 %v8281_v49 }
 0x20d   : > { %v5870_v33 = vpop.permute.xlu1 %5869  ;;  %v8300_v29 = vperm.slane %v2507_v35, %v6559_v6  ;;  %v2530_v28 = vrot.slane %v2487_v58, 4  ;;  %v8306_v21 = vperm.slane %v2649_v8, %v6559_v6  ;;  %v2554_v4 = vrot.slane %v2511_v51, 4 }
 0x20e   : > { %v5872_v0 = vunpack.i.h.bf16 %v5870_v33  ;;  %v5871_v26 = vunpack.i.l.bf16 %v5870_v33  ;;  %v8297_v33 = vsel %vm232_vm0, %v2540_v22, %v8275_v27  ;;  %v8313_v19 = vsel %vm232_vm0, %v5877_v48, %v2674_v44 }
 0x20f   : > { %v5880_v1 = vpop.permute.xlu0 %5879  ;;  %v2566_v8 = vrot.slane %v8300_v29, 4  ;;  %v2774_v15 = vrot.slane %v5892_v37, 4  ;;  %v2606_v59 = vrot.slane %v5891_v38, 4  ;;  %v2529_v41 = vsel %vm232_vm0, %v2528_v18, %v2487_v58 }
 0x210   : > { %v5881_v45 = vunpack.i.l.bf16 %v5880_v1  ;;  %v5882_v25 = vunpack.i.h.bf16 %v5880_v1  ;;  %v2686_v11 = vrot.slane %v5872_v0, 4  ;;  %v2518_v50 = vrot.slane %v5871_v26, 4 }
 0x212   : > { %v2516_v24 = vrot.slane %v5881_v45, 4  ;;  %v2687_v42 = vsel %vm232_vm0, %v5882_v25, %v2686_v11  ;;  %v2519_v61 = vsel %vm232_vm0, %v5881_v45, %v2518_v50 }
 0x213   : > { %v2527_v45 = vperm.slane %v2519_v61, %v6559_v6 }
 0x214   : > { %v2517_v31 = vsel %vm232_vm0, %v2516_v24, %v5871_v26  ;;  %v2684_v24 = vrot.slane %v5882_v25, 4  ;;  %v8328_v25 = vperm.slane %v2687_v42, %v6559_v6  ;;  %v8339_v42 = vperm.slane %v2529_v41, %v6582_v16 }
 0x215   : > { %v8293_v52 = vpop.permute.xlu1 %5884  ;;  %v2523_v22 = vperm.slane %v2517_v31, %v6559_v6  ;;  %v2531_v31 = vsel %vm232_vm0, %v8257_v46, %v2530_v28 }
 0x216   : > { %v5886_v1 = vunpack.i.l.bf16 %v8293_v52  ;;  %v2685_v48 = vsel %vm232_vm0, %v2684_v24, %v5872_v0  ;;  %v2539_v58 = vperm.slane %v2531_v31, %v6582_v16 }
 0x217   : > { %v8308_v10 = vpop.permute.xlu0 %5894  ;;  %v2555_v55 = vsel %vm232_vm0, %v2523_v22, %v2554_v4  ;;  %v2552_v46 = vrot.slane %v2523_v22, 4  ;;  %v8334_v0 = vperm.slane %v2685_v48, %v6559_v6 }
 0x218   : > { %v5896_v35 = vunpack.i.l.bf16 %v8308_v10  ;;  %v10984_v44 = vunpack.i.h.bf16 %v8308_v10  ;;  %v2594_v11 = vrot.slane %v5886_v1, 4  ;;  %v2563_v4 = vperm.slane %v2555_v55, %v6582_v16 }
 0x21a   : > { %v2592_v26 = vrot.slane %v5896_v35, 4  ;;  %v2595_v24 = vsel %vm232_vm0, %v5896_v35, %v2594_v11  ;;  %v2760_v61 = vrot.slane %v10984_v44, 4  ;;  %v2553_v11 = vsel %vm232_vm0, %v2552_v46, %v2511_v51 }
 0x21b   : > { %v2603_v35 = vperm.slane %v2595_v24, %v6559_v6  ;;  %v2582_v24 = vrot.slane %v2539_v58, 4  ;;  %v2547_v51 = vperm.slane %v8297_v33, %v6582_v16 }
 0x21c   : > { %v2593_v49 = vsel %vm232_vm0, %v2592_v26, %v5886_v1  ;;  %v5887_v26 = vunpack.i.h.bf16 %v8293_v52  ;;  %v2720_v52 = vrot.slane %v8334_v0, 4 }
 0x21d   : > { %v2599_v50 = vperm.slane %v2593_v49, %v6559_v6  ;;  %v5900_v63 = vpop.permute.xlu1 %5899 }
 0x21e   : > { %v5902_v28 = vunpack.i.h.bf16 %v5900_v63  ;;  %v5901_v18 = vunpack.i.l.bf16 %v5900_v63  ;;  %v2564_v63 = vrot.slane %v2527_v45, 4 }
 0x21f   : > { %v2618_v31 = vrot.slane %v2599_v50, 4 }
 0x220   : > { %v2772_v1 = vrot.slane %v5902_v28, 4  ;;  %v2604_v49 = vrot.slane %v5901_v18, 4  ;;  %v2607_v22 = vsel %vm232_vm0, %v5901_v18, %v2606_v59  ;;  %v2580_v59 = vrot.slane %v2563_v4, 4 }
 0x221   : > { %v2615_v48 = vperm.slane %v2607_v22, %v6559_v6  ;;  %v2567_v18 = vsel %vm232_vm0, %v2527_v45, %v2566_v8  ;;  %v2761_v22 = vsel %vm232_vm0, %v2760_v61, %v5887_v26  ;;  %v2565_v33 = vsel %vm232_vm0, %v2564_v63, %v8300_v29 }
 0x222   : > { %v2605_v55 = vsel %vm232_vm0, %v2604_v49, %v5891_v38  ;;  %v2773_v41 = vsel %vm232_vm0, %v2772_v1, %v5892_v37  ;;  %v8364_v49 = vperm.slane %v2553_v11, %v6582_v16  ;;  %v2767_v45 = vperm.slane %v2761_v22, %v6559_v6 }
 0x223   : > { %v2611_v44 = vperm.slane %v2605_v55, %v6559_v6  ;;  %v2628_v57 = vrot.slane %v2615_v48, 4  ;;  %v8352_v13 = vperm.slane %v2773_v41, %v6559_v6  ;;  %v2581_v61 = vsel %vm232_vm0, %v2580_v59, %v2539_v58 }
 0x224   : > { %v2775_v11 = vsel %vm232_vm0, %v5902_v28, %v2774_v15  ;;  %v2762_v63 = vrot.slane %v5887_v26, 4  ;;  %v2571_v28 = vperm.slane %v2565_v33, %v6582_v16  ;;  %v11173_v26 = vrot.slane %v8275_v27, 4 }
 0x225   : > { %v2616_v20 = vrot.slane %v2611_v44, 4  ;;  %v2619_v38 = vsel %vm232_vm0, %v2611_v44, %v2618_v31  ;;  %v2629_v37 = vsel %vm232_vm0, %v2628_v57, %v2603_v35  ;;  %v2784_v46 = vrot.slane %v8352_v13, 4 }
 0x226   : > { %v2627_v1 = vperm.slane %v2619_v38, %v6582_v16  ;;  %v8367_v8 = vperm.slane %v2629_v37, %v6582_v16  ;;  %v2630_v57 = vrot.slane %v2603_v35, 4  ;;  %v2583_v38 = vsel %vm232_vm0, %v2563_v4, %v2582_v24 }
 0x227   : > { %v2617_v44 = vsel %vm232_vm0, %v2616_v20, %v2599_v50  ;;  %v2578_v37 = vrot.slane %v8339_v42, 4  ;;  %v8385_v50 = vperm.slane %v2567_v18, %v6582_v16  ;;  %v2785_v58 = vsel %vm232_vm0, %v2784_v46, %v2767_v45 }
 0x228   : > { %v5908_v31 = vpack.i.bf16 %v2627_v1, %v2581_v61  ;;  %v2642_v55 = vrot.slane %v2627_v1, 4  ;;  %v8375_v41 = vperm.slane %v2617_v44, %v6582_v16  ;;  %v2644_v22 = vrot.slane %v8367_v8, 4 }
 0x229   : > { %v2579_v15 = vsel %vm232_vm0, %v8364_v49, %v2578_v37  ;;  %v2783_v4 = vperm.slane %v2775_v11, %v6559_v6  ;;  %v2586_v24 = vrot.slane %v2547_v51, 4  ;;  %v2631_v1 = vsel %vm232_vm0, %v2615_v48, %v2630_v57 }
 0x22a   : > { %5909 = vrot.lane.b32.xlu0 %v5908_v31, %s6485_s28  ;;  %v2643_v20 = vsel %vm232_vm0, 0.0, %v2642_v55  ;;  %v2640_v29 = vrot.slane %v8375_v41, 4  ;;  %v2645_v61 = vsel %vm232_vm0, 0.0, %v2644_v22  ;;  %v2543_v46 = vsel %vm232_vm0, %v8260_v62, %v11173_v26 }
 0x22b   : > { %v5913_v35 = vpack.i.bf16 %v2643_v20, %v2583_v38  ;;  %v8401_v44 = vperm.slane %v2785_v58, %v6582_v16  ;;  %v2732_v33 = vrot.slane %v8328_v25, 4  ;;  %v11174_v31 = vunpack.i.h.bf16 %v8308_v10 }
 0x22c   : > { %v2641_v59 = vsel %vm232_vm0, 0.0, %v2640_v29  ;;  %v2588_v48 = vrot.slane %v8385_v50, 4  ;;  %v11175_v57 = vrot.slane %v8266_v56, 4  ;;  %v2587_v62 = vsel %vm232_vm0, %v2571_v28, %v2586_v24 }
 0x22d   : > { %5914 = vrot.lane.b32.xlu1 %v5913_v35, %s6482_s25  ;;  %v5903_v18 = vpack.i.bf16 %v2641_v59, %v2579_v15  ;;  %v2763_v55 = vsel %vm232_vm0, %v11174_v31, %v2762_v63  ;;  %v2639_v27 = vperm.slane %v2631_v1, %v6582_v16  ;;  %v2584_v38 = vrot.slane %v2571_v28, 4 }
 0x22e   : > { %v2697_v11 = vsel %vm232_vm0, %v11175_v57, %v8306_v21  ;;  %v11176_v37 = vrot.slane %v8290_v23, 4  ;;  %v2786_v22 = vrot.slane %v2767_v45, 4  ;;  %v5923_v20 = vpack.i.bf16 %v2645_v61, %v2587_v62 }
 0x22f   : > { %5904 = vrot.lane.b32.xlu2 %v5903_v18, %s6483_s26  ;;  %v2551_v29 = vperm.slane %v2543_v46, %v6582_v16  ;;  %v2721_v58 = vsel %vm232_vm0, %v2720_v52, %v8290_v23  ;;  %v2698_v63 = vrot.slane %v8306_v21, 4  ;;  %v2796_v35 = vrot.slane %v2783_v4, 4 }
 0x230   : > { %v2723_v10 = vsel %vm232_vm0, %v8334_v0, %v11176_v37  ;;  %v8424_v15 = vperm.slane %v2697_v11, %v6582_v16  ;;  %v2808_v28 = vrot.slane %v8401_v44, 4  ;;  %v2683_v59 = vperm.slane %v8313_v19, %v6559_v6 }
 0x231   : > { %v2771_v0 = vperm.slane %v2763_v55, %v6559_v6  ;;  %v2589_v45 = vsel %vm232_vm0, %v2588_v48, %v2551_v29  ;;  %v2731_v24 = vperm.slane %v2723_v10, %v6582_v16  ;;  %v2708_v23 = vrot.slane %v8272_v3, 4 }
 0x232   : > { %5924 = vrot.lane.b32.xlu0 %v5923_v20, %s6487_s30  ;;  %v5928_v21 = vpack.i.bf16 %v2639_v27, %v2589_v45  ;;  %v2585_v52 = vsel %vm232_vm0, %v2584_v38, %v2547_v51  ;;  %v8436_v1 = vperm.slane %v2721_v58, %v6582_v16  ;;  %v2659_v18 = vperm.slane %v8286_v43, %v6559_v6 }
 0x233   : > { %v5918_v19 = vpack.i.bf16 %v8367_v8, %v2585_v52  ;;  %v2787_v61 = vsel %vm232_vm0, %v8352_v13, %v2786_v22  ;;  %v2733_v26 = vsel %vm232_vm0, %v2732_v33, %v2683_v59  ;;  %v2746_v46 = vrot.slane %v8424_v15, 4 }
 0x234   : > { %v2809_v31 = vsel %vm232_vm0, 0.0, %v2808_v28  ;;  %v2699_v51 = vsel %vm232_vm0, %v8266_v56, %v2698_v63  ;;  %v2797_v55 = vsel %vm232_vm0, %v2796_v35, %v2771_v0  ;;  %v2798_v48 = vrot.slane %v2771_v0, 4 }
 0x235   : > { %5929 = vrot.lane.b32.xlu1 %v5928_v21, %s6488_s4  ;;  %v2748_v43 = vrot.slane %v2731_v24, 4  ;;  %v2646_v57 = vrot.slane %v2639_v27, 4  ;;  %v2747_v13 = vsel %vm232_vm0, %v8436_v1, %v2746_v46  ;;  %v2795_v8 = vperm.slane %v2787_v61, %v6582_v16 }
 0x236   : > { %v2739_v33 = vperm.slane %v2733_v26, %v6582_v16  ;;  %v5938_v11 = vpack.i.bf16 %v2809_v31, %v2747_v13  ;;  %v2707_v62 = vperm.slane %v2699_v51, %v6582_v16  ;;  %v2803_v38 = vperm.slane %v2797_v55, %v6582_v16 }
 0x237   : > { %5919 = vrot.lane.b32.xlu2 %v5918_v19, %s6484_s27  ;;  %v2710_v56 = vrot.slane %v2659_v18, 4  ;;  %v2709_v37 = vsel %vm232_vm0, %v2708_v23, %v2659_v18  ;;  %v2590_v10 = vrot.slane %v2551_v29, 4  ;;  %v2647_v22 = vsel %vm232_vm0, 0.0, %v2646_v57 }
 0x238   : > { %v2749_v27 = vsel %vm232_vm0, %v2748_v43, %v2707_v62  ;;  %v2799_v20 = vsel %vm232_vm0, %v2783_v4, %v2798_v48  ;;  %v2752_v63 = vrot.slane %v2739_v33, 4  ;;  %v2715_v28 = vperm.slane %v2709_v37, %v6582_v16 }
 0x239   : > { %v5943_v58 = vpack.i.bf16 %v2795_v8, %v2749_v27  ;;  %v2591_v35 = vsel %vm232_vm0, %v8385_v50, %v2590_v10  ;;  %v2812_v0 = vrot.slane %v2803_v38, 4  ;;  %v2807_v23 = vperm.slane %v2799_v20, %v6582_v16 }
 0x23a   : > { %5939 = vrot.lane.b32.xlu0 %v5938_v11, %s6483_s26  ;;  %v5933_v45 = vpack.i.bf16 %v2647_v22, %v2591_v35  ;;  %v2734_v21 = vrot.slane %v2683_v59, 4  ;;  %v2810_v52 = vrot.slane %v2795_v8, 4  ;;  %v2711_v29 = vsel %vm232_vm0, %v8272_v3, %v2710_v56 }
 0x23b   : > { %v2753_v4 = vsel %vm232_vm0, %v2752_v63, %v2715_v28  ;;  %v2754_v19 = vrot.slane %v2715_v28, 4  ;;  %v2813_v50 = vsel %vm232_vm0, 0.0, %v2812_v0  ;;  %v2719_v26 = vperm.slane %v2711_v29, %v6582_v16  ;;  %v11181_v29 = vld [vmem:[#allocation53_spill] sm:$0xff] }
 0x23c   : > { %v5953_v18 = vpack.i.bf16 %v2803_v38, %v2753_v4  ;;  %v2735_v61 = vsel %vm232_vm0, %v8328_v25, %v2734_v21  ;;  %v2814_v46 = vrot.slane %v2807_v23, 4  ;;  %v2750_v31 = vrot.slane %v2707_v62, 4  ;;  %v11183_v4 = vld [vmem:[#allocation57_spill] sm:$0xff] }
 0x23d   : > { %5944 = vrot.lane.b32.xlu1 %v5943_v58, %s6485_s28  ;;  %v2755_v59 = vsel %vm232_vm0, %v2739_v33, %v2754_v19  ;;  %v2811_v3 = vsel %vm232_vm0, 0.0, %v2810_v52  ;;  %v2743_v55 = vperm.slane %v2735_v61, %v6582_v16  ;;  %v2758_v57 = vrot.slane %v2719_v26, 4 }
 0x23e   : > { %v5958_v51 = vpack.i.bf16 %v2813_v50, %v2755_v59  ;;  %v2751_v48 = vsel %vm232_vm0, %v2731_v24, %v2750_v31  ;;  %v2815_v25 = vsel %vm232_vm0, 0.0, %v2814_v46  ;;  %v1623_v62 = vrot.slane %v7527_v47, 4  ;;  %v11184_v50 = vld [vmem:[#allocation60_spill] sm:$0xff]  ;;  %v11185_v46 = vld [vmem:[#allocation58_spill] sm:$0xff]  ;;  %v11186_v31 = vld [vmem:[#allocation59_spill] sm:$0xff] }
 0x23f   : > { %5934 = vrot.lane.b32.xlu2 %v5933_v45, %s6486_s29  ;;  %v5948_v43 = vpack.i.bf16 %v2811_v3, %v2751_v48  ;;  %v2759_v13 = vsel %vm232_vm0, %v2743_v55, %v2758_v57  ;;  %v2756_v33 = vrot.slane %v2743_v55, 4  ;;  %v5741_v38 = vunpack.i.l.bf16 %v8184_v34 }
 0x240   : > { %v5968_v8 = vpack.i.bf16 %v2815_v25, %v2759_v13  ;;  %v5742_v56 = vunpack.i.h.bf16 %v8184_v34  ;;  %v5751_v37 = vunpack.i.l.bf16 %v8192_v17  ;;  %v11178_v34 = vld [vmem:[#allocation32_spill] sm:$0xff]  ;;  %v5756_v20 = vunpack.i.l.bf16 %v8194_v9 }
 0x241   : > { %v2757_v11 = vsel %vm232_vm0, %v2756_v33, %v2719_v26  ;;  %v5757_v58 = vunpack.i.h.bf16 %v8194_v9  ;;  %v5767_v63 = vunpack.i.h.bf16 %v8196_v60  ;;  %v5766_v35 = vunpack.i.l.bf16 %v8196_v60  ;;  %v11179_v9 = vld [vmem:[#allocation46_spill] sm:$0xff] }
 0x242   : > { %5954 = vrot.lane.b32.xlu0 %v5953_v18, %s6484_s27  ;;  %v5963_v24 = vpack.i.bf16 %v2807_v23, %v2757_v11  ;;  %v1822_v10 = vsel %vm680_vm2, %v11178_v34, %v5742_v56  ;;  %v5771_v23 = vunpack.i.l.bf16 %v8200_v5  ;;  %v5802_v18 = vunpack.i.h.bf16 %v11183_v4  ;;  %v11189_v11 = vld [vmem:[#allocation63_spill] sm:$0xff] }
 0x243   : > { %v5801_v19 = vunpack.i.l.bf16 %v11183_v4  ;;  %v5807_v61 = vunpack.i.h.bf16 %v11184_v50  ;;  %v5806_v26 = vunpack.i.l.bf16 %v11184_v50  ;;  %v2576_v25 = vrot.slane %v8364_v49, 4 }
 0x244   : > { %v2391_v3 = vsel %vm695_vm7, %v11186_v31, %v5802_v18 }
 0x245   : > { %5959 = vrot.lane.b32.xlu1 %v5958_v51, %s6487_s30  ;;  %v2390_v59 = vsel %vm695_vm7, %v11185_v46, %v5801_v19  ;;  %v2393_v55 = vsel %vm698_vm8, %v2391_v3, %v5807_v61  ;;  %v2577_v33 = vsel %vm232_vm0, %v2576_v25, %v8339_v42 }
 0x246   : > { %v8554_v51 = vsel %vm698_vm8, %v2390_v59, %v5806_v26 }
 0x247   : > { %5949 = vrot.lane.b32.xlu2 %v5948_v43, %s6482_s25  ;;  %11187 = vst [vmem:[#allocation32_spill] sm:$0xff] %v8554_v51  ;;  %v10988_v48 = vrot.slane %v8554_v51, 4  ;;  %v5182_v43 = vrot.slane %v2393_v55, 4 }
 0x249   : > { %v8561_v57 = vsel %vm5165_vm9, %v10988_v48, %v5182_v43 }
 0x24a   : > { %5969 = vrot.lane.b32.xlu0 %v5968_v8, %s6486_s29  ;;  %11188 = vst [vmem:[#allocation46_spill] sm:$0xff] %v8561_v57 }
 0x24d   : > { %5974 = vrot.lane.b32.xlu1 %v8114_v30, %s6490_s6  ;;  %v5746_v30 = vunpack.i.l.bf16 %v8190_v2 }
 0x24f   : > { %5964 = vrot.lane.b32.xlu2 %v5963_v24, %s6488_s4  ;;  %v5842_v24 = vunpack.i.h.bf16 %v11189_v11 }
 0x252   : > { %5984 = vrot.lane.b32.xlu0 %v8099_v40, %s6490_s6  ;;  %v11177_v40 = vld [vmem:[#allocation31_spill] sm:$0xff] }
 0x255   : > { %5989 = vrot.lane.b32.xlu1 %v8138_v7, %s6490_s6  ;;  %v1624_v7 = vsel %vm232_vm0, %v1623_v62, %v11177_v40  ;;  %v5841_v62 = vunpack.i.l.bf16 %v11189_v11 }
 0x256   : > { %v1821_v47 = vsel %vm680_vm2, %v1624_v7, %v5741_v38 }
 0x257   : > { %5979 = vrot.lane.b32.xlu2 %v8090_v53, %s6490_s6  ;;  %v5747_v53 = vunpack.i.h.bf16 %v8190_v2  ;;  %v1823_v27 = vsel %vm683_vm3, %v1821_v47, %v5746_v30  ;;  %v11190_v30 = vld [vmem:[#allocation61_spill] sm:$0xff] }
 0x258   : > { %v1825_v22 = vsel %vm686_vm4, %v1823_v27, %v5751_v37  ;;  %v2406_v56 = vsel %vm698_vm8, %v11190_v30, %v5841_v62  ;;  %v11191_v37 = vld [vmem:[#allocation62_spill] sm:$0xff] }
 0x259   : > { %v1824_v2 = vsel %vm683_vm3, %v1822_v10, %v5747_v53  ;;  %v1827_v28 = vsel %vm689_vm5, %v1825_v22, %v5756_v20  ;;  %v2407_v40 = vsel %vm698_vm8, %v11191_v37, %v5842_v24  ;;  %v5181_v49 = vrot.slane %v2406_v56, 4 }
 0x25a   : > { %5999 = vrot.lane.b32.xlu0 %v8122_v39, %s6490_s6  ;;  %v5752_v39 = vunpack.i.h.bf16 %v8192_v17  ;;  %v5184_v53 = vrot.slane %v2407_v40, 4 }
 0x25c   : > { %v1826_v17 = vsel %vm686_vm4, %v1824_v2, %v5752_v39  ;;  %v8576_v47 = vsel %vm5165_vm9, %v5181_v49, %v5184_v53 }
 0x25d   : > { %6004 = vrot.lane.b32.xlu1 %v8160_v32, %s6490_s6  ;;  %v5761_v32 = vunpack.i.l.bf16 %v8198_v54  ;;  %v1828_v45 = vsel %vm689_vm5, %v1826_v17, %v5757_v58  ;;  %11192 = vst [vmem:[#allocation53_spill] sm:$0xff] %v8576_v47 }
 0x25f   : > { %5994 = vrot.lane.b32.xlu2 %v8106_v12, %s6490_s6  ;;  %v5762_v12 = vunpack.i.h.bf16 %v8198_v54  ;;  %v1829_v0 = vsel %vm692_vm6, %v1827_v28, %v5761_v32 }
 0x260   : > { %v1831_v21 = vsel %vm695_vm7, %v1829_v0, %v5766_v35 }
 0x261   : > { %v1830_v54 = vsel %vm692_vm6, %v1828_v45, %v5762_v12  ;;  %v8539_v52 = vsel %vm698_vm8, %v1831_v21, %v5771_v23 }
 0x262   : > { %6014 = vrot.lane.b32.xlu0 %v8146_v14, %s6490_s6  ;;  %v5772_v14 = vunpack.i.h.bf16 %v8200_v5  ;;  %v1832_v60 = vsel %vm695_vm7, %v1830_v54, %v5767_v63  ;;  %11180 = vst [vmem:[#allocation31_spill] sm:$0xff] %v8539_v52  ;;  %v11182_v5 = vld [vmem:[#allocation50_spill] sm:$0xff]  ;;  %v9030_v52 = vld [vmem:[%s6551_s24 + $0x308] sm:$0xff] }
 0x265   : > { %6019 = vrot.lane.b32.xlu1 %v8180_v36, %s6490_s6  ;;  %v1834_v36 = vsel %vm698_vm8, %v1832_v60, %v5772_v14  ;;  %v2744_v60 = vrot.slane %v8436_v1, 4 }
 0x266   : > { %v8579_v42 = vsel %vm5165_vm9, %v1834_v36, %v5181_v49 }
 0x267   : > { %6009 = vrot.lane.b32.xlu2 %v11179_v9, %s6490_s6  ;;  %11193 = vst [vmem:[#allocation50_spill] sm:$0xff] %v8579_v42 }
 0x26a   : > { %6029 = vrot.lane.b32.xlu0 %v11181_v29, %s6490_s6 }
 0x26f   : > { %6024 = vrot.lane.b32.xlu2 %v11182_v5, %s6490_s6  ;;  %v2745_v5 = vsel %vm232_vm0, %v2744_v60, %v8424_v15 }
 0x289   : > { %v5905_v13 = vpop.permute.xlu2 %5904 }
 0x28a   : > { %v5906_v8 = vunpack.i.l.bf16 %v5905_v13  ;;  %v5907_v27 = vunpack.i.h.bf16 %v5905_v13 }
 0x28c   : > { %v2928_v38 = vsel %vm680_vm2, %v2577_v33, %v5906_v8  ;;  %v2929_v32 = vsel %vm680_vm2, %v8375_v41, %v5907_v27 }
 0x291   : > { %v8573_v7 = vpop.permute.xlu2 %5919 }
 0x292   : > { %v5922_v63 = vunpack.i.h.bf16 %v8573_v7 }
 0x299   : > { %v8581_v39 = vpop.permute.xlu2 %5934 }
 0x29c   : > { %v5910_v34 = vpop.permute.xlu0 %5909 }
 0x29d   : > { %v5912_v10 = vunpack.i.h.bf16 %v5910_v34  ;;  %v5911_v22 = vunpack.i.l.bf16 %v5910_v34 }
 0x29f   : > { %v2930_v20 = vsel %vm683_vm3, %v2928_v38, %v5911_v22  ;;  %v2931_v2 = vsel %vm683_vm3, %v2929_v32, %v5912_v10  ;;  %v5915_v17 = vpop.permute.xlu1 %5914 }
 0x2a0   : > { %v5917_v12 = vunpack.i.h.bf16 %v5915_v17  ;;  %v5916_v58 = vunpack.i.l.bf16 %v5915_v17 }
 0x2a1   : > { %v5950_v35 = vpop.permute.xlu2 %5949 }
 0x2a2   : > { %v8589_v28 = vsel %vm686_vm4, %v2930_v20, %v5916_v58  ;;  %v2933_v0 = vsel %vm686_vm4, %v2931_v2, %v5917_v12  ;;  %v5952_v61 = vunpack.i.h.bf16 %v5950_v35  ;;  %v5951_v26 = vunpack.i.l.bf16 %v5950_v35 }
 0x2a3   : > { %v2935_v45 = vsel %vm689_vm5, %v2933_v0, %v5922_v63 }
 0x2a4   : > { %v8593_v14 = vpop.permute.xlu0 %5924 }
 0x2a5   : > { %v5927_v41 = vunpack.i.h.bf16 %v8593_v14 }
 0x2a7   : > { %v8597_v23 = vsel %vm692_vm6, %v2935_v45, %v5927_v41  ;;  %v8599_v54 = vpop.permute.xlu1 %5929 }
 0x2a9   : > { %v8601_v9 = vpop.permute.xlu2 %5964 }
 0x2ac   : > { %v5940_v21 = vpop.permute.xlu0 %5939 }
 0x2ad   : > { %v5942_v36 = vunpack.i.h.bf16 %v5940_v21  ;;  %v5941_v29 = vunpack.i.l.bf16 %v5940_v21 }
 0x2af   : > { %v2942_v4 = vsel %vm680_vm2, %v2745_v5, %v5941_v29  ;;  %v5945_v18 = vpop.permute.xlu1 %5944  ;;  %v2943_v46 = vsel %vm680_vm2, %v8401_v44, %v5942_v36 }
 0x2b0   : > { %v5947_v19 = vunpack.i.h.bf16 %v5945_v18  ;;  %v5946_v50 = vunpack.i.l.bf16 %v5945_v18 }
 0x2b1   : > { %v5980_v59 = vpop.permute.xlu2 %5979 }
 0x2b2   : > { %v2944_v31 = vsel %vm683_vm3, %v2942_v4, %v5946_v50  ;;  %v2945_v1 = vsel %vm683_vm3, %v2943_v46, %v5947_v19  ;;  %v5982_v37 = vunpack.i.h.bf16 %v5980_v59  ;;  %v5981_v40 = vunpack.i.l.bf16 %v5980_v59 }
 0x2b3   : > { %v2946_v3 = vsel %vm686_vm4, %v2944_v31, %v5951_v26  ;;  %v2947_v55 = vsel %vm686_vm4, %v2945_v1, %v5952_v61 }
 0x2b4   : > { %v5955_v15 = vpop.permute.xlu0 %5954  ;;  %v3210_v2 = vrot.slane %v5982_v37, 4  ;;  %v3042_v17 = vrot.slane %v5981_v40, 4 }
 0x2b5   : > { %v5957_v43 = vunpack.i.h.bf16 %v5955_v15  ;;  %v5956_v25 = vunpack.i.l.bf16 %v5955_v15 }
 0x2b7   : > { %v8614_v13 = vsel %vm689_vm5, %v2946_v3, %v5956_v25  ;;  %v2949_v8 = vsel %vm689_vm5, %v2947_v55, %v5957_v43  ;;  %v8617_v33 = vpop.permute.xlu1 %5959 }
 0x2b8   : > { %v5962_v44 = vunpack.i.h.bf16 %v8617_v33 }
 0x2b9   : > { %v8620_v11 = vpop.permute.xlu2 %5994 }
 0x2ba   : > { %v8623_v24 = vsel %vm692_vm6, %v2949_v8, %v5962_v44  ;;  %v5997_v10 = vunpack.i.h.bf16 %v8620_v11  ;;  %v5996_v22 = vunpack.i.l.bf16 %v8620_v11 }
 0x2bc   : > { %v8625_v62 = vpop.permute.xlu0 %5969  ;;  %v3222_v5 = vrot.slane %v5997_v10, 4  ;;  %v3054_v4 = vrot.slane %v5996_v22, 4 }
 0x2bf   : > { %v5975_v38 = vpop.permute.xlu1 %5974 }
 0x2c0   : > { %v5977_v30 = vunpack.i.h.bf16 %v5975_v38  ;;  %v5976_v56 = vunpack.i.l.bf16 %v5975_v38 }
 0x2c1   : > { %v6010_v27 = vpop.permute.xlu2 %6009 }
 0x2c2   : > { %v3198_v49 = vrot.slane %v5977_v30, 4  ;;  %v3030_v53 = vrot.slane %v5976_v56, 4  ;;  %v6012_v12 = vunpack.i.h.bf16 %v6010_v27  ;;  %v6011_v58 = vunpack.i.l.bf16 %v6010_v27 }
 0x2c4   : > { %v5985_v34 = vpop.permute.xlu0 %5984  ;;  %v3232_v26 = vrot.slane %v6012_v12, 4  ;;  %v3064_v46 = vrot.slane %v6011_v58, 4 }
 0x2c5   : > { %v5987_v32 = vunpack.i.h.bf16 %v5985_v34  ;;  %v5986_v20 = vunpack.i.l.bf16 %v5985_v34 }
 0x2c7   : > { %v3196_v63 = vrot.slane %v5987_v32, 4  ;;  %v3199_v35 = vsel %vm232_vm0, %v5987_v32, %v3198_v49  ;;  %v3028_v0 = vrot.slane %v5986_v20, 4  ;;  %v3031_v45 = vsel %vm232_vm0, %v5986_v20, %v3030_v53  ;;  %v5990_v41 = vpop.permute.xlu1 %5989 }
 0x2c8   : > { %v8632_v60 = vperm.slane %v3199_v35, %v6559_v6  ;;  %v8635_v21 = vperm.slane %v3031_v45, %v6559_v6  ;;  %v5992_v36 = vunpack.i.h.bf16 %v5990_v41  ;;  %v5991_v29 = vunpack.i.l.bf16 %v5990_v41 }
 0x2c9   : > { %v3197_v18 = vsel %vm232_vm0, %v3196_v63, %v5977_v30  ;;  %v3029_v19 = vsel %vm232_vm0, %v3028_v0, %v5976_v56  ;;  %v6025_v45 = vpop.permute.xlu2 %6024 }
 0x2ca   : > { %v8644_v50 = vperm.slane %v3197_v18, %v6559_v6  ;;  %v8647_v61 = vperm.slane %v3029_v19, %v6559_v6  ;;  %v3208_v59 = vrot.slane %v5992_v36, 4  ;;  %v3040_v31 = vrot.slane %v5991_v29, 4 }
 0x2cb   : > { %v3043_v1 = vsel %vm232_vm0, %v5991_v29, %v3042_v17  ;;  %v3211_v3 = vsel %vm232_vm0, %v5992_v36, %v3210_v2  ;;  %v3258_v55 = vrot.slane %v8632_v60, 4  ;;  %v3090_v15 = vrot.slane %v8635_v21, 4 }
 0x2cc   : > { %v8654_v43 = vperm.slane %v3043_v1, %v6559_v6  ;;  %v8657_v25 = vperm.slane %v3211_v3, %v6559_v6  ;;  %v6000_v8 = vpop.permute.xlu0 %5999  ;;  %v3041_v44 = vsel %vm232_vm0, %v3040_v31, %v5981_v40  ;;  %v3209_v38 = vsel %vm232_vm0, %v3208_v59, %v5982_v37 }
 0x2cd   : > { %v6002_v30 = vunpack.i.h.bf16 %v6000_v8  ;;  %v6001_v56 = vunpack.i.l.bf16 %v6000_v8  ;;  %v3078_v53 = vrot.slane %v8647_v61, 4  ;;  %v8664_v27 = vperm.slane %v3041_v44, %v6559_v6 }
 0x2ce   : > { %v8667_v34 = vperm.slane %v3209_v38, %v6559_v6  ;;  %v3088_v32 = vrot.slane %v8654_v43, 4  ;;  %v8674_v63 = vsel %vm232_vm0, %v8657_v25, %v3258_v55  ;;  %v6027_v55 = vunpack.i.h.bf16 %v6025_v45 }
 0x2cf   : > { %v3234_v20 = vrot.slane %v6002_v30, 4  ;;  %v3065_v2 = vsel %vm232_vm0, %v3064_v46, %v6001_v56  ;;  %v3066_v40 = vrot.slane %v6001_v56, 4  ;;  %v6005_v17 = vpop.permute.xlu1 %6004  ;;  %v3233_v0 = vsel %vm232_vm0, %v3232_v26, %v6002_v30 }
 0x2d0   : > { %v8677_v35 = vperm.slane %v3065_v2, %v6559_v6  ;;  %v3076_v41 = vrot.slane %v8664_v27, 4  ;;  %v6007_v18 = vunpack.i.h.bf16 %v6005_v17  ;;  %v8685_v46 = vperm.slane %v3233_v0, %v6559_v6 }
 0x2d1   : > { %v3067_v36 = vsel %vm232_vm0, %v6011_v58, %v3066_v40  ;;  %v3235_v29 = vsel %vm232_vm0, %v6012_v12, %v3234_v20  ;;  %v6006_v31 = vunpack.i.l.bf16 %v6005_v17  ;;  %v6026_v17 = vunpack.i.l.bf16 %v6025_v45 }
 0x2d2   : > { %v8688_v59 = vperm.slane %v3235_v29, %v6559_v6  ;;  %v8691_v1 = vperm.slane %v3067_v36, %v6559_v6  ;;  %v3220_v26 = vrot.slane %v6007_v18, 4  ;;  %v3223_v3 = vsel %vm232_vm0, %v6007_v18, %v3222_v5 }
 0x2d3   : > { %v3100_v58 = vrot.slane %v8677_v35, 4  ;;  %v3052_v8 = vrot.slane %v6006_v31, 4  ;;  %v3055_v44 = vsel %vm232_vm0, %v6006_v31, %v3054_v4  ;;  %v8704_v20 = vperm.slane %v3223_v3, %v6559_v6 }
 0x2d4   : > { %v3280_v12 = vrot.slane %v8688_v59, 4  ;;  %v6015_v38 = vpop.permute.xlu0 %6014  ;;  %v8698_v30 = vperm.slane %v3055_v44, %v6559_v6  ;;  %v3221_v56 = vsel %vm232_vm0, %v3220_v26, %v5997_v10  ;;  %v3308_v5 = vrot.slane %v6027_v55, 4 }
 0x2d5   : > { %v3053_v40 = vsel %vm232_vm0, %v3052_v8, %v5996_v22  ;;  %v6017_v4 = vunpack.i.h.bf16 %v6015_v38  ;;  %v3112_v0 = vrot.slane %v8691_v1, 4  ;;  %v8714_v10 = vperm.slane %v3221_v56, %v6559_v6 }
 0x2d6   : > { %v3059_v36 = vperm.slane %v3053_v40, %v6559_v6  ;;  %v3114_v29 = vrot.slane %v8698_v30, 4  ;;  %v8718_v31 = vsel %vm232_vm0, %v3280_v12, %v8704_v20  ;;  %v3140_v26 = vrot.slane %v6026_v17, 4 }
 0x2d7   : > { %v6020_v18 = vpop.permute.xlu1 %6019  ;;  %v3310_v11 = vrot.slane %v6017_v4, 4  ;;  %v6016_v3 = vunpack.i.l.bf16 %v6015_v38  ;;  %v3309_v45 = vsel %vm232_vm0, %v3308_v5, %v6017_v4  ;;  %v3077_v49 = vsel %vm232_vm0, %v3076_v41, %v8647_v61 }
 0x2d8   : > { %v3102_v22 = vrot.slane %v3059_v36, 4  ;;  %v6022_v8 = vunpack.i.h.bf16 %v6020_v18  ;;  %v6021_v44 = vunpack.i.l.bf16 %v6020_v18  ;;  %v8724_v56 = vperm.slane %v3309_v45, %v6559_v6 }
 0x2d9   : > { %v3141_v40 = vsel %vm232_vm0, %v3140_v26, %v6016_v3  ;;  %v3142_v48 = vrot.slane %v6016_v3, 4  ;;  %v3311_v37 = vsel %vm232_vm0, %v6027_v55, %v3310_v11  ;;  %v3079_v55 = vsel %vm232_vm0, %v8664_v27, %v3078_v53 }
 0x2da   : > { %v3147_v12 = vperm.slane %v3141_v40, %v6559_v6  ;;  %v8729_v2 = vperm.slane %v3311_v37, %v6559_v6  ;;  %v3322_v38 = vrot.slane %v6022_v8, 4  ;;  %v3154_v4 = vrot.slane %v6021_v44, 4 }
 0x2db   : > { %v3143_v5 = vsel %vm232_vm0, %v6026_v17, %v3142_v48  ;;  %v3103_v26 = vsel %vm232_vm0, %v8677_v35, %v3102_v22  ;;  %v3087_v48 = vperm.slane %v3079_v55, %v6582_v16  ;;  %v8754_v11 = vperm.slane %v3077_v49, %v6582_v16 }
 0x2dc   : > { %v6030_v18 = vpop.permute.xlu0 %6029  ;;  %v3151_v3 = vperm.slane %v3143_v5, %v6559_v6  ;;  %v3111_v17 = vperm.slane %v3103_v26, %v6582_v16  ;;  %v3166_v19 = vrot.slane %v3147_v12, 4  ;;  %v3101_v61 = vsel %vm232_vm0, %v3100_v58, %v3059_v36 }
 0x2dd   : > { %v6032_v45 = vunpack.i.h.bf16 %v6030_v18  ;;  %v6031_v40 = vunpack.i.l.bf16 %v6030_v18  ;;  %11194 = vst [vmem:[#allocation57_spill] sm:$0xff] %v8754_v11  ;;  %v3089_v58 = vsel %vm232_vm0, %v3088_v32, %v8635_v21  ;;  %v3113_v36 = vsel %vm232_vm0, %v3112_v0, %v8698_v30 }
 0x2de   : > { %v3128_v18 = vrot.slane %v3111_v17, 4  ;;  %v3178_v41 = vrot.slane %v3151_v3, 4  ;;  %v11197_v30 = vrot.slane %v8667_v34, 4 }
 0x2df   : > { %v3320_v27 = vrot.slane %v6032_v45, 4  ;;  %v3323_v35 = vsel %vm232_vm0, %v6032_v45, %v3322_v38  ;;  %v3152_v5 = vrot.slane %v6031_v40, 4  ;;  %v3155_v37 = vsel %vm232_vm0, %v6031_v40, %v3154_v4 }
 0x2e0   : > { %v8748_v22 = vperm.slane %v3323_v35, %v6559_v6  ;;  %v3163_v26 = vperm.slane %v3155_v37, %v6559_v6  ;;  %v3130_v45 = vrot.slane %v3087_v48, 4  ;;  %v3129_v49 = vsel %vm232_vm0, %v3128_v18, %v3087_v48 }
 0x2e1   : > { %v3321_v55 = vsel %vm232_vm0, %v3320_v27, %v6022_v8  ;;  %v3153_v38 = vsel %vm232_vm0, %v3152_v5, %v6021_v44  ;;  %v8764_v8 = vperm.slane %v3101_v61, %v6582_v16  ;;  %v3126_v5 = vrot.slane %v8754_v11, 4 }
 0x2e2   : > { %v8758_v53 = vperm.slane %v3321_v55, %v6559_v6  ;;  %v3344_v35 = vrot.slane %v8748_v22, 4  ;;  %v3159_v4 = vperm.slane %v3153_v38, %v6559_v6  ;;  %v3176_v40 = vrot.slane %v3163_v26, 4 }
 0x2e3   : > { %11195 = vst [vmem:[#allocation60_spill] sm:$0xff] %v8764_v8  ;;  %v3131_v37 = vsel %vm232_vm0, %v3111_v17, %v3130_v45  ;;  %v3095_v55 = vperm.slane %v3089_v58, %v6582_v16  ;;  %v3119_v17 = vperm.slane %v3113_v36, %v6582_v16  ;;  %v3127_v32 = vsel %vm232_vm0, %v8764_v8, %v3126_v5 }
 0x2e4   : > { %v3164_v44 = vrot.slane %v3159_v4, 4  ;;  %v3167_v27 = vsel %vm232_vm0, %v3159_v4, %v3166_v19  ;;  %v3332_v61 = vrot.slane %v8758_v53, 4  ;;  %v3177_v18 = vsel %vm232_vm0, %v3176_v40, %v3151_v3 }
 0x2e5   : > { %v3175_v48 = vperm.slane %v3167_v27, %v6582_v16  ;;  %v8785_v38 = vperm.slane %v3177_v18, %v6582_v16  ;;  %v3091_v19 = vsel %vm232_vm0, %v8654_v43, %v3090_v15  ;;  %v3134_v36 = vrot.slane %v3095_v55, 4 }
 0x2e6   : > { %v3165_v0 = vsel %vm232_vm0, %v3164_v44, %v3147_v12  ;;  %v3099_v40 = vperm.slane %v3091_v19, %v6582_v16  ;;  %v3115_v12 = vsel %vm232_vm0, %v8691_v1, %v3114_v29  ;;  %v3179_v21 = vsel %vm232_vm0, %v3163_v26, %v3178_v41 }
 0x2e7   : > { %v6038_v45 = vpack.i.bf16 %v3175_v48, %v3129_v49  ;;  %v3190_v4 = vrot.slane %v3175_v48, 4  ;;  %v8792_v58 = vperm.slane %v3165_v0, %v6582_v16  ;;  %v3192_v3 = vrot.slane %v8785_v38, 4 }
 0x2e8   : > { %v3135_v49 = vsel %vm232_vm0, %v3119_v17, %v3134_v36  ;;  %v3123_v44 = vperm.slane %v3115_v12, %v6582_v16  ;;  %v3132_v48 = vrot.slane %v3119_v17, 4  ;;  %v3245_v1 = vsel %vm232_vm0, %v11197_v30, %v8644_v50 }
 0x2e9   : > { %11196 = vst [vmem:[#allocation58_spill] sm:$0xff] %v8792_v58  ;;  %6039 = vrot.lane.b32.xlu2 %v6038_v45, %s6485_s28  ;;  %v3191_v15 = vsel %vm232_vm0, 0.0, %v3190_v4  ;;  %v3188_v43 = vrot.slane %v8792_v58, 4  ;;  %v3193_v5 = vsel %vm232_vm0, 0.0, %v3192_v3  ;;  %v3187_v41 = vperm.slane %v3179_v21, %v6582_v16 }
 0x2ea   : > { %v6043_v27 = vpack.i.bf16 %v3191_v15, %v3131_v37  ;;  %v3136_v26 = vrot.slane %v3123_v44, 4  ;;  %v8814_v18 = vperm.slane %v3245_v1, %v6582_v16  ;;  %v6053_v37 = vpack.i.bf16 %v3193_v5, %v3135_v49 }
 0x2eb   : > { %v3189_v29 = vsel %vm232_vm0, 0.0, %v3188_v43  ;;  %v11198_v17 = vrot.slane %v8685_v46, 4  ;;  %v3333_v45 = vsel %vm232_vm0, %v3332_v61, %v8724_v56  ;;  %v3133_v36 = vsel %vm232_vm0, %v3132_v48, %v3095_v55 }
 0x2ec   : > { %6044 = vrot.lane.b32.xlu0 %v6043_v27, %s6482_s25  ;;  %v6033_v0 = vpack.i.bf16 %v3189_v29, %v3127_v32  ;;  %v3137_v4 = vsel %vm232_vm0, %v3136_v26, %v3099_v40  ;;  %v3294_v12 = vrot.slane %v8814_v18, 4  ;;  %v6048_v32 = vpack.i.bf16 %v8785_v38, %v3133_v36 }
 0x2ed   : > { %v3269_v19 = vsel %vm232_vm0, %v11198_v17, %v8714_v10  ;;  %v8832_v21 = vperm.slane %v3333_v45, %v6582_v16  ;;  %v11200_v15 = vrot.slane %v8644_v50, 4  ;;  %v11201_v43 = vrot.slane %v8714_v10, 4 }
 0x2ee   : > { %v8826_v3 = vperm.slane %v3269_v19, %v6582_v16  ;;  %6034 = vrot.lane.b32.xlu1 %v6033_v0, %s6483_s26  ;;  %v6058_v49 = vpack.i.bf16 %v3187_v41, %v3137_v4  ;;  %v11202_v50 = vrot.slane %v8724_v56, 4  ;;  %v3138_v30 = vrot.slane %v3099_v40, 4 }
 0x2ef   : > { %11199 = vst [vmem:[#allocation59_spill] sm:$0xff] %v8832_v21  ;;  %v3247_v61 = vsel %vm232_vm0, %v8667_v34, %v11200_v15  ;;  %v3271_v55 = vsel %vm232_vm0, %v8685_v46, %v11201_v43  ;;  %v3356_v48 = vrot.slane %v8832_v21, 4  ;;  %v3194_v10 = vrot.slane %v3187_v41, 4 }
 0x2f0   : > { %v3295_v27 = vsel %vm232_vm0, %v8826_v3, %v3294_v12  ;;  %v3255_v5 = vperm.slane %v3247_v61, %v6582_v16  ;;  %v3279_v38 = vperm.slane %v3271_v55, %v6582_v16  ;;  %v3335_v34 = vsel %vm232_vm0, %v8758_v53, %v11202_v50 }
 0x2f1   : > { %6054 = vrot.lane.b32.xlu2 %v6053_v37, %s6487_s30  ;;  %v3343_v1 = vperm.slane %v3335_v34, %v6582_v16  ;;  %v11203_v29 = vrot.slane %v8657_v25, 4  ;;  %v3287_v0 = vperm.slane %v8718_v31, %v6582_v16  ;;  %v3357_v56 = vsel %vm232_vm0, 0.0, %v3356_v48  ;;  %v6404_v48 = vld [vmem:[%s6551_s24] sm:$0xff]  ;;  %v8915_v34 = vld [vmem:[%s6551_s24 + $0x8] sm:$0xff] }
 0x2f2   : > { %v3296_v46 = vrot.slane %v3279_v38, 4  ;;  %v3139_v17 = vsel %vm232_vm0, %v3123_v44, %v3138_v30  ;;  %v3195_v53 = vsel %vm232_vm0, 0.0, %v3194_v10  ;;  %v6068_v41 = vpack.i.bf16 %v3357_v56, %v3295_v27  ;;  %v6406_v10 = vld [vmem:[%s6551_s24 + $0x18] sm:$0xff] }
 0x2f3   : > { %v3257_v26 = vsel %vm232_vm0, %v11203_v29, %v8632_v60  ;;  %v6063_v19 = vpack.i.bf16 %v3195_v53, %v3139_v17  ;;  %v3300_v45 = vrot.slane %v3287_v0, 4  ;;  %v3345_v60 = vsel %vm232_vm0, %v3344_v35, %v8729_v2  ;;  %v6408_v53 = vld [vmem:[%s6551_s24 + $0x30] sm:$0xff] }
 0x2f4   : > { %v3263_v40 = vperm.slane %v3257_v26, %v6582_v16  ;;  %v3297_v37 = vsel %vm232_vm0, %v3296_v46, %v3255_v5  ;;  %6059 = vrot.lane.b32.xlu0 %v6058_v49, %s6488_s4  ;;  %v3298_v4 = vrot.slane %v3255_v5, 4  ;;  %v8873_v36 = vperm.slane %v3345_v60, %v6582_v16 }
 0x2f5   : > { %v6073_v25 = vpack.i.bf16 %v3343_v1, %v3297_v37  ;;  %v3358_v12 = vrot.slane %v3343_v1, 4  ;;  %v8877_v15 = vperm.slane %v8674_v63, %v6582_v16  ;;  %v11204_v43 = vrot.slane %v8704_v20, 4 }
 0x2f6   : > { %v3302_v31 = vrot.slane %v3263_v40, 4  ;;  %v8870_v44 = vsel %vm232_vm0, %v3300_v45, %v3263_v40  ;;  %6049 = vrot.lane.b32.xlu1 %v6048_v32, %s6484_s27  ;;  %v8884_v35 = vsel %vm232_vm0, %v3279_v38, %v3298_v4  ;;  %v11205_v49 = vrot.slane %v8729_v2, 4  ;;  %v6410_v45 = vld [vmem:[%s6551_s24 + $0xf0] sm:$0xff] }
 0x2f7   : > { %v3283_v55 = vsel %vm232_vm0, %v8688_v59, %v11204_v43  ;;  %v6083_v32 = vpack.i.bf16 %v8873_v36, %v8870_v44  ;;  %v3360_v27 = vrot.slane %v8873_v36, 4  ;;  %v8898_v5 = vsel %vm232_vm0, 0.0, %v3358_v12  ;;  %v8951_v44 = vld [vmem:[%s6551_s24 + $0xf8] sm:$0xff]  ;;  %v6412_v12 = vld [vmem:[%s6551_s24 + $0x108] sm:$0xff] }
 0x2f8   : > { %v8881_v61 = vsel %vm232_vm0, %v3287_v0, %v3302_v31  ;;  %v3347_v63 = vsel %vm232_vm0, %v8748_v22, %v11205_v49  ;;  %v8901_v38 = vperm.slane %v3283_v55, %v6582_v16  ;;  %v3306_v20 = vrot.slane %v8877_v15, 4  ;;  %v8927_v0 = vld [vmem:[%s6551_s24 + $0x20] sm:$0xff]  ;;  %v8963_v49 = vld [vmem:[%s6551_s24 + $0x110] sm:$0xff] }
 0x2f9   : > { %v8907_v2 = vperm.slane %v3347_v63, %v6582_v16  ;;  %6069 = vrot.lane.b32.xlu2 %v6068_v41, %s6483_s26  ;;  %v8911_v22 = vsel %vm232_vm0, 0.0, %v3360_v27  ;;  %v3505_v50 = vrot.slane %v6404_v48, 2  ;;  %v10993_v30 = vrot.slane %v8915_v34, 2  ;;  %v8937_v41 = vld [vmem:[%s6551_s24 + $0x38] sm:$0xff]  ;;  %v6414_v27 = vld [vmem:[%s6551_s24 + $0x120] sm:$0xff] }
 0x2fa   : > { %v3510_v46 = vrot.slane %v6406_v10, 2  ;;  %v8923_v29 = vsel %vm232_vm0, %v8901_v38, %v3306_v20  ;;  %v10992_v56 = vrot.slane %v8927_v0, 2  ;;  %v3515_v40 = vrot.slane %v6408_v53, 2  ;;  %v8979_v53 = vld [vmem:[%s6551_s24 + $0x1e8] sm:$0xff] }
 0x2fb   : > { %v3362_v26 = vrot.slane %v8907_v2, 4  ;;  %v8933_v17 = vsel %vm3504_vm10, %v3505_v50, %v10993_v30  ;;  %v10990_v37 = vrot.slane %v8937_v41, 2  ;;  %v3520_v60 = vrot.slane %v6410_v45, 2  ;;  %v8974_v50 = vld [vmem:[%s6551_s24 + $0x128] sm:$0xff]  ;;  %v6418_v45 = vld [vmem:[%s6551_s24 + $0x1f8] sm:$0xff] }
 0x2fc   : > { %6074 = vrot.lane.b32.xlu0 %v6073_v25, %s6485_s28  ;;  %v8948_v4 = vsel %vm3504_vm10, %v3510_v46, %v10992_v56  ;;  %v10989_v36 = vrot.slane %v8951_v44, 2  ;;  %v3525_v43 = vrot.slane %v6412_v12, 2  ;;  %v10991_v63 = vrot.slane %v8963_v49, 2  ;;  %v6416_v46 = vld [vmem:[%s6551_s24 + $0x1e0] sm:$0xff]  ;;  %v6422_v56 = vld [vmem:[%s6551_s24 + $0x2d0] sm:$0xff] }
 0x2fd   : > { %v8943_v31 = vsel %vm232_vm0, 0.0, %v3362_v26  ;;  %v8960_v55 = vsel %vm3504_vm10, %v3515_v40, %v10990_v37  ;;  %v3530_v20 = vrot.slane %v6414_v27, 2  ;;  %v10994_v10 = vrot.slane %v8974_v50, 2  ;;  %v8989_v12 = vld [vmem:[%s6551_s24 + $0x200] sm:$0xff]  ;;  %v9020_v25 = vld [vmem:[%s6551_s24 + $0x2f0] sm:$0xff] }
 0x2fe   : > { %6064 = vrot.lane.b32.xlu1 %v6063_v19, %s6486_s29  ;;  %v8971_v48 = vsel %vm3504_vm10, %v3520_v60, %v10989_v36  ;;  %v3535_v26 = vrot.slane %v6416_v46, 2  ;;  %v10995_v40 = vrot.slane %v8979_v53, 2  ;;  %v8985_v19 = vsel %vm3504_vm10, %v3525_v43, %v10991_v63  ;;  %v6420_v36 = vld [vmem:[%s6551_s24 + $0x210] sm:$0xff] }
 0x2ff   : > { %v3540_v60 = vrot.slane %v6418_v45, 2  ;;  %v10996_v27 = vrot.slane %v8989_v12, 2  ;;  %v3545_v46 = vrot.slane %v6420_v36, 2  ;;  %v8996_v37 = vsel %vm3504_vm10, %v3530_v20, %v10994_v10  ;;  %v9004_v45 = vld [vmem:[%s6551_s24 + $0x218] sm:$0xff] }
 0x300   : > { %v9001_v43 = vsel %vm3504_vm10, %v3535_v26, %v10995_v40  ;;  %v10997_v63 = vrot.slane %v9004_v45, 2  ;;  %v3550_v30 = vrot.slane %v6422_v56, 2  ;;  %v9015_v20 = vld [vmem:[%s6551_s24 + $0x2d8] sm:$0xff]  ;;  %v6424_v26 = vld [vmem:[%s6551_s24 + $0x2e8] sm:$0xff]  ;;  %v10999_v59 = vrot.slane %v9020_v25, 2 }
 0x301   : > { %6084 = vrot.lane.b32.xlu2 %v6083_v32, %s6484_s27  ;;  %v9012_v36 = vsel %vm3504_vm10, %v3540_v60, %v10996_v27  ;;  %v11000_v10 = vrot.slane %v9015_v20, 2  ;;  %v3555_v40 = vrot.slane %v6424_v26, 2  ;;  %v6426_v32 = vld [vmem:[%s6551_s24 + $0x300] sm:$0xff]  ;;  %v11001_v60 = vrot.slane %v9030_v52, 2 }
 0x302   : > { %v9026_v56 = vsel %vm3504_vm10, %v3545_v46, %v10997_v63  ;;  %v3560_v1 = vrot.slane %v6426_v32, 2  ;;  %v3589_v27 = vrot.slane %v8960_v55, 4  ;;  %v3601_v46 = vrot.slane %v8971_v48, 4 }
 0x303   : > { %v9037_v26 = vsel %vm3504_vm10, %v3550_v30, %v11000_v10  ;;  %v9042_v42 = vsel %vm3504_vm10, %v3555_v40, %v10999_v59  ;;  %v3613_v32 = vrot.slane %v9001_v43, 4  ;;  %v11207_v63 = vpack.i.bf16 %v8911_v22, %v8881_v61 }
 0x304   : > { %11206 = vst [vmem:[#allocation63_spill] sm:$0xff] %v9037_v26  ;;  %v9053_v51 = vsel %vm3504_vm10, %v3560_v1, %v11001_v60  ;;  %v3590_v30 = vsel %vm232_vm0, %v3589_v27, %v8933_v17  ;;  %v3625_v40 = vrot.slane %v9012_v36, 4  ;;  %v3701_v59 = vrot.slane %v9042_v42, 4 }
 0x305   : > { %6089 = vrot.lane.b32.xlu0 %v11207_v63, %s6487_s30  ;;  %v3596_v10 = vperm.slane %v3590_v30, %v6559_v6  ;;  %v3602_v47 = vsel %vm232_vm0, %v3601_v46, %v8948_v4  ;;  %v3614_v61 = vsel %vm232_vm0, %v3613_v32, %v8985_v19  ;;  %v3713_v22 = vrot.slane %v9053_v51, 4 }
 0x306   : > { %v11208_v1 = vpack.i.bf16 %v8898_v5, %v8884_v35  ;;  %v3608_v63 = vperm.slane %v3602_v47, %v6559_v6  ;;  %v3620_v27 = vperm.slane %v3614_v61, %v6559_v6  ;;  %v3626_v30 = vsel %vm232_vm0, %v3625_v40, %v8996_v37 }
 0x307   : > { %v3702_v46 = vsel %vm232_vm0, %v3701_v59, %v9026_v56  ;;  %v3632_v60 = vperm.slane %v3626_v30, %v6559_v6  ;;  %v3714_v57 = vsel %vm232_vm0, %v3713_v22, %v9037_v26  ;;  %v3304_v35 = vrot.slane %v8901_v38, 4 }
 0x308   : > { %6079 = vrot.lane.b32.xlu1 %v11208_v1, %s6482_s25  ;;  %v3708_v32 = vperm.slane %v3702_v46, %v6559_v6  ;;  %v3637_v5 = vrot.slane %v3608_v63, 4  ;;  %v3720_v47 = vperm.slane %v3714_v57, %v6559_v6  ;;  %v3639_v1 = vrot.slane %v3596_v10, 4 }
 0x309   : > { %v3663_v61 = vrot.slane %v3620_v27, 4  ;;  %v11209_v40 = vpack.i.bf16 %v8943_v31, %v8923_v29  ;;  %v3661_v59 = vrot.slane %v3632_v60, 4  ;;  %v3305_v30 = vsel %vm232_vm0, %v3304_v35, %v8877_v15 }
 0x30a   : > { %v3727_v46 = vrot.slane %v3708_v32, 4  ;;  %v3591_v21 = vrot.slane %v8933_v17, 4  ;;  %v3638_v22 = vsel %vm232_vm0, %v3637_v5, %v3596_v10  ;;  %v3725_v38 = vrot.slane %v3720_v47, 4 }
 0x30b   : > { %6099 = vrot.lane.b32.xlu2 %v11209_v40, %s6486_s29  ;;  %v6093_v57 = vpack.i.bf16 %v8907_v2, %v3305_v30  ;;  %v3640_v58 = vsel %vm232_vm0, %v3608_v63, %v3639_v1  ;;  %v9092_v11 = vperm.slane %v3638_v22, %v6582_v16  ;;  %v3662_v29 = vsel %vm232_vm0, %v3661_v59, %v3620_v27 }
 0x30c   : > { %v3648_v31 = vperm.slane %v3640_v58, %v6582_v16  ;;  %v3664_v15 = vsel %vm232_vm0, %v3632_v60, %v3663_v61  ;;  %v9098_v35 = vperm.slane %v3662_v29, %v6582_v16  ;;  %v3726_v10 = vsel %vm232_vm0, %v3725_v38, %v3708_v32  ;;  %v9109_v58 = vld [vmem:[%s6551_s24 + $0x118] sm:$0x3] }
 0x30d   : > { %11210 = vst [vmem:[#allocation61_spill] sm:$0xff] %v9092_v11  ;;  %v3672_v5 = vperm.slane %v3664_v15, %v6582_v16  ;;  %v3728_v2 = vsel %vm232_vm0, %v3720_v47, %v3727_v46  ;;  %v3687_v63 = vrot.slane %v9092_v11, 4  ;;  %v9105_v1 = vperm.slane %v3726_v10, %v6582_v16 }
 0x30e   : > { %11211 = vst [vmem:[#allocation62_spill] sm:$0xff] %v9098_v35  ;;  %v3691_v40 = vrot.slane %v3648_v31, 4  ;;  %v3736_v27 = vperm.slane %v3728_v2, %v6582_v16  ;;  %v3592_v32 = vsel %vm232_vm0, %v8960_v55, %v3591_v21  ;;  %v3603_v61 = vrot.slane %v8948_v4, 4 }
 0x30f   : > { %11212 = vst [vmem:[#allocation64_spill] sm:$0xff] %v9105_v1  ;;  %v3615_v47 = vrot.slane %v8985_v19, 4  ;;  %v3688_v59 = vsel %vm232_vm0, %v9098_v35, %v3687_v63  ;;  %v3749_v30 = vrot.slane %v9105_v1, 4  ;;  %v3600_v38 = vperm.slane %v3592_v32, %v6559_v6 }
 0x310   : > { %6094 = vrot.lane.b32.xlu1 %v6093_v57, %s6488_s4  ;;  %v3692_v46 = vsel %vm232_vm0, %v3672_v5, %v3691_v40  ;;  %v3751_v22 = vrot.slane %v3736_v27, 4  ;;  %v3604_v57 = vsel %vm232_vm0, %v8971_v48, %v3603_v61  ;;  %v3627_v29 = vrot.slane %v8996_v37, 4 }
 0x311   : > { %v3616_v21 = vsel %vm232_vm0, %v9001_v43, %v3615_v47  ;;  %v3750_v15 = vsel %vm232_vm0, 0.0, %v3749_v30  ;;  %v3612_v2 = vperm.slane %v3604_v57, %v6559_v6  ;;  %v3703_v61 = vrot.slane %v9026_v56, 4  ;;  %v6429_v57 = vld [vmem:[%s6551_s24 + $0x10] sm:$0x3] }
 0x312   : > { %v3752_v10 = vsel %vm232_vm0, 0.0, %v3751_v22  ;;  %v3624_v63 = vperm.slane %v3616_v21, %v6559_v6  ;;  %v6103_v40 = vpack.i.bf16 %v3750_v15, %v3688_v59  ;;  %v3628_v32 = vsel %vm232_vm0, %v9012_v36, %v3627_v29 }
 0x313   : > { %v6113_v60 = vpack.i.bf16 %v3752_v10, %v3692_v46  ;;  %v3636_v47 = vperm.slane %v3628_v32, %v6559_v6  ;;  %v3649_v1 = vrot.slane %v3612_v2, 4  ;;  %v3715_v11 = vrot.slane %v9037_v26, 4  ;;  %v6430_v26 = vld [vmem:[%s6551_s24 + $0x1f0] sm:$0x3] }
 0x314   : > { %v3689_v30 = vrot.slane %v3672_v5, 4  ;;  %6104 = vrot.lane.b32.xlu0 %v6103_v40, %s6483_s26  ;;  %v3704_v22 = vsel %vm232_vm0, %v9042_v42, %v3703_v61  ;;  %v3651_v59 = vrot.slane %v3600_v38, 4  ;;  %v3675_v46 = vrot.slane %v3624_v63, 4 }
 0x315   : > { %6114 = vrot.lane.b32.xlu2 %v6113_v60, %s6482_s25  ;;  %v3508_v21 = vrot.slane %v6429_v57, 2  ;;  %v3650_v29 = vsel %vm232_vm0, %v3649_v1, %v3600_v38  ;;  %v3673_v15 = vrot.slane %v3636_v47, 4  ;;  %v3712_v10 = vperm.slane %v3704_v22, %v6559_v6 }
 0x316   : > { %v3716_v5 = vsel %vm232_vm0, %v9053_v51, %v3715_v11  ;;  %v3656_v40 = vperm.slane %v3650_v29, %v6582_v16  ;;  %v3690_v32 = vsel %vm232_vm0, %v3689_v30, %v3648_v31  ;;  %v3652_v61 = vsel %vm232_vm0, %v3612_v2, %v3651_v59  ;;  %v6431_v30 = vld [vmem:[%s6551_s24 + $0x28] sm:$0x3] }
 0x317   : > { %v3724_v60 = vperm.slane %v3716_v5, %v6559_v6  ;;  %v3674_v57 = vsel %vm232_vm0, %v3673_v15, %v3624_v63  ;;  %v6108_v35 = vpack.i.bf16 %v3736_v27, %v3690_v32  ;;  %v3660_v1 = vperm.slane %v3652_v61, %v6582_v16 }
 0x318   : > { %v3676_v38 = vsel %vm232_vm0, %v3636_v47, %v3675_v46  ;;  %v3680_v22 = vperm.slane %v3674_v57, %v6582_v16  ;;  %v3739_v29 = vrot.slane %v3712_v10, 4  ;;  %v3538_v5 = vrot.slane %v6430_v26, 2 }
 0x319   : > { %v3737_v8 = vrot.slane %v3724_v60, 4  ;;  %v3684_v11 = vperm.slane %v3676_v38, %v6582_v16  ;;  %6109 = vrot.lane.b32.xlu1 %v6108_v35, %s6485_s28  ;;  %v3699_v31 = vrot.slane %v3660_v1, 4  ;;  %v3695_v2 = vrot.slane %v3656_v40, 4 }
 0x31a   : > { %v3513_v63 = vrot.slane %v6431_v30, 2  ;;  %v3693_v27 = vrot.slane %v3680_v22, 4  ;;  %v3740_v47 = vsel %vm232_vm0, %v3724_v60, %v3739_v29  ;;  %v11213_v35 = vrot.slane %v8915_v34, 2  ;;  %v6432_v60 = vld [vmem:[%s6551_s24 + $0x40] sm:$0x3] }
 0x31b   : > { %v3738_v59 = vsel %vm232_vm0, %v3737_v8, %v3712_v10  ;;  %v3697_v15 = vrot.slane %v3684_v11, 4  ;;  %v3748_v32 = vperm.slane %v3740_v47, %v6582_v16  ;;  %v3700_v26 = vsel %vm232_vm0, %v3684_v11, %v3699_v31  ;;  %v6434_v31 = vld [vmem:[%s6551_s24 + $0x130] sm:$0x3] }
 0x31c   : > { %v3744_v46 = vperm.slane %v3738_v59, %v6582_v16  ;;  %v9165_v61 = vsel %vm3504_vm10, %v11213_v35, %v3508_v21  ;;  %v3694_v57 = vsel %vm232_vm0, %v3693_v27, %v3656_v40  ;;  %v3696_v10 = vsel %vm232_vm0, %v3680_v22, %v3695_v2 }
 0x31d   : > { %v3698_v8 = vsel %vm232_vm0, %v3697_v15, %v3660_v1  ;;  %v3518_v38 = vrot.slane %v6432_v60, 2  ;;  %v3755_v59 = vrot.slane %v3748_v32, 4  ;;  %v11214_v11 = vrot.slane %v8927_v0, 2  ;;  %v6433_v1 = vld [vmem:[%s6551_s24 + $0x100] sm:$0x3] }
 0x31e   : > { %v6118_v29 = vpack.i.bf16 %v3744_v46, %v3694_v57  ;;  %v6128_v30 = vpack.i.bf16 %v3748_v32, %v3698_v8  ;;  %v3753_v47 = vrot.slane %v3744_v46, 4  ;;  %v11215_v21 = vrot.slane %v8937_v41, 2  ;;  %v6435_v46 = vld [vmem:[%s6551_s24 + $0x208] sm:$0x3] }
 0x31f   : > { %v9174_v34 = vsel %vm3504_vm10, %v11214_v11, %v3513_v63  ;;  %v3523_v22 = vrot.slane %v6433_v1, 2  ;;  %v3533_v2 = vrot.slane %v6434_v31, 2  ;;  %v3756_v0 = vsel %vm232_vm0, 0.0, %v3755_v59 }
 0x320   : > { %v9179_v40 = vsel %vm3504_vm10, %v11215_v21, %v3518_v38  ;;  %6119 = vrot.lane.b32.xlu0 %v6118_v29, %s6484_s27  ;;  %6129 = vrot.lane.b32.xlu2 %v6128_v30, %s6488_s4  ;;  %v3754_v63 = vsel %vm232_vm0, 0.0, %v3753_v47  ;;  %v11216_v41 = vrot.slane %v9109_v58, 2  ;;  %v11217_v27 = vrot.slane %v8963_v49, 2  ;;  %v6436_v30 = vld [vmem:[%s6551_s24 + $0x220] sm:$0x3] }
 0x321   : > { %v3543_v32 = vrot.slane %v6435_v46, 2  ;;  %v6133_v35 = vpack.i.bf16 %v3756_v0, %v3700_v26  ;;  %v6123_v57 = vpack.i.bf16 %v3754_v63, %v3696_v10  ;;  %v11218_v8 = vrot.slane %v8951_v44, 2  ;;  %v6437_v47 = vld [vmem:[%s6551_s24 + $0x2e0] sm:$0x3]  ;;  %v6438_v10 = vld [vmem:[%s6551_s24 + $0x2f8] sm:$0x3] }
 0x322   : > { %v9192_v15 = vsel %vm3504_vm10, %v11217_v27, %v11216_v41  ;;  %v11219_v38 = vrot.slane %v8979_v53, 2  ;;  %v11220_v49 = vrot.slane %v8989_v12, 2  ;;  %v3548_v59 = vrot.slane %v6436_v30, 2 }
 0x323   : > { %v9198_v60 = vsel %vm3504_vm10, %v11218_v8, %v3523_v22  ;;  %v3553_v26 = vrot.slane %v6437_v47, 2  ;;  %v3558_v11 = vrot.slane %v6438_v10, 2  ;;  %6124 = vrot.lane.b32.xlu1 %v6123_v57, %s6487_s30  ;;  %v11221_v44 = vrot.slane %v8974_v50, 2 }
 0x324   : > { %v9203_v29 = vsel %vm3504_vm10, %v11219_v38, %v3538_v5  ;;  %v9208_v58 = vsel %vm3504_vm10, %v11220_v49, %v3543_v32  ;;  %v6439_v5 = vld [vmem:[%s6551_s24 + $0x310] sm:$0x3]  ;;  %v3757_v12 = vrot.slane %v9179_v40, 4  ;;  %v3769_v1 = vrot.slane %v9198_v60, 4  ;;  %s192_s24 = scalar_lea.vmem %s10910_s3, %s5383_s21 }
 0x325   : > { %v9217_v53 = vsel %vm3504_vm10, %v11221_v44, %v3533_v2  ;;  %v3563_v21 = vrot.slane %v6439_v5, 2  ;;  %v11222_v22 = vrot.slane %v9004_v45, 2  ;;  %v11223_v0 = vrot.slane %v9015_v20, 2 }
 0x326   : > { %v11224_v50 = vrot.slane %v9020_v25, 2  ;;  %v3781_v41 = vrot.slane %v9203_v29, 4  ;;  %v11225_v27 = vrot.slane %v9030_v52, 2  ;;  %v3758_v45 = vsel %vm232_vm0, %v3757_v12, %v9165_v61 }
 0x327   : > { %v9225_v31 = vsel %vm3504_vm10, %v11222_v22, %v3548_v59  ;;  %v9230_v63 = vsel %vm3504_vm10, %v11223_v0, %v3553_v26  ;;  %v3770_v20 = vsel %vm232_vm0, %v3769_v1, %v9174_v34  ;;  %v3793_v32 = vrot.slane %v9208_v58, 4 }
 0x328   : > { %v9235_v2 = vsel %vm3504_vm10, %v11224_v50, %v3558_v11  ;;  %v9241_v46 = vsel %vm3504_vm10, %v11225_v27, %v3563_v21  ;;  %v3764_v25 = vperm.slane %v3758_v45, %v6559_v6  ;;  %v3776_v57 = vperm.slane %v3770_v20, %v6559_v6  ;;  %6134 = vrot.lane.b32.xlu0 %v6133_v35, %s6486_s29 }
 0x329   : > { %v3782_v8 = vsel %vm232_vm0, %v3781_v41, %v9192_v15  ;;  %v3869_v52 = vrot.slane %v9235_v2, 4  ;;  %v3771_v38 = vrot.slane %v9174_v34, 4  ;;  %v3794_v30 = vsel %vm232_vm0, %v3793_v32, %v9217_v53 }
 0x32a   : > { %v3788_v49 = vperm.slane %v3782_v8, %v6559_v6  ;;  %v3881_v59 = vrot.slane %v9241_v46, 4  ;;  %v3800_v47 = vperm.slane %v3794_v30, %v6559_v6  ;;  %v3807_v26 = vrot.slane %v3764_v25, 4 }
 0x32b   : > { %v3870_v10 = vsel %vm232_vm0, %v3869_v52, %v9225_v31  ;;  %v3805_v11 = vrot.slane %v3776_v57, 4  ;;  %v3759_v12 = vrot.slane %v9165_v61, 4 }
 0x32c   : > { %v3831_v44 = vrot.slane %v3788_v49, 4  ;;  %v3876_v5 = vperm.slane %v3870_v10, %v6559_v6  ;;  %v3882_v21 = vsel %vm232_vm0, %v3881_v59, %v9230_v63  ;;  %v3808_v1 = vsel %vm232_vm0, %v3776_v57, %v3807_v26 }
 0x32d   : > { %v3888_v22 = vperm.slane %v3882_v21, %v6559_v6  ;;  %v3806_v35 = vsel %vm232_vm0, %v3805_v11, %v3764_v25  ;;  %v3829_v0 = vrot.slane %v3800_v47, 4  ;;  %v3816_v50 = vperm.slane %v3808_v1, %v6582_v16 }
 0x32e   : > { %v3832_v41 = vsel %vm232_vm0, %v3800_v47, %v3831_v44  ;;  %v3895_v27 = vrot.slane %v3876_v5, 4  ;;  %v9272_v45 = vperm.slane %v3806_v35, %v6582_v16  ;;  %v3760_v57 = vsel %vm232_vm0, %v9179_v40, %v3759_v12 }
 0x32f   : > { %v3840_v20 = vperm.slane %v3832_v41, %v6582_v16  ;;  %v3893_v32 = vrot.slane %v3888_v22, 4  ;;  %v3830_v8 = vsel %vm232_vm0, %v3829_v0, %v3788_v49  ;;  %v3859_v25 = vrot.slane %v3816_v50, 4 }
 0x330   : > { %v3896_v52 = vsel %vm232_vm0, %v3888_v22, %v3895_v27  ;;  %v9280_v30 = vperm.slane %v3830_v8, %v6582_v16  ;;  %v3855_v59 = vrot.slane %v9272_v45, 4  ;;  %v3883_v26 = vrot.slane %v9230_v63, 4 }
 0x331   : > { %v3857_v47 = vrot.slane %v3840_v20, 4  ;;  %v3904_v10 = vperm.slane %v3896_v52, %v6582_v16  ;;  %v3894_v11 = vsel %vm232_vm0, %v3893_v32, %v3876_v5  ;;  %v3860_v49 = vsel %vm232_vm0, %v3840_v20, %v3859_v25 }
 0x332   : > { %v3856_v44 = vsel %vm232_vm0, %v9280_v30, %v3855_v59  ;;  %v9290_v21 = vperm.slane %v3894_v11, %v6582_v16  ;;  %v3768_v12 = vperm.slane %v3760_v57, %v6559_v6  ;;  %v3772_v35 = vsel %vm232_vm0, %v9198_v60, %v3771_v38 }
 0x333   : > { %v3858_v1 = vsel %vm232_vm0, %v3857_v47, %v3816_v50  ;;  %v3919_v22 = vrot.slane %v3904_v10, 4  ;;  %v3783_v0 = vrot.slane %v9192_v15, 4  ;;  %v3780_v27 = vperm.slane %v3772_v35, %v6559_v6 }
 0x334   : > { %v6143_v41 = vpack.i.bf16 %v3904_v10, %v3858_v1  ;;  %v3917_v5 = vrot.slane %v9290_v21, 4  ;;  %v3795_v20 = vrot.slane %v9217_v53, 4  ;;  %v3871_v50 = vrot.slane %v9225_v31, 4 }
 0x335   : > { %v3920_v32 = vsel %vm232_vm0, 0.0, %v3919_v22  ;;  %v3784_v8 = vsel %vm232_vm0, %v9203_v29, %v3783_v0  ;;  %v3884_v57 = vsel %vm232_vm0, %v9241_v46, %v3883_v26  ;;  %v3817_v11 = vrot.slane %v3780_v27, 4 }
 0x336   : > { %6144 = vrot.lane.b32.xlu2 %v6143_v41, %s6485_s28  ;;  %v6148_v38 = vpack.i.bf16 %v3920_v32, %v3860_v49  ;;  %v3918_v52 = vsel %vm232_vm0, 0.0, %v3917_v5  ;;  %v3792_v25 = vperm.slane %v3784_v8, %v6559_v6  ;;  %v3796_v59 = vsel %vm232_vm0, %v9208_v58, %v3795_v20 }
 0x337   : > { %v6138_v47 = vpack.i.bf16 %v3918_v52, %v3856_v44  ;;  %v3804_v10 = vperm.slane %v3796_v59, %v6559_v6  ;;  %v3872_v1 = vsel %vm232_vm0, %v9235_v2, %v3871_v50  ;;  %v3892_v49 = vperm.slane %v3884_v57, %v6559_v6 }
 0x338   : > { %6149 = vrot.lane.b32.xlu0 %v6148_v38, %s6482_s25  ;;  %v3880_v26 = vperm.slane %v3872_v1, %v6559_v6  ;;  %v3819_v22 = vrot.slane %v3768_v12, 4  ;;  %v3843_v35 = vrot.slane %v3792_v25, 4  ;;  %v3818_v0 = vsel %vm232_vm0, %v3817_v11, %v3768_v12 }
 0x339   : > { %6139 = vrot.lane.b32.xlu1 %v6138_v47, %s6483_s26  ;;  %v3841_v41 = vrot.slane %v3804_v10, 4  ;;  %v3824_v44 = vperm.slane %v3818_v0, %v6582_v16  ;;  %v3905_v5 = vrot.slane %v3892_v49, 4 }
 0x33a   : > { %v3820_v20 = vsel %vm232_vm0, %v3780_v27, %v3819_v22  ;;  %v3844_v32 = vsel %vm232_vm0, %v3804_v10, %v3843_v35  ;;  %v3907_v38 = vrot.slane %v3880_v26, 4  ;;  %v5921_v27 = vunpack.i.l.bf16 %v8573_v7 }
 0x33b   : > { %v3842_v8 = vsel %vm232_vm0, %v3841_v41, %v3792_v25  ;;  %v3828_v50 = vperm.slane %v3820_v20, %v6582_v16  ;;  %v3852_v57 = vperm.slane %v3844_v32, %v6582_v16  ;;  %v3863_v59 = vrot.slane %v3824_v44, 4 }
 0x33c   : > { %v3848_v52 = vperm.slane %v3842_v8, %v6582_v16  ;;  %v3906_v12 = vsel %vm232_vm0, %v3905_v5, %v3880_v26  ;;  %v3908_v1 = vsel %vm232_vm0, %v3892_v49, %v3907_v38  ;;  %v5932_v10 = vunpack.i.h.bf16 %v8599_v54 }
 0x33d   : > { %v3912_v47 = vperm.slane %v3906_v12, %v6582_v16  ;;  %v3865_v11 = vrot.slane %v3852_v57, 4  ;;  %v3916_v25 = vperm.slane %v3908_v1, %v6582_v16  ;;  %v5926_v35 = vunpack.i.l.bf16 %v8593_v14 }
 0x33e   : > { %v3861_v22 = vrot.slane %v3848_v52, 4  ;;  %v3864_v0 = vsel %vm232_vm0, %v3848_v52, %v3863_v59  ;;  %v3867_v32 = vrot.slane %v3828_v50, 4  ;;  %v5937_v49 = vunpack.i.h.bf16 %v8581_v39 }
 0x33f   : > { %v3921_v41 = vrot.slane %v3912_v47, 4  ;;  %v3866_v20 = vsel %vm232_vm0, %v3865_v11, %v3828_v50  ;;  %v3923_v8 = vrot.slane %v3916_v25, 4  ;;  %v5931_v7 = vunpack.i.l.bf16 %v8599_v54 }
 0x340   : > { %v6163_v26 = vpack.i.bf16 %v3916_v25, %v3866_v20  ;;  %v3862_v5 = vsel %vm232_vm0, %v3861_v22, %v3824_v44  ;;  %v2939_v14 = vsel %vm695_vm7, %v8597_v23, %v5932_v10  ;;  %v2934_v44 = vsel %vm689_vm5, %v8589_v28, %v5921_v27 }
 0x341   : > { %v3922_v38 = vsel %vm232_vm0, 0.0, %v3921_v41  ;;  %v6153_v12 = vpack.i.bf16 %v3912_v47, %v3862_v5  ;;  %v9344_v52 = vsel %vm698_vm8, %v2939_v14, %v5937_v49  ;;  %v5936_v50 = vunpack.i.l.bf16 %v8581_v39  ;;  %v11233_v14 = vld [vmem:[#allocation58_spill] sm:$0xff] }
 0x342   : > { %v6158_v1 = vpack.i.bf16 %v3922_v38, %v3864_v0  ;;  %6164 = vrot.lane.b32.xlu0 %v6163_v26, %s6488_s4  ;;  %11226 = vst [vmem:[#allocation65_spill] sm:$0xff] %v9344_v52  ;;  %v3868_v54 = vsel %vm232_vm0, %v3852_v57, %v3867_v32  ;;  %v3924_v59 = vsel %vm232_vm0, 0.0, %v3923_v8  ;;  %v2936_v47 = vsel %vm692_vm6, %v2934_v44, %v5926_v35 }
 0x343   : > { %6154 = vrot.lane.b32.xlu1 %v6153_v12, %s6484_s27  ;;  %v2938_v23 = vsel %vm695_vm7, %v2936_v47, %v5931_v7  ;;  %v9356_v11 = vpack.i.bf16 %v9174_v34, %v8948_v4  ;;  %v6168_v28 = vpack.i.bf16 %v3924_v59, %v3868_v54  ;;  %v6040_v27 = vpop.permute.xlu2 %6039  ;;  %v9363_v39 = vpack.i.bf16 %v9165_v61, %v8933_v17  ;;  %v11232_v7 = vld [vmem:[#allocation57_spill] sm:$0xff] }
 0x344   : > { %6159 = vrot.lane.b32.xlu2 %v6158_v1, %s6487_s30  ;;  %v9359_v10 = vsel %vm698_vm8, %v2938_v23, %v5936_v50  ;;  %v5961_v57 = vunpack.i.l.bf16 %v8617_v33  ;;  %v5967_v25 = vunpack.i.h.bf16 %v8601_v9  ;;  %v5966_v4 = vunpack.i.l.bf16 %v8601_v9 }
 0x345   : > { %11227 = vst [vmem:[#allocation66_spill] sm:$0xff] %v9359_v10  ;;  %v5972_v34 = vunpack.i.h.bf16 %v8625_v62  ;;  %v5971_v61 = vunpack.i.l.bf16 %v8625_v62  ;;  %v9379_v33 = vpack.i.bf16 %v9192_v15, %v8985_v19  ;;  %v9386_v9 = vpack.i.bf16 %v9179_v40, %v8960_v55 }
 0x346   : > { %v2950_v17 = vsel %vm692_vm6, %v8614_v13, %v5961_v57  ;;  %v2953_v22 = vsel %vm695_vm7, %v8623_v24, %v5967_v25  ;;  %v6188_v41 = vpack.i.bf16 %v9198_v60, %v8971_v48  ;;  %v3292_v24 = vrot.slane %v8826_v3, 4 }
 0x347   : > { %v2952_v35 = vsel %vm695_vm7, %v2950_v17, %v5966_v4  ;;  %v9393_v13 = vsel %vm698_vm8, %v2953_v22, %v5972_v34  ;;  %v9404_v55 = vpack.i.bf16 %v9208_v58, %v9012_v36  ;;  %v9408_v48 = vpack.i.bf16 %v9217_v53, %v8996_v37  ;;  %v11230_v36 = vld [vmem:[#allocation63_spill] sm:$0xff] }
 0x348   : > { %11228 = vst [vmem:[#allocation67_spill] sm:$0xff] %v9393_v13  ;;  %v9396_v62 = vsel %vm698_vm8, %v2952_v35, %v5971_v61  ;;  %v6203_v40 = vpack.i.bf16 %v9203_v29, %v9001_v43  ;;  %v3293_v60 = vsel %vm232_vm0, %v3292_v24, %v8814_v18  ;;  %v6223_v37 = vpack.i.bf16 %v9053_v51, %v9042_v42  ;;  %v11231_v18 = vld [vmem:[#allocation60_spill] sm:$0xff] }
 0x349   : > { %11229 = vst [vmem:[#allocation68_spill] sm:$0xff] %v9396_v62  ;;  %v6213_v43 = vpack.i.bf16 %v9225_v31, %v9026_v56  ;;  %v6218_v29 = vpack.i.bf16 %v9230_v63, %v11230_v36  ;;  %v3124_v58 = vrot.slane %v11231_v18, 4  ;;  %v6042_v32 = vunpack.i.h.bf16 %v6040_v27 }
 0x34a   : > { %6179 = vrot.lane.b32.xlu0 %v9356_v11, %s6489_s5  ;;  %v6041_v8 = vunpack.i.l.bf16 %v6040_v27  ;;  %v6228_v49 = vpack.i.bf16 %v9235_v2, %v9241_v46 }
 0x34b   : > { %6169 = vrot.lane.b32.xlu1 %v6168_v28, %s6486_s29  ;;  %v6055_v0 = vpop.permute.xlu2 %6054  ;;  %v3125_v38 = vsel %vm232_vm0, %v3124_v58, %v11232_v7 }
 0x34c   : > { %6174 = vrot.lane.b32.xlu2 %v9363_v39, %s6489_s5  ;;  %v6057_v34 = vunpack.i.h.bf16 %v6055_v0  ;;  %v6056_v17 = vunpack.i.l.bf16 %v6055_v0  ;;  %v11234_v0 = vld [vmem:[#allocation59_spill] sm:$0xff] }
 0x352   : > { %6194 = vrot.lane.b32.xlu0 %v9379_v33, %s6489_s5 }
 0x353   : > { %6184 = vrot.lane.b32.xlu1 %v9386_v9, %s6489_s5  ;;  %v6070_v19 = vpop.permute.xlu2 %6069 }
 0x354   : > { %6189 = vrot.lane.b32.xlu2 %v6188_v41, %s6489_s5  ;;  %v6071_v15 = vunpack.i.l.bf16 %v6070_v19  ;;  %v6072_v35 = vunpack.i.h.bf16 %v6070_v19 }
 0x356   : > { %v3490_v3 = vsel %vm680_vm2, %v3293_v60, %v6071_v15 }
 0x35a   : > { %6209 = vrot.lane.b32.xlu0 %v9404_v55, %s6489_s5 }
 0x35b   : > { %6199 = vrot.lane.b32.xlu1 %v9408_v48, %s6489_s5  ;;  %v6085_v27 = vpop.permute.xlu2 %6084 }
 0x35c   : > { %6204 = vrot.lane.b32.xlu2 %v6203_v40, %s6489_s5 }
 0x35e   : > { %v6045_v53 = vpop.permute.xlu0 %6044 }
 0x35f   : > { %v6047_v12 = vunpack.i.h.bf16 %v6045_v53  ;;  %v6046_v1 = vunpack.i.l.bf16 %v6045_v53  ;;  %v6087_v53 = vunpack.i.h.bf16 %v6085_v27 }
 0x360   : > { %v6035_v20 = vpop.permute.xlu1 %6034 }
 0x361   : > { %v6037_v26 = vunpack.i.h.bf16 %v6035_v20  ;;  %v6036_v5 = vunpack.i.l.bf16 %v6035_v20  ;;  %v6086_v20 = vunpack.i.l.bf16 %v6085_v27 }
 0x362   : > { %6224 = vrot.lane.b32.xlu0 %v6223_v37, %s6489_s5  ;;  %v3491_v37 = vsel %vm680_vm2, %v11234_v0, %v6072_v35 }
 0x363   : > { %6214 = vrot.lane.b32.xlu1 %v6213_v43, %s6489_s5  ;;  %v3477_v44 = vsel %vm680_vm2, %v11233_v14, %v6037_v26  ;;  %v3476_v50 = vsel %vm680_vm2, %v3125_v38, %v6036_v5 }
 0x364   : > { %6219 = vrot.lane.b32.xlu2 %v6218_v29, %s6489_s5  ;;  %v3479_v54 = vsel %vm683_vm3, %v3477_v44, %v6042_v32  ;;  %v3478_v59 = vsel %vm683_vm3, %v3476_v50, %v6041_v8 }
 0x365   : > { %v3480_v47 = vsel %vm686_vm4, %v3478_v59, %v6046_v1  ;;  %v3481_v23 = vsel %vm686_vm4, %v3479_v54, %v6047_v12  ;;  %v9467_v18 = vpop.permute.xlu2 %6099  ;;  %v11235_v1 = vld [vmem:[#allocation62_spill] sm:$0xff] }
 0x366   : > { %v9442_v28 = vpop.permute.xlu0 %6059  ;;  %v3685_v14 = vrot.slane %v11235_v1, 4 }
 0x368   : > { %v6050_v57 = vpop.permute.xlu1 %6049 }
 0x369   : > { %v6052_v25 = vunpack.i.h.bf16 %v6050_v57  ;;  %v6051_v4 = vunpack.i.l.bf16 %v6050_v57 }
 0x36a   : > { %6229 = vrot.lane.b32.xlu0 %v6228_v49, %s6489_s5 }
 0x36b   : > { %4657 = vrot.lane.b32.xlu1 %v9053_v51, %s6490_s6  ;;  %v3482_v61 = vsel %vm689_vm5, %v3480_v47, %v6051_v4  ;;  %v3483_v22 = vsel %vm689_vm5, %v3481_v23, %v6052_v25  ;;  %v11239_v25 = vld [vmem:[#allocation64_spill] sm:$0xff] }
 0x36c   : > { %4659 = vrot.lane.b32.xlu2 %v9241_v46, %s6490_s6  ;;  %v9451_v24 = vsel %vm692_vm6, %v3482_v61, %v6056_v17  ;;  %v9454_v15 = vsel %vm692_vm6, %v3483_v22, %v6057_v34 }
 0x36e   : > { %v6075_v51 = vpop.permute.xlu0 %6074 }
 0x36f   : > { %v6077_v46 = vunpack.i.h.bf16 %v6075_v51  ;;  %v6076_v60 = vunpack.i.l.bf16 %v6075_v51  ;;  %v6115_v8 = vpop.permute.xlu2 %6114 }
 0x370   : > { %v9463_v19 = vpop.permute.xlu1 %6064  ;;  %v6117_v27 = vunpack.i.h.bf16 %v6115_v8  ;;  %v6116_v57 = vunpack.i.l.bf16 %v6115_v8 }
 0x371   : > { %v3492_v43 = vsel %vm683_vm3, %v3490_v3, %v6076_v60  ;;  %v3493_v29 = vsel %vm683_vm3, %v3491_v37, %v6077_v46 }
 0x372   : > { %4651 = vrot.lane.b32.xlu0 %v9230_v63, %s6490_s6 }
 0x373   : > { %6234 = vrot.lane.b32.xlu1 %v6188_v41, %s6490_s6 }
 0x374   : > { %4649 = vrot.lane.b32.xlu2 %v11230_v36, %s6490_s6 }
 0x377   : > { %v6090_v63 = vpop.permute.xlu0 %6089 }
 0x378   : > { %v6092_v26 = vunpack.i.h.bf16 %v6090_v63  ;;  %v6091_v3 = vunpack.i.l.bf16 %v6090_v63 }
 0x37a   : > { %6239 = vrot.lane.b32.xlu0 %v6203_v40, %s6490_s6  ;;  %v6080_v41 = vpop.permute.xlu1 %6079  ;;  %v9493_v54 = vpop.permute.xlu2 %6129 }
 0x37b   : > { %4653 = vrot.lane.b32.xlu1 %v9042_v42, %s6490_s6  ;;  %v6082_v58 = vunpack.i.h.bf16 %v6080_v41  ;;  %v6081_v36 = vunpack.i.l.bf16 %v6080_v41  ;;  %11237 = vst [vmem:[#allocation60_spill] sm:$0xff] %v9493_v54 }
 0x37c   : > { %4655 = vrot.lane.b32.xlu2 %v9235_v2, %s6490_s6 }
 0x37d   : > { %v3495_v5 = vsel %vm686_vm4, %v3493_v29, %v6082_v58  ;;  %v3494_v32 = vsel %vm686_vm4, %v3492_v43, %v6081_v36 }
 0x37e   : > { %v3497_v40 = vsel %vm689_vm5, %v3495_v5, %v6087_v53  ;;  %v3496_v42 = vsel %vm689_vm5, %v3494_v32, %v6086_v20 }
 0x37f   : > { %v3498_v49 = vsel %vm692_vm6, %v3496_v42, %v6091_v3  ;;  %v3499_v2 = vsel %vm692_vm6, %v3497_v40, %v6092_v26 }
 0x382   : > { %6254 = vrot.lane.b32.xlu0 %v9404_v55, %s6490_s6  ;;  %v6095_v7 = vpop.permute.xlu1 %6094 }
 0x383   : > { %6244 = vrot.lane.b32.xlu1 %v9356_v11, %s6490_s6  ;;  %v6097_v38 = vunpack.i.h.bf16 %v6095_v7  ;;  %v6096_v12 = vunpack.i.l.bf16 %v6095_v7  ;;  %v11238_v11 = vld [vmem:[#allocation61_spill] sm:$0xff] }
 0x384   : > { %6249 = vrot.lane.b32.xlu2 %v9386_v9, %s6490_s6  ;;  %v3686_v55 = vsel %vm232_vm0, %v3685_v14, %v11238_v11 }
 0x385   : > { %v9488_v44 = vsel %vm695_vm7, %v3498_v49, %v6096_v12  ;;  %v9491_v50 = vsel %vm695_vm7, %v3499_v2, %v6097_v38 }
 0x386   : > { %11236 = vst [vmem:[#allocation63_spill] sm:$0xff] %v9491_v50  ;;  %v6105_v9 = vpop.permute.xlu0 %6104 }
 0x387   : > { %v6107_v59 = vunpack.i.h.bf16 %v6105_v9  ;;  %v6106_v47 = vunpack.i.l.bf16 %v6105_v9 }
 0x389   : > { %v4037_v23 = vsel %vm680_vm2, %v3686_v55, %v6106_v47  ;;  %v4038_v4 = vsel %vm680_vm2, %v11239_v25, %v6107_v59 }
 0x38a   : > { %6259 = vrot.lane.b32.xlu0 %v9379_v33, %s6490_s6 }
 0x38b   : > { %4645 = vrot.lane.b32.xlu1 %v9026_v56, %s6490_s6  ;;  %v6110_v33 = vpop.permute.xlu1 %6109 }
 0x38c   : > { %4647 = vrot.lane.b32.xlu2 %v9225_v31, %s6490_s6  ;;  %v6112_v34 = vunpack.i.h.bf16 %v6110_v33  ;;  %v6111_v17 = vunpack.i.l.bf16 %v6110_v33 }
 0x38e   : > { %v4040_v61 = vsel %vm683_vm3, %v4038_v4, %v6112_v34  ;;  %v4039_v22 = vsel %vm683_vm3, %v4037_v23, %v6111_v17 }
 0x38f   : > { %v4042_v56 = vsel %vm686_vm4, %v4040_v61, %v6117_v27  ;;  %v9512_v31 = vsel %vm686_vm4, %v4039_v22, %v6116_v57 }
 0x390   : > { %v6145_v35 = vpop.permute.xlu2 %6144 }
 0x391   : > { %v6147_v58 = vunpack.i.h.bf16 %v6145_v35  ;;  %v6146_v36 = vunpack.i.l.bf16 %v6145_v35 }
 0x392   : > { %v9516_v51 = vpop.permute.xlu0 %6119 }
 0x393   : > { %6264 = vrot.lane.b32.xlu1 %v9408_v48, %s6490_s6  ;;  %v6122_v46 = vunpack.i.h.bf16 %v9516_v51 }
 0x394   : > { %6269 = vrot.lane.b32.xlu2 %v9363_v39, %s6490_s6  ;;  %v3853_v39 = vrot.slane %v9280_v30, 4 }
 0x395   : > { %v9519_v60 = vpop.permute.xlu1 %6124  ;;  %v4044_v0 = vsel %vm689_vm5, %v4042_v56, %v6122_v46 }
 0x396   : > { %11240 = vst [vmem:[#allocation57_spill] sm:$0xff] %v9519_v60  ;;  %v6127_v37 = vunpack.i.h.bf16 %v9519_v60  ;;  %v3854_v53 = vsel %vm232_vm0, %v3853_v39, %v9272_v45 }
 0x398   : > { %v9524_v48 = vsel %vm692_vm6, %v4044_v0, %v6127_v37 }
 0x399   : > { %11241 = vst [vmem:[#allocation58_spill] sm:$0xff] %v9524_v48 }
 0x39a   : > { %v9528_v29 = vpop.permute.xlu0 %6134 }
 0x39b   : > { %11243 = vst [vmem:[#allocation62_spill] sm:$0xff] %v9528_v29 }
 0x39e   : > { %v9526_v43 = vpop.permute.xlu2 %6159 }
 0x39f   : > { %11242 = vst [vmem:[#allocation59_spill] sm:$0xff] %v9526_v43 }
 0x3a6   : > { %v9530_v63 = vpop.permute.xlu2 %6174 }
 0x3a7   : > { %v6177_v33 = vunpack.i.h.bf16 %v9530_v63 }
 0x3a9   : > { %v4307_v56 = vrot.slane %v6177_v33, 4 }
 0x3aa   : > { %v6150_v41 = vpop.permute.xlu0 %6149 }
 0x3ab   : > { %v6140_v20 = vpop.permute.xlu1 %6139  ;;  %v6152_v26 = vunpack.i.h.bf16 %v6150_v41  ;;  %v6151_v3 = vunpack.i.l.bf16 %v6150_v41 }
 0x3ac   : > { %v6142_v5 = vunpack.i.h.bf16 %v6140_v20  ;;  %v6141_v32 = vunpack.i.l.bf16 %v6140_v20 }
 0x3ae   : > { %v9535_v8 = vpop.permute.xlu2 %6189  ;;  %v4052_v40 = vsel %vm680_vm2, %v9290_v21, %v6142_v5  ;;  %v4051_v42 = vsel %vm680_vm2, %v3854_v53, %v6141_v32 }
 0x3af   : > { %v4054_v30 = vsel %vm683_vm3, %v4052_v40, %v6147_v58  ;;  %v4053_v49 = vsel %vm683_vm3, %v4051_v42, %v6146_v36  ;;  %v6192_v11 = vunpack.i.h.bf16 %v9535_v8  ;;  %v11016_v5 = vunpack.i.l.bf16 %v9535_v8 }
 0x3b0   : > { %v4055_v2 = vsel %vm686_vm4, %v4053_v49, %v6151_v3  ;;  %v4056_v45 = vsel %vm686_vm4, %v4054_v30, %v6152_v26  ;;  %v11251_v10 = vunpack.i.l.bf16 %v9535_v8 }
 0x3b1   : > { %v4317_v9 = vrot.slane %v6192_v11, 4  ;;  %v4149_v49 = vrot.slane %v11016_v5, 4 }
 0x3b4   : > { %v9544_v7 = vpop.permute.xlu0 %6164 }
 0x3b5   : > { %11244 = vst [vmem:[#allocation61_spill] sm:$0xff] %v9544_v7  ;;  %v6155_v38 = vpop.permute.xlu1 %6154 }
 0x3b6   : > { %v9546_v12 = vpop.permute.xlu2 %6204  ;;  %v6157_v1 = vunpack.i.h.bf16 %v6155_v38  ;;  %v6156_v14 = vunpack.i.l.bf16 %v6155_v38 }
 0x3b7   : > { %v11255_v7 = vunpack.i.h.bf16 %v9546_v12 }
 0x3b8   : > { %v9550_v21 = vsel %vm689_vm5, %v4055_v2, %v6156_v14  ;;  %v9553_v55 = vsel %vm689_vm5, %v4056_v45, %v6157_v1 }
 0x3b9   : > { %11245 = vst [vmem:[#allocation64_spill] sm:$0xff] %v9550_v21 }
 0x3ba   : > { %11246 = vst [vmem:[#allocation69_spill] sm:$0xff] %v9553_v55 }
 0x3bc   : > { %v9555_v59 = vpop.permute.xlu0 %6179 }
 0x3bd   : > { %v6182_v47 = vunpack.i.h.bf16 %v9555_v59  ;;  %v9558_v23 = vpop.permute.xlu1 %6169  ;;  %v6181_v1 = vunpack.i.l.bf16 %v9555_v59 }
 0x3be   : > { %11247 = vst [vmem:[#allocation70_spill] sm:$0xff] %v9558_v23  ;;  %v9560_v27 = vpop.permute.xlu2 %6219 }
 0x3bf   : > { %v4319_v57 = vrot.slane %v6182_v47, 4  ;;  %v4318_v25 = vsel %vm232_vm0, %v4317_v9, %v6182_v47  ;;  %v11013_v47 = vunpack.i.h.bf16 %v9546_v12  ;;  %v4151_v9 = vrot.slane %v6181_v1, 4 }
 0x3c0   : > { %v9569_v61 = vperm.slane %v4318_v25, %v6559_v6 }
 0x3c1   : > { %v4320_v4 = vsel %vm232_vm0, %v6192_v11, %v4319_v57 }
 0x3c2   : > { %v4328_v34 = vperm.slane %v4320_v4, %v6559_v6  ;;  %v4353_v41 = vrot.slane %v9569_v61, 4  ;;  %v11014_v4 = vunpack.i.l.bf16 %v9546_v12 }
 0x3c4   : > { %v9566_v17 = vpop.permute.xlu0 %6194  ;;  %v4365_v0 = vrot.slane %v4328_v34, 4  ;;  %v4161_v14 = vrot.slane %v11014_v4, 4 }
 0x3c5   : > { %v9571_v22 = vpop.permute.xlu1 %6184  ;;  %v6197_v38 = vunpack.i.h.bf16 %v9566_v17 }
 0x3c6   : > { %v9573_v35 = vpop.permute.xlu2 %4659  ;;  %v6187_v46 = vunpack.i.h.bf16 %v9571_v22  ;;  %v11012_v2 = vunpack.i.l.bf16 %v9571_v22 }
 0x3c7   : > { %v4331_v21 = vrot.slane %v6197_v38, 4 }
 0x3c8   : > { %v4305_v37 = vrot.slane %v6187_v46, 4  ;;  %v4308_v39 = vsel %vm232_vm0, %v6187_v46, %v4307_v56  ;;  %v4329_v46 = vrot.slane %v11013_v47, 4 }
 0x3c9   : > { %v4316_v58 = vperm.slane %v4308_v39, %v6559_v6 }
 0x3ca   : > { %v4306_v36 = vsel %vm232_vm0, %v4305_v37, %v6177_v33  ;;  %v4150_v33 = vsel %vm232_vm0, %v4149_v49, %v6181_v1  ;;  %v4330_v4 = vsel %vm232_vm0, %v4329_v46, %v6197_v38 }
 0x3cb   : > { %v9581_v53 = vperm.slane %v4306_v36, %v6559_v6  ;;  %v9584_v20 = vsel %vm232_vm0, %v4365_v0, %v4316_v58  ;;  %v4367_v26 = vrot.slane %v4316_v58, 4  ;;  %v6176_v36 = vunpack.i.l.bf16 %v9530_v63 }
 0x3cc   : > { %v9586_v3 = vpop.permute.xlu0 %6209  ;;  %v9634_v25 = vperm.slane %v4150_v33, %v6559_v6  ;;  %v6221_v58 = vunpack.i.l.bf16 %v9560_v27  ;;  %v9689_v55 = vperm.slane %v4330_v4, %v6559_v6 }
 0x3cd   : > { %v9591_v32 = vsel %vm232_vm0, %v4353_v41, %v9581_v53  ;;  %v9594_v40 = vsel %vm232_vm0, %v4328_v34, %v4367_v26  ;;  %v9596_v42 = vpop.permute.xlu1 %6199  ;;  %v11011_v45 = vunpack.i.l.bf16 %v9586_v3  ;;  %v4137_v34 = vrot.slane %v11012_v2, 4 }
 0x3ce   : > { %11248 = vst [vmem:[#allocation71_spill] sm:$0xff] %v9594_v40  ;;  %v9598_v30 = vpop.permute.xlu2 %4649  ;;  %v11015_v37 = vunpack.i.l.bf16 %v9596_v42  ;;  %v11019_v26 = vunpack.i.h.bf16 %v9586_v3  ;;  %v4185_v47 = vrot.slane %v9634_v25, 4  ;;  %v6202_v41 = vunpack.i.h.bf16 %v9596_v42 }
 0x3cf   : > { %v4173_v0 = vrot.slane %v11011_v45, 4  ;;  %v4138_v56 = vsel %vm232_vm0, %v4137_v34, %v6176_v36  ;;  %v6196_v45 = vunpack.i.l.bf16 %v9566_v17  ;;  %v4139_v62 = vrot.slane %v6176_v36, 4 }
 0x3d0   : > { %v9660_v5 = vperm.slane %v4138_v56, %v6559_v6  ;;  %v4341_v46 = vrot.slane %v11019_v26, 4  ;;  %v4152_v26 = vsel %vm232_vm0, %v11251_v10, %v4151_v9  ;;  %v4343_v29 = vrot.slane %v6202_v41, 4 }
 0x3d1   : > { %v4174_v49 = vsel %vm232_vm0, %v4173_v0, %v11015_v37  ;;  %v4162_v23 = vsel %vm232_vm0, %v4161_v14, %v6196_v45  ;;  %v9701_v10 = vperm.slane %v4152_v26, %v6559_v6  ;;  %v4977_v26 = vrot.slane %v9573_v35, 4 }
 0x3d2   : > { %v9663_v1 = vperm.slane %v4174_v49, %v6559_v6  ;;  %v4186_v38 = vsel %vm232_vm0, %v4185_v47, %v9660_v5  ;;  %v4342_v14 = vsel %vm232_vm0, %v4341_v46, %v6202_v41  ;;  %v4332_v47 = vsel %vm232_vm0, %v11255_v7, %v4331_v21 }
 0x3d3   : > { %11253 = vst [vmem:[#allocation73_spill] sm:$0xff] %v9701_v10  ;;  %v4379_v46 = vrot.slane %v9689_v55, 4  ;;  %v9723_v4 = vperm.slane %v4186_v38, %v6582_v16 }
 0x3d4   : > { %v9610_v57 = vpop.permute.xlu0 %6224  ;;  %v4209_v36 = vrot.slane %v9663_v1, 4 }
 0x3d5   : > { %v9617_v59 = vpop.permute.xlu1 %6214  ;;  %v11017_v63 = vunpack.i.h.bf16 %v9610_v57  ;;  %v11018_v33 = vunpack.i.l.bf16 %v9610_v57  ;;  %11256 = vst [vmem:[#allocation74_spill] sm:$0xff] %v9723_v4 }
 0x3d6   : > { %v9624_v39 = vpop.permute.xlu2 %4655  ;;  %v11021_v11 = vunpack.i.l.bf16 %v9617_v59 }
 0x3d7   : > { %v4261_v34 = vrot.slane %v11017_v63, 4  ;;  %v4249_v0 = vrot.slane %v11018_v33, 4  ;;  %v4965_v9 = vrot.slane %v9624_v39, 4 }
 0x3d9   : > { %v4262_v17 = vsel %vm232_vm0, %v4261_v34, %v6221_v58  ;;  %v4250_v56 = vsel %vm232_vm0, %v4249_v0, %v11021_v11  ;;  %v11250_v34 = vunpack.i.h.bf16 %v9560_v27  ;;  %v9692_v11 = vrot.slane %v6221_v58, 4 }
 0x3da   : > { %v9673_v33 = vperm.slane %v4262_v17, %v6559_v6  ;;  %v4163_v17 = vrot.slane %v6196_v45, 4  ;;  %v9704_v45 = vperm.slane %v4162_v23, %v6559_v6 }
 0x3db   : > { %v9682_v63 = vrot.slane %v11250_v34, 4  ;;  %v9696_v34 = vperm.slane %v4250_v56, %v6559_v6  ;;  %v11257_v56 = vunpack.i.h.bf16 %v9617_v59 }
 0x3dc   : > { %v9657_v37 = vpop.permute.xlu0 %6229  ;;  %v4273_v0 = vrot.slane %v9673_v33, 4 }
 0x3dd   : > { %v9667_v2 = vpop.permute.xlu1 %4657  ;;  %v11252_v8 = vunpack.i.h.bf16 %v9657_v37  ;;  %v11260_v41 = vunpack.i.l.bf16 %v9657_v37 }
 0x3de   : > { %v9678_v49 = vpop.permute.xlu2 %6249  ;;  %v4274_v58 = vsel %vm232_vm0, %v4273_v0, %v9696_v34  ;;  %v4210_v0 = vsel %vm232_vm0, %v4209_v36, %v9704_v45 }
 0x3df   : > { %11249 = vst [vmem:[#allocation72_spill] sm:$0xff] %v9678_v49  ;;  %v4417_v40 = vrot.slane %v11252_v8, 4  ;;  %v11254_v8 = vunpack.i.l.bf16 %v9546_v12  ;;  %v9733_v12 = vperm.slane %v4342_v14, %v6559_v6  ;;  %v9737_v38 = vperm.slane %v4274_v58, %v6582_v16 }
 0x3e0   : > { %v9754_v58 = vperm.slane %v4210_v0, %v6582_v16  ;;  %v4235_v0 = vrot.slane %v9723_v4, 4 }
 0x3e1   : > { %v4164_v23 = vsel %vm232_vm0, %v11254_v8, %v4163_v17  ;;  %v4418_v48 = vsel %vm232_vm0, %v4417_v40, %v11257_v56  ;;  %11259 = vst [vmem:[#allocation76_spill] sm:$0xff] %v9737_v38  ;;  %v4429_v8 = vrot.slane %v11260_v41, 4  ;;  %v9744_v56 = vperm.slane %v4332_v47, %v6559_v6 }
 0x3e2   : > { %v9747_v14 = vperm.slane %v4418_v48, %v6559_v6  ;;  %11262 = vst [vmem:[#allocation78_spill] sm:$0xff] %v9754_v58  ;;  %v4380_v48 = vsel %vm232_vm0, %v9733_v12, %v4379_v46  ;;  %v4297_v41 = vrot.slane %v9737_v38, 4 }
 0x3e3   : > { %11261 = vst [vmem:[#allocation77_spill] sm:$0xff] %v9744_v56 }
 0x3e4   : > { %v4652_v43 = vpop.permute.xlu0 %4651  ;;  %v4443_v46 = vrot.slane %v9747_v14, 4 }
 0x3e5   : > { %v9730_v54 = vpop.permute.xlu1 %6234  ;;  %v4978_v21 = vsel %vm232_vm0, %v4977_v26, %v4652_v43  ;;  %v4979_v17 = vrot.slane %v4652_v43, 4  ;;  %v11263_v26 = vunpack.i.l.bf16 %v9571_v22  ;;  %v4355_v22 = vrot.slane %v9581_v53, 4 }
 0x3e6   : > { %11258 = vst [vmem:[#allocation75_spill] sm:$0xff] %v9730_v54  ;;  %v4648_v7 = vpop.permute.xlu2 %4647  ;;  %v4984_v40 = vperm.slane %v4978_v21, %v6559_v6 }
 0x3e7   : > { %v4966_v36 = vsel %vm232_vm0, %v4965_v9, %v4648_v7  ;;  %v4967_v13 = vrot.slane %v4648_v7, 4  ;;  %v9751_v43 = vsel %vm232_vm0, %v9573_v35, %v4979_v17  ;;  %v4140_v9 = vsel %vm232_vm0, %v11263_v26, %v4139_v62 }
 0x3e8   : > { %v4972_v47 = vperm.slane %v4966_v36, %v6559_v6  ;;  %v4989_v21 = vrot.slane %v4984_v40, 4  ;;  %v11264_v35 = vunpack.i.l.bf16 %v9596_v42  ;;  %v11265_v62 = vunpack.i.h.bf16 %v9586_v3 }
 0x3e9   : > { %v9761_v7 = vsel %vm232_vm0, %v9624_v39, %v4967_v13  ;;  %v11266_v39 = vunpack.i.h.bf16 %v9560_v27  ;;  %v4236_v42 = vsel %vm232_vm0, %v9754_v58, %v4235_v0  ;;  %v9789_v27 = vperm.slane %v4140_v9, %v6559_v6 }
 0x3ea   : > { %v4175_v17 = vrot.slane %v11264_v35, 4  ;;  %v4344_v13 = vsel %vm232_vm0, %v11265_v62, %v4343_v29  ;;  %v4990_v26 = vsel %vm232_vm0, %v4989_v21, %v4972_v47  ;;  %v4298_v35 = vsel %vm232_vm0, 0.0, %v4297_v41 }
 0x3eb   : > { %v4430_v36 = vsel %vm232_vm0, %v4429_v8, %v11266_v39  ;;  %v9783_v38 = vperm.slane %v4990_v26, %v6582_v16  ;;  %v4197_v29 = vrot.slane %v9701_v10, 4  ;;  %11269 = vst [vmem:[#allocation81_spill] sm:$0xff] %v9789_v27  ;;  %v9792_v8 = vperm.slane %v4380_v48, %v6582_v16 }
 0x3ec   : > { %v9785_v53 = vpop.permute.xlu0 %6239  ;;  %v6273_v21 = vpack.i.bf16 %v4298_v35, %v4236_v42  ;;  %v11270_v0 = vunpack.i.l.bf16 %v9586_v3  ;;  %v9800_v39 = vperm.slane %v4430_v36, %v6559_v6  ;;  %v4991_v26 = vrot.slane %v4972_v47, 4 }
 0x3ed   : > { %11267 = vst [vmem:[#allocation79_spill] sm:$0xff] %v9783_v38  ;;  %v9794_v62 = vpop.permute.xlu1 %4653  ;;  %v5013_v4 = vrot.slane %v9783_v38, 4  ;;  %v9804_v58 = vperm.slane %v4164_v23, %v6559_v6  ;;  %v4211_v9 = vrot.slane %v9704_v45, 4  ;;  %v9809_v42 = vperm.slane %v4344_v13, %v6559_v6 }
 0x3ee   : > { %11268 = vst [vmem:[#allocation80_spill] sm:$0xff] %v9785_v53  ;;  %v4176_v41 = vsel %vm232_vm0, %v11270_v0, %v4175_v17  ;;  %6274 = vrot.lane.b32.xlu2 %v6273_v21, %s6483_s26  ;;  %v9814_v3 = vperm.slane %v9584_v20, %v6582_v16  ;;  %v4356_v17 = vsel %vm232_vm0, %v9569_v61, %v4355_v22  ;;  %v4405_v20 = vrot.slane %v9792_v8, 4 }
 0x3ef   : > { %11271 = vst [vmem:[#allocation82_spill] sm:$0xff] %v9804_v58  ;;  %v5014_v47 = vsel %vm232_vm0, 0.0, %v5013_v4  ;;  %v4444_v23 = vsel %vm232_vm0, %v9800_v39, %v4443_v46  ;;  %v9823_v45 = vperm.slane %v9591_v32, %v6582_v16  ;;  %v4198_v13 = vsel %vm232_vm0, %v4197_v29, %v9789_v27 }
 0x3f0   : > { %11272 = vst [vmem:[#allocation83_spill] sm:$0xff] %v9809_v42  ;;  %v9828_v36 = vperm.slane %v4176_v41, %v6559_v6  ;;  %5081 = vrot.lane.b32.xlu1 %v5014_v47, %s6483_s26  ;;  %v4377_v4 = vrot.slane %v9733_v12, 4  ;;  %v11275_v61 = vunpack.i.h.bf16 %v9610_v57  ;;  %v11276_v32 = vunpack.i.l.bf16 %v9617_v59 }
 0x3f1   : > { %11273 = vst [vmem:[#allocation84_spill] sm:$0xff] %v9823_v45  ;;  %v4992_v35 = vsel %vm232_vm0, %v4984_v40, %v4991_v26  ;;  %v4389_v29 = vrot.slane %v9809_v42, 4  ;;  %v4212_v21 = vsel %vm232_vm0, %v9663_v1, %v4211_v9  ;;  %v9844_v0 = vperm.slane %v4356_v17, %v6582_v16 }
 0x3f2   : > { %11274 = vst [vmem:[#allocation85_spill] sm:$0xff] %v9828_v36  ;;  %v4264_v22 = vsel %vm232_vm0, %v11275_v61, %v9692_v11  ;;  %v4251_v46 = vrot.slane %v11276_v32, 4  ;;  %v9847_v12 = vperm.slane %v4444_v23, %v6582_v16  ;;  %v9851_v11 = vperm.slane %v4198_v13, %v6582_v16 }
 0x3f3   : > { %v4811_v47 = vrot.slane %v9598_v30, 4  ;;  %v4809_v40 = vrot.slane %v9667_v2, 4  ;;  %v4221_v26 = vrot.slane %v9828_v36, 4  ;;  %v9857_v61 = vperm.slane %v4264_v22, %v6559_v6 }
 0x3f4   : > { %11277 = vst [vmem:[#allocation86_spill] sm:$0xff] %v9851_v11  ;;  %v9860_v1 = vperm.slane %v4992_v35, %v6582_v16  ;;  %v9864_v17 = vpop.permute.xlu0 %6254  ;;  %v9868_v23 = vsel %vm232_vm0, %v4405_v20, %v9844_v0  ;;  %v9872_v13 = vsel %vm232_vm0, %v4377_v4, %v9689_v55  ;;  %v9875_v32 = vperm.slane %v4212_v21, %v6582_v16  ;;  %v9916_v21 = vpop.permute.xlu2 %6269 }
 0x3f5   : > { %v9862_v9 = vpop.permute.xlu1 %6244  ;;  %v11278_v22 = vunpack.i.l.bf16 %v9610_v57  ;;  %v11033_v48 = vunpack.i.h.bf16 %v9730_v54  ;;  %v9883_v41 = vsel %vm232_vm0, %v4389_v29, %v9744_v56  ;;  %v11279_v20 = vunpack.i.h.bf16 %v9617_v59  ;;  %11282 = vst [vmem:[#allocation87_spill] sm:$0xff] %v9916_v21 }
 0x3f6   : > { %v11035_v10 = vunpack.i.l.bf16 %v9730_v54  ;;  %5089 = vrot.lane.b32.xlu2 %v9860_v1, %s6485_s28  ;;  %v11036_v57 = vunpack.i.h.bf16 %v9678_v49  ;;  %v9899_v59 = vsel %vm232_vm0, %v4221_v26, %v9804_v58  ;;  %v11280_v55 = vunpack.i.h.bf16 %v9657_v37 }
 0x3f7   : > { %v4252_v35 = vsel %vm232_vm0, %v11278_v22, %v4251_v46  ;;  %v4419_v38 = vrot.slane %v11279_v20, 4  ;;  %v4810_v46 = vsel %vm232_vm0, %v4809_v40, %v9598_v30  ;;  %v11281_v30 = vunpack.i.l.bf16 %v9657_v37 }
 0x3f8   : > { %v9903_v22 = vperm.slane %v4252_v35, %v6559_v6  ;;  %v4441_v29 = vrot.slane %v9800_v39, 4  ;;  %v4865_v26 = vrot.slane %v11033_v48, 4  ;;  %v4812_v35 = vsel %vm232_vm0, %v9667_v2, %v4811_v47 }
 0x3f9   : > { %v4420_v4 = vsel %vm232_vm0, %v11280_v55, %v4419_v38  ;;  %v4432_v40 = vsel %vm232_vm0, %v11281_v30, %v9682_v63  ;;  %v4816_v20 = vperm.slane %v4810_v46, %v6559_v6  ;;  %v4697_v38 = vrot.slane %v11035_v10, 4 }
 0x3fa   : > { %v4853_v37 = vrot.slane %v11036_v57, 4  ;;  %v11283_v63 = vunpack.i.l.bf16 %v9678_v49  ;;  %v11284_v48 = vunpack.i.h.bf16 %v9862_v9  ;;  %v4797_v2 = vrot.slane %v9794_v62, 4 }
 0x3fb   : > { %v11285_v10 = vunpack.i.l.bf16 %v9862_v9  ;;  %v9942_v30 = vperm.slane %v4432_v40, %v6559_v6  ;;  %v9945_v36 = vperm.slane %v4812_v35, %v6559_v6  ;;  %v11286_v47 = vunpack.i.h.bf16 %v9785_v53 }
 0x3fc   : > { %v4685_v39 = vrot.slane %v11283_v63, 4  ;;  %v4866_v27 = vsel %vm232_vm0, %v4865_v26, %v11284_v48  ;;  %v4442_v48 = vsel %vm232_vm0, %v4441_v29, %v9747_v14  ;;  %v4821_v26 = vrot.slane %v4816_v20, 4 }
 0x3fd   : > { %v4698_v55 = vsel %vm232_vm0, %v4697_v38, %v11285_v10  ;;  %v9938_v57 = vpop.permute.xlu1 %4645  ;;  %v4877_v46 = vrot.slane %v11286_v47, 4  ;;  %v9952_v58 = vperm.slane %v4866_v27, %v6559_v6  ;;  %v9956_v38 = vpop.permute.xlu0 %6259  ;;  %v11287_v40 = vunpack.i.l.bf16 %v9785_v53 }
 0x3fe   : > { %v4798_v10 = vsel %vm232_vm0, %v4797_v2, %v9938_v57  ;;  %v9961_v35 = vperm.slane %v4698_v55, %v6559_v6  ;;  %v11288_v47 = vunpack.i.l.bf16 %v9916_v21  ;;  %v11289_v49 = vunpack.i.h.bf16 %v9916_v21 }
 0x3ff   : > { %v4709_v63 = vrot.slane %v11287_v40, 4  ;;  %v4804_v29 = vperm.slane %v4798_v10, %v6559_v6  ;;  %v11047_v42 = vunpack.i.l.bf16 %v9864_v17  ;;  %v9973_v56 = vperm.slane %v4442_v48, %v6582_v16 }
 0x400   : > { %v4686_v27 = vsel %vm232_vm0, %v4685_v39, %v11288_v47  ;;  %v4854_v2 = vsel %vm232_vm0, %v4853_v37, %v11289_v49  ;;  %v9979_v11 = vperm.slane %v4420_v4, %v6559_v6  ;;  %v4901_v47 = vrot.slane %v9952_v58, 4 }
 0x401   : > { %11290 = vst [vmem:[#allocation88_spill] sm:$0xff] %v9973_v56  ;;  %v4822_v55 = vsel %vm232_vm0, %v4821_v26, %v4804_v29  ;;  %v4823_v40 = vrot.slane %v4804_v29, 4  ;;  %v4692_v48 = vperm.slane %v4686_v27, %v6559_v6  ;;  %v4733_v26 = vrot.slane %v9961_v35, 4 }
 0x402   : > { %v9984_v49 = vperm.slane %v4822_v55, %v6582_v16  ;;  %v11292_v29 = vunpack.i.h.bf16 %v9864_v17  ;;  %v4860_v10 = vperm.slane %v4854_v2, %v6559_v6  ;;  %v4721_v4 = vrot.slane %v11047_v42, 4 }
 0x403   : > { %v4824_v60 = vsel %vm232_vm0, %v4816_v20, %v4823_v40  ;;  %v11293_v37 = vunpack.i.l.bf16 %v9956_v38  ;;  %v11294_v52 = vunpack.i.h.bf16 %v9956_v38  ;;  %v4465_v2 = vrot.slane %v9973_v56, 4 }
 0x404   : > { %11291 = vst [vmem:[#allocation89_spill] sm:$0xff] %v9984_v49  ;;  %v4889_v14 = vrot.slane %v11292_v29, 4  ;;  %v4845_v55 = vrot.slane %v9984_v49, 4  ;;  %v4902_v42 = vsel %vm232_vm0, %v4901_v47, %v4860_v10  ;;  %v10009_v20 = vperm.slane %v4824_v60, %v6582_v16 }
 0x405   : > { %v9994_v39 = vpop.permute.xlu1 %6264  ;;  %v4710_v27 = vsel %vm232_vm0, %v4709_v63, %v11293_v37  ;;  %v4878_v53 = vsel %vm232_vm0, %v4877_v46, %v11294_v52  ;;  %v10014_v63 = vperm.slane %v9751_v43, %v6559_v6  ;;  %v4734_v37 = vsel %vm232_vm0, %v4733_v26, %v4692_v48 }
 0x406   : > { %v6267_v29 = vunpack.i.h.bf16 %v9994_v39  ;;  %v11050_v54 = vunpack.i.l.bf16 %v9994_v39  ;;  %v4846_v40 = vsel %vm232_vm0, 0.0, %v4845_v55  ;;  %v10021_v46 = vperm.slane %v9872_v13, %v6582_v16  ;;  %5033 = vrot.lane.b32.xlu1 %v10009_v20, %s6485_s28 }
 0x407   : > { %5025 = vrot.lane.b32.xlu0 %v4846_v40, %s6483_s26  ;;  %v4716_v47 = vperm.slane %v4710_v27, %v6559_v6  ;;  %v4884_v60 = vperm.slane %v4878_v53, %v6559_v6  ;;  %v10036_v13 = vperm.slane %v4902_v42, %v6582_v16  ;;  %v4403_v53 = vrot.slane %v9823_v45, 4 }
 0x408   : > { %v4890_v52 = vsel %vm232_vm0, %v4889_v14, %v6267_v29  ;;  %v4722_v43 = vsel %vm232_vm0, %v4721_v4, %v11050_v54  ;;  %v10033_v14 = vperm.slane %v9761_v7, %v6559_v6  ;;  %v4735_v27 = vrot.slane %v4692_v48, 4 }
 0x409   : > { %v4896_v55 = vperm.slane %v4890_v52, %v6559_v6  ;;  %v4728_v26 = vperm.slane %v4722_v43, %v6559_v6  ;;  %v10041_v40 = vperm.slane %v4734_v37, %v6582_v16  ;;  %v4466_v4 = vsel %vm232_vm0, 0.0, %v4465_v2 }
 0x40a   : > { %v4903_v54 = vrot.slane %v4860_v10, 4  ;;  %v4404_v7 = vsel %vm232_vm0, %v10021_v46, %v4403_v53  ;;  %v11295_v56 = vrot.slane %v9696_v34, 4  ;;  %v4759_v43 = vrot.slane %v4716_v47, 4 }
 0x40b   : > { %v4925_v52 = vrot.slane %v4896_v55, 4  ;;  %v4757_v49 = vrot.slane %v4728_v26, 4  ;;  %v4927_v21 = vrot.slane %v4884_v60, 4  ;;  %v11296_v37 = vrot.slane %v9660_v5, 4 }
 0x40c   : > { %v4276_v42 = vsel %vm232_vm0, %v9673_v33, %v11295_v56  ;;  %v6278_v2 = vpack.i.bf16 %v4466_v4, %v4404_v7  ;;  %v4951_v34 = vrot.slane %v10036_v13, 4  ;;  %v4799_v53 = vrot.slane %v9938_v57, 4 }
 0x40d   : > { %v4926_v48 = vsel %vm232_vm0, %v4925_v52, %v4884_v60  ;;  %v4188_v45 = vsel %vm232_vm0, %v9634_v25, %v11296_v37  ;;  %v4758_v10 = vsel %vm232_vm0, %v4757_v49, %v4716_v47  ;;  %v4783_v56 = vrot.slane %v10041_v40, 4 }
 0x40e   : > { %v10057_v50 = vperm.slane %v4926_v48, %v6582_v16  ;;  %v10062_v33 = vperm.slane %v4758_v10, %v6582_v16  ;;  %v4284_v5 = vperm.slane %v4276_v42, %v6582_v16  ;;  %v4736_v25 = vsel %vm232_vm0, %v9961_v35, %v4735_v27 }
 0x40f   : > { %v4904_v49 = vsel %vm232_vm0, %v9952_v58, %v4903_v54  ;;  %6279 = vrot.lane.b32.xlu0 %v6278_v2, %s6483_s26  ;;  %v5015_v57 = vrot.slane %v9860_v1, 4  ;;  %v4928_v60 = vsel %vm232_vm0, %v4896_v55, %v4927_v21  ;;  %v4760_v52 = vsel %vm232_vm0, %v4728_v26, %v4759_v43 }
 0x410   : > { %v4952_v47 = vsel %vm232_vm0, %v10057_v50, %v4951_v34  ;;  %v11297_v4 = vpack.i.bf16 %v9847_v12, %v9868_v23  ;;  %v4784_v35 = vsel %vm232_vm0, %v10062_v33, %v4783_v56  ;;  %v4237_v54 = vrot.slane %v9875_v32, 4 }
 0x411   : > { %v5003_v58 = vrot.slane %v10033_v14, 4  ;;  %v5001_v27 = vrot.slane %v10014_v63, 4  ;;  %v6293_v7 = vpack.i.bf16 %v4952_v47, %v4784_v35  ;;  %v4196_v1 = vperm.slane %v4188_v45, %v6582_v16 }
 0x412   : > { %6289 = vrot.lane.b32.xlu1 %v11297_v4, %s6485_s28  ;;  %v10087_v21 = vperm.slane %v4736_v25, %v6582_v16  ;;  %v10090_v55 = vperm.slane %v4904_v49, %v6582_v16  ;;  %v4800_v23 = vsel %vm232_vm0, %v9794_v62, %v4799_v53  ;;  %v4299_v26 = vrot.slane %v4284_v5, 4 }
 0x413   : > { %v4891_v42 = vrot.slane %v6267_v29, 4  ;;  %v10095_v43 = vperm.slane %v4928_v60, %v6582_v16  ;;  %v10098_v48 = vperm.slane %v4760_v52, %v6582_v16  ;;  %6294 = vrot.lane.b32.xlu2 %v6293_v7, %s6483_s26  ;;  %v5016_v45 = vsel %vm232_vm0, 0.0, %v5015_v57 }
 0x414   : > { %v4238_v37 = vsel %vm232_vm0, %v4237_v54, %v4196_v1  ;;  %v11298_v10 = vrot.slane %v9857_v61, 4  ;;  %v4407_v62 = vrot.slane %v9844_v0, 4  ;;  %v4467_v29 = vrot.slane %v9847_v12, 4 }
 0x415   : > { %v6283_v34 = vpack.i.bf16 %v4284_v5, %v4238_v37  ;;  %v4239_v53 = vrot.slane %v4196_v1, 4  ;;  %v4396_v56 = vperm.slane %v9883_v41, %v6582_v16  ;;  %v11299_v25 = vrot.slane %v9942_v30, 4 }
 0x416   : > { %v4286_v2 = vsel %vm232_vm0, %v11298_v10, %v9903_v22  ;;  %v4300_v47 = vsel %vm232_vm0, 0.0, %v4299_v26  ;;  %v10118_v57 = vsel %vm232_vm0, %v9792_v8, %v4407_v62  ;;  %v10121_v0 = vsel %vm232_vm0, 0.0, %v4467_v29 }
 0x417   : > { %v4454_v49 = vsel %vm232_vm0, %v11299_v25, %v9979_v11  ;;  %6284 = vrot.lane.b32.xlu0 %v6283_v34, %s6485_s28  ;;  %v4785_v41 = vrot.slane %v10098_v48, 4  ;;  %v4953_v5 = vrot.slane %v10095_v43, 4  ;;  %v6303_v60 = vpack.i.bf16 %v10121_v0, %v10118_v57 }
 0x418   : > { %v10124_v12 = vperm.slane %v4454_v49, %v6582_v16  ;;  %v4409_v52 = vrot.slane %v4396_v56, 4  ;;  %v4240_v8 = vsel %vm232_vm0, %v9875_v32, %v4239_v53  ;;  %v10136_v4 = vsel %vm232_vm0, %v5001_v27, %v10033_v14 }
 0x419   : > { %v4411_v35 = vrot.slane %v9814_v3, 4  ;;  %v10141_v7 = vperm.slane %v4800_v23, %v6559_v6  ;;  %v11300_v1 = vunpack.i.l.bf16 %v9994_v39  ;;  %v6298_v37 = vpack.i.bf16 %v4300_v47, %v4240_v8 }
 0x41a   : > { %5097 = vrot.lane.b32.xlu1 %v5016_v45, %s6482_s25  ;;  %v4469_v54 = vrot.slane %v10124_v12, 4  ;;  %v10147_v45 = vsel %vm232_vm0, %v4409_v52, %v9814_v3  ;;  %v4847_v32 = vrot.slane %v10009_v20, 4  ;;  %v11301_v23 = vunpack.i.h.bf16 %v9862_v9 }
 0x41b   : > { %v4723_v26 = vrot.slane %v11300_v1, 4  ;;  %v6318_v14 = vpack.i.bf16 %v10124_v12, %v10147_v45  ;;  %v10153_v27 = vsel %vm232_vm0, %v4396_v56, %v4411_v35  ;;  %6299 = vrot.lane.b32.xlu2 %v6298_v37, %s6482_s25  ;;  %v4786_v3 = vsel %vm232_vm0, %v4785_v41, %v10087_v21 }
 0x41c   : > { %v10156_v10 = vsel %vm232_vm0, 0.0, %v4469_v54  ;;  %v4867_v39 = vrot.slane %v11301_v23, 4  ;;  %v4954_v20 = vsel %vm232_vm0, %v4953_v5, %v10090_v55  ;;  %v11302_v29 = vunpack.i.l.bf16 %v9862_v9 }
 0x41d   : > { %v6333_v62 = vpack.i.bf16 %v10156_v10, %v10153_v27  ;;  %v11303_v53 = vunpack.i.h.bf16 %v9956_v38  ;;  %v11304_v25 = vunpack.i.l.bf16 %v9956_v38  ;;  %v11305_v47 = vunpack.i.h.bf16 %v9864_v17 }
 0x41e   : > { %v4699_v34 = vrot.slane %v11302_v29, 4  ;;  %v11306_v41 = vunpack.i.l.bf16 %v9864_v17  ;;  %v10181_v8 = vperm.slane %v9899_v59, %v6582_v16  ;;  %v10185_v9 = vsel %vm232_vm0, %v10014_v63, %v5003_v58 }
 0x41f   : > { %v4879_v56 = vrot.slane %v11303_v53, 4  ;;  %v4711_v49 = vrot.slane %v11304_v25, 4  ;;  %v4892_v52 = vsel %vm232_vm0, %v11305_v47, %v4891_v42  ;;  %v11307_v35 = vunpack.i.l.bf16 %v9442_v28  ;;  %v11317_v53 = vld [vmem:[#allocation75_spill] sm:$0xff] }
 0x420   : > { %v4724_v5 = vsel %vm232_vm0, %v11306_v41, %v4723_v26  ;;  %v6308_v54 = vpack.i.bf16 %v4954_v20, %v4786_v3  ;;  %v4848_v42 = vsel %vm232_vm0, 0.0, %v4847_v32  ;;  %v11308_v17 = vrot.slane %v9945_v36, 4  ;;  %v11314_v3 = vld [vmem:[#allocation63_spill] sm:$0xff] }
 0x421   : > { %v3486_v38 = vsel %vm695_vm7, %v9451_v24, %v11307_v35  ;;  %v11309_v59 = vunpack.i.l.bf16 %v9516_v51  ;;  %5041 = vrot.lane.b32.xlu0 %v4848_v42, %s6482_s25  ;;  %v11310_v63 = vunpack.i.h.bf16 %v9442_v28  ;;  %v11311_v58 = vunpack.i.l.bf16 %v9463_v19  ;;  %v11315_v20 = vld [vmem:[#allocation87_spill] sm:$0xff] }
 0x422   : > { %v4834_v1 = vsel %vm232_vm0, %v11308_v17, %v10141_v7  ;;  %v11312_v32 = vunpack.i.l.bf16 %v9467_v18  ;;  %v11313_v51 = vunpack.i.h.bf16 %v9467_v18  ;;  %v11316_v29 = vunpack.i.l.bf16 %v11315_v20  ;;  %6309 = vrot.lane.b32.xlu1 %v6308_v54, %s6485_s28 }
 0x423   : > { %v4043_v26 = vsel %vm689_vm5, %v9512_v31, %v11309_v59  ;;  %v3487_v24 = vsel %vm695_vm7, %v9454_v15, %v11310_v63  ;;  %v3488_v37 = vsel %vm698_vm8, %v3486_v38, %v11311_v58  ;;  %v11318_v25 = vunpack.i.l.bf16 %v11317_v53  ;;  %v11321_v63 = vld [vmem:[#allocation80_spill] sm:$0xff] }
 0x424   : > { %v3502_v23 = vsel %vm698_vm8, %v9488_v44, %v11312_v32  ;;  %v3503_v31 = vsel %vm698_vm8, %v11314_v3, %v11313_v51  ;;  %v4687_v28 = vrot.slane %v11316_v29, 4  ;;  %v11319_v47 = vunpack.i.h.bf16 %v11317_v53  ;;  %v11329_v53 = vld [vmem:[#allocation60_spill] sm:$0xff] }
 0x425   : > { %v4700_v15 = vsel %vm232_vm0, %v11318_v25, %v4699_v34  ;;  %v10225_v35 = vperm.slane %v4724_v5, %v6559_v6  ;;  %v4840_v18 = vperm.slane %v4834_v1, %v6582_v16  ;;  %v4241_v44 = vrot.slane %v10181_v8, 4 }
 0x426   : > { %v4868_v41 = vsel %vm232_vm0, %v11319_v47, %v4867_v39  ;;  %v11320_v38 = vunpack.i.h.bf16 %v9463_v19  ;;  %v5194_v17 = vrot.slane %v3488_v37, 4  ;;  %v10234_v34 = vperm.slane %v4892_v52, %v6559_v6  ;;  %v11325_v37 = vld [vmem:[#allocation57_spill] sm:$0xff]  ;;  %v11331_v47 = vld [vmem:[#allocation58_spill] sm:$0xff] }
 0x427   : > { %v10237_v59 = vperm.slane %v4286_v2, %v6582_v16  ;;  %v5195_v5 = vrot.slane %v3502_v23, 4  ;;  %v11322_v58 = vunpack.i.l.bf16 %v11321_v63  ;;  %v11323_v1 = vunpack.i.h.bf16 %v11321_v63  ;;  %5049 = vrot.lane.b32.xlu2 %v4840_v18, %s6484_s27 }
 0x428   : > { %v3489_v42 = vsel %vm698_vm8, %v3487_v24, %v11320_v38  ;;  %v5198_v19 = vrot.slane %v3503_v31, 4  ;;  %v11324_v24 = vld [vmem:[#allocation65_spill] sm:$0xff]  ;;  %v4769_v2 = vrot.slane %v10225_v35, 4  ;;  %v11326_v51 = vunpack.i.l.bf16 %v11325_v37 }
 0x429   : > { %v5196_v39 = vrot.slane %v3489_v42, 4  ;;  %v4712_v54 = vsel %vm232_vm0, %v11322_v58, %v4711_v49  ;;  %v4880_v32 = vsel %vm232_vm0, %v11323_v1, %v4879_v56  ;;  %v10248_v52 = vsel %vm5165_vm9, %v11324_v24, %v5194_v17  ;;  %v11327_v49 = vld [vmem:[#allocation67_spill] sm:$0xff]  ;;  %v11328_v56 = vld [vmem:[#allocation86_spill] sm:$0xff]  ;;  %6304 = vrot.lane.b32.xlu0 %v6303_v60, %s6482_s25 }
 0x42a   : > { %v4045_v23 = vsel %vm692_vm6, %v4043_v26, %v11326_v51  ;;  %v10259_v29 = vsel %vm5165_vm9, %v11327_v49, %v5195_v5  ;;  %v4242_v31 = vsel %vm232_vm0, %v4241_v44, %v11328_v56  ;;  %v11330_v25 = vunpack.i.h.bf16 %v11329_v53  ;;  %v11333_v58 = vld [vmem:[#allocation62_spill] sm:$0xff] }
 0x42b   : > { %v10255_v3 = vsel %vm5165_vm9, %v5194_v17, %v5196_v39  ;;  %v11332_v42 = vunpack.i.l.bf16 %v11329_v53  ;;  %v10271_v26 = vsel %vm5165_vm9, %v5195_v5, %v5198_v19  ;;  %v4937_v17 = vrot.slane %v10234_v34, 4 }
 0x42c   : > { %v4048_v38 = vsel %vm695_vm7, %v11331_v47, %v11330_v25  ;;  %v6313_v39 = vpack.i.bf16 %v10237_v59, %v4242_v31  ;;  %v11334_v1 = vunpack.i.h.bf16 %v11333_v58  ;;  %v11335_v24 = vunpack.i.l.bf16 %v11333_v58  ;;  %v11340_v47 = vld [vmem:[#allocation72_spill] sm:$0xff] }
 0x42d   : > { %v4047_v63 = vsel %vm695_vm7, %v4045_v23, %v11332_v42  ;;  %v4287_v51 = vrot.slane %v9903_v22, 4  ;;  %v11336_v23 = vunpack.i.h.bf16 %v11315_v20  ;;  %v10289_v19 = vperm.slane %v4700_v15, %v6559_v6  ;;  %v11337_v20 = vld [vmem:[#allocation77_spill] sm:$0xff] }
 0x42e   : > { %v10278_v44 = vsel %vm698_vm8, %v4048_v38, %v11334_v1  ;;  %v10283_v37 = vsel %vm698_vm8, %v4047_v63, %v11335_v24  ;;  %v10292_v49 = vperm.slane %v4712_v54, %v6559_v6  ;;  %v10299_v31 = vperm.slane %v4868_v41, %v6559_v6  ;;  %6314 = vrot.lane.b32.xlu1 %v6313_v39, %s6484_s27  ;;  %v11339_v54 = vld [vmem:[#allocation83_spill] sm:$0xff] }
 0x42f   : > { %v4855_v5 = vrot.slane %v11336_v23, 4  ;;  %v10302_v53 = vperm.slane %v4880_v32, %v6559_v6  ;;  %v11338_v15 = vrot.slane %v11337_v20, 4  ;;  %v11341_v38 = vunpack.i.l.bf16 %v11340_v47  ;;  %6319 = vrot.lane.b32.xlu2 %v6318_v14, %s6484_s27  ;;  %v11343_v63 = vld [vmem:[#allocation59_spill] sm:$0xff] }
 0x430   : > { %v4770_v22 = vsel %vm232_vm0, %v4769_v2, %v10292_v49  ;;  %v5008_v60 = vperm.slane %v10136_v4, %v6582_v16  ;;  %v11342_v41 = vunpack.i.h.bf16 %v11340_v47  ;;  %v4745_v2 = vrot.slane %v10289_v19, 4 }
 0x431   : > { %v4392_v25 = vsel %vm232_vm0, %v11339_v54, %v11338_v15  ;;  %v4688_v57 = vsel %vm232_vm0, %v11341_v38, %v4687_v28  ;;  %v4938_v0 = vsel %vm232_vm0, %v4937_v17, %v10302_v53  ;;  %v4849_v42 = vrot.slane %v4840_v18, 4 }
 0x432   : > { %v4856_v32 = vsel %vm232_vm0, %v11342_v41, %v4855_v5  ;;  %v10328_v28 = vsel %vm232_vm0, %v9857_v61, %v4287_v51  ;;  %v6162_v17 = vunpack.i.h.bf16 %v11343_v63  ;;  %v6161_v4 = vunpack.i.l.bf16 %v11343_v63  ;;  %v11344_v61 = vld [vmem:[#allocation61_spill] sm:$0xff]  ;;  %v11345_v5 = vld [vmem:[#allocation82_spill] sm:$0xff]  ;;  %5105 = vrot.lane.b32.xlu0 %v5008_v60, %s6484_s27 }
 0x433   : > { %v4913_v39 = vrot.slane %v10299_v31, 4  ;;  %v10334_v58 = vperm.slane %v4770_v22, %v6582_v16  ;;  %v4400_v1 = vperm.slane %v4392_v25, %v6582_v16  ;;  %v4455_v24 = vrot.slane %v9979_v11, 4  ;;  %v11346_v25 = vld [vmem:[#allocation71_spill] sm:$0xff] }
 0x434   : > { %v10339_v12 = vperm.slane %v4688_v57, %v6559_v6  ;;  %v10342_v45 = vperm.slane %v4938_v0, %v6582_v16  ;;  %v6167_v14 = vunpack.i.h.bf16 %v11344_v61  ;;  %v10346_v18 = vperm.slane %v4856_v32, %v6559_v6 }
 0x435   : > { %v5017_v51 = vrot.slane %v5008_v60, 4  ;;  %v4787_v23 = vrot.slane %v10087_v21, 4  ;;  %v4223_v22 = vrot.slane %v11345_v5, 4  ;;  %v4850_v20 = vsel %vm232_vm0, 0.0, %v4849_v42 }
 0x436   : > { %v4955_v11 = vrot.slane %v10090_v55, 4  ;;  %v4746_v15 = vsel %vm232_vm0, %v4745_v2, %v10339_v12  ;;  %5057 = vrot.lane.b32.xlu1 %v4850_v20, %s6487_s30  ;;  %v4789_v54 = vrot.slane %v10334_v58, 4  ;;  %v4914_v21 = vsel %vm232_vm0, %v4913_v39, %v10346_v18  ;;  %v11347_v2 = vld [vmem:[#allocation85_spill] sm:$0xff] }
 0x437   : > { %v4788_v6 = vsel %vm232_vm0, %v10098_v48, %v4787_v23  ;;  %v4376_v47 = vperm.slane %v11346_v25, %v6582_v16  ;;  %v4957_v55 = vrot.slane %v10342_v45, 4  ;;  %v4413_v57 = vrot.slane %v4400_v1, 4 }
 0x438   : > { %v4956_v38 = vsel %vm232_vm0, %v10095_v43, %v4955_v11  ;;  %v4456_v0 = vsel %vm232_vm0, %v9942_v30, %v4455_v24  ;;  %v6166_v60 = vunpack.i.l.bf16 %v11344_v61  ;;  %v5018_v48 = vsel %vm232_vm0, 0.0, %v5017_v51  ;;  %v11349_v11 = vld [vmem:[#allocation64_spill] sm:$0xff] }
 0x439   : > { %v4752_v41 = vperm.slane %v4746_v15, %v6582_v16  ;;  %v10372_v32 = vperm.slane %v4456_v0, %v6582_v16  ;;  %v4224_v42 = vsel %vm232_vm0, %v11347_v2, %v4223_v22  ;;  %5113 = vrot.lane.b32.xlu2 %v5018_v48, %s6487_s30  ;;  %v4920_v43 = vperm.slane %v4914_v21, %v6582_v16  ;;  %v11348_v22 = vld [vmem:[#allocation69_spill] sm:$0xff] }
 0x43a   : > { %v10379_v63 = vsel %vm232_vm0, %v4413_v57, %v4376_v47  ;;  %v4415_v30 = vrot.slane %v4376_v47, 4  ;;  %v6323_v39 = vpack.i.bf16 %v4956_v38, %v4788_v6  ;;  %v4060_v20 = vsel %vm692_vm6, %v11348_v22, %v6162_v17  ;;  %v11350_v47 = vld [vmem:[#allocation81_spill] sm:$0xff]  ;;  %v11351_v17 = vld [vmem:[#allocation70_spill] sm:$0xff] }
 0x43b   : > { %v4790_v24 = vsel %vm232_vm0, %v4789_v54, %v4752_v41  ;;  %v6348_v61 = vpack.i.bf16 %v10372_v32, %v10379_v63  ;;  %v4471_v51 = vrot.slane %v10372_v32, 4  ;;  %v4958_v23 = vsel %vm232_vm0, %v4957_v55, %v4920_v43 }
 0x43c   : > { %v10387_v5 = vsel %vm232_vm0, %v4400_v1, %v4415_v30  ;;  %v4059_v15 = vsel %vm692_vm6, %v11349_v11, %v6161_v4  ;;  %v4301_v6 = vrot.slane %v10237_v59, 4  ;;  %v4062_v21 = vsel %vm695_vm7, %v4060_v20, %v6167_v14  ;;  %6324 = vrot.lane.b32.xlu0 %v6323_v39, %s6482_s25 }
 0x43d   : > { %v10395_v54 = vsel %vm232_vm0, 0.0, %v4471_v51  ;;  %v4061_v25 = vsel %vm695_vm7, %v4059_v15, %v6166_v60  ;;  %v4199_v38 = vrot.slane %v11350_v47, 4  ;;  %v6172_v55 = vunpack.i.h.bf16 %v11351_v17  ;;  %v11352_v60 = vld [vmem:[#allocation73_spill] sm:$0xff] }
 0x43e   : > { %v6363_v1 = vpack.i.bf16 %v10395_v54, %v10387_v5  ;;  %v6171_v4 = vunpack.i.l.bf16 %v11351_v17  ;;  %v4232_v59 = vperm.slane %v4224_v42, %v6582_v16  ;;  %6334 = vrot.lane.b32.xlu1 %v6333_v62, %s6487_s30  ;;  %v6338_v14 = vpack.i.bf16 %v4958_v23, %v4790_v24 }
 0x43f   : > { %v4243_v57 = vrot.slane %v11328_v56, 4  ;;  %v4302_v0 = vsel %vm232_vm0, 0.0, %v4301_v6  ;;  %v4200_v48 = vsel %vm232_vm0, %v11352_v60, %v4199_v38  ;;  %v4835_v2 = vrot.slane %v10141_v7, 4 }
 0x440   : > { %v4245_v30 = vrot.slane %v4232_v59, 4  ;;  %v10419_v39 = vsel %vm698_vm8, %v4062_v21, %v6172_v55  ;;  %v10422_v27 = vsel %vm698_vm8, %v4061_v25, %v6171_v4  ;;  %v4296_v62 = vperm.slane %v10328_v28, %v6582_v16 }
 0x441   : > { %6339 = vrot.lane.b32.xlu2 %v6338_v14, %s6484_s27  ;;  %v4244_v42 = vsel %vm232_vm0, %v10181_v8, %v4243_v57  ;;  %v5012_v56 = vperm.slane %v10185_v9, %v6582_v16  ;;  %v4208_v7 = vperm.slane %v4200_v48, %v6582_v16  ;;  %v4836_v8 = vsel %vm232_vm0, %v9945_v36, %v4835_v2  ;;  %v11353_v48 = vld [vmem:[#allocation79_spill] sm:$0xff] }
 0x442   : > { %v6328_v10 = vpack.i.bf16 %v4302_v0, %v4244_v42  ;;  %v4791_v23 = vrot.slane %v4752_v41, 4  ;;  %v4959_v5 = vrot.slane %v4920_v43, 4  ;;  %v4844_v22 = vperm.slane %v4836_v8, %v6582_v16 }
 0x443   : > { %v4246_v24 = vsel %vm232_vm0, %v4245_v30, %v4208_v7  ;;  %v4747_v20 = vrot.slane %v10339_v12, 4  ;;  %v4915_v36 = vrot.slane %v10346_v18, 4  ;;  %v4303_v41 = vrot.slane %v4296_v62, 4 }
 0x444   : > { %6329 = vrot.lane.b32.xlu0 %v6328_v10, %s6487_s30  ;;  %v6343_v51 = vpack.i.bf16 %v4296_v62, %v4246_v24  ;;  %v4792_v9 = vsel %vm232_vm0, %v10334_v58, %v4791_v23  ;;  %v4960_v28 = vsel %vm232_vm0, %v10342_v45, %v4959_v5  ;;  %v4851_v15 = vrot.slane %v4844_v22, 4 }
 0x445   : > { %v6353_v11 = vpack.i.bf16 %v4960_v28, %v4792_v9  ;;  %v4771_v43 = vrot.slane %v10292_v49, 4  ;;  %v4939_v6 = vrot.slane %v10302_v53, 4  ;;  %v4748_v58 = vsel %vm232_vm0, %v10289_v19, %v4747_v20 }
 0x446   : > { %5121 = vrot.lane.b32.xlu1 %v5012_v56, %s6488_s4  ;;  %v4916_v45 = vsel %vm232_vm0, %v10299_v31, %v4915_v36  ;;  %v4852_v12 = vsel %vm232_vm0, 0.0, %v4851_v15  ;;  %v4247_v18 = vrot.slane %v4208_v7, 4  ;;  %v4304_v54 = vsel %vm232_vm0, 0.0, %v4303_v41  ;;  %v11354_v15 = vld [vmem:[#allocation84_spill] sm:$0xff] }
 0x447   : > { %v4940_v49 = vsel %vm232_vm0, %v10234_v34, %v4939_v6  ;;  %v4772_v53 = vsel %vm232_vm0, %v10225_v35, %v4771_v43  ;;  %v4756_v21 = vperm.slane %v4748_v58, %v6582_v16  ;;  %v4924_v19 = vperm.slane %v4916_v45, %v6582_v16  ;;  %v11355_v43 = vld [vmem:[#allocation88_spill] sm:$0xff] }
 0x448   : > { %v4248_v25 = vsel %vm232_vm0, %v4232_v59, %v4247_v18  ;;  %v4780_v47 = vperm.slane %v4772_v53, %v6582_v16  ;;  %v4948_v38 = vperm.slane %v4940_v49, %v6582_v16  ;;  %v5019_v17 = vrot.slane %v5012_v56, 4  ;;  %v6275_v57 = vpop.permute.xlu2 %6274 }
 0x449   : > { %6344 = vrot.lane.b32.xlu2 %v6343_v51, %s6488_s4  ;;  %v6358_v31 = vpack.i.bf16 %v4304_v54, %v4248_v25  ;;  %v4795_v34 = vrot.slane %v4756_v21, 4  ;;  %v4963_v35 = vrot.slane %v4924_v19, 4  ;;  %v4781_v30 = vrot.slane %v10062_v33, 4 }
 0x44a   : > { %v5020_v14 = vsel %vm232_vm0, 0.0, %v5019_v17  ;;  %v4793_v32 = vrot.slane %v4780_v47, 4  ;;  %v4961_v63 = vrot.slane %v4948_v38, 4  ;;  %v4949_v10 = vrot.slane %v10057_v50, 4 }
 0x44b   : > { %v4796_v55 = vsel %vm232_vm0, %v4780_v47, %v4795_v34  ;;  %v4964_v4 = vsel %vm232_vm0, %v4948_v38, %v4963_v35  ;;  %v4782_v8 = vsel %vm232_vm0, %v4781_v30, %v10041_v40  ;;  %v4401_v50 = vrot.slane %v10021_v46, 4  ;;  %v11358_v38 = vld [vmem:[#allocation76_spill] sm:$0xff] }
 0x44c   : > { %5065 = vrot.lane.b32.xlu0 %v4844_v22, %s6488_s4  ;;  %v6373_v59 = vpack.i.bf16 %v4964_v4, %v4796_v55  ;;  %v4794_v16 = vsel %vm232_vm0, %v4793_v32, %v4756_v21  ;;  %v4950_v24 = vsel %vm232_vm0, %v4949_v10, %v10036_v13  ;;  %v6277_v54 = vunpack.i.h.bf16 %v6275_v57  ;;  %v11357_v21 = vld [vmem:[#allocation74_spill] sm:$0xff] }
 0x44d   : > { %v4402_v13 = vsel %vm232_vm0, %v4401_v50, %v11354_v15  ;;  %v6276_v49 = vunpack.i.l.bf16 %v6275_v57 }
 0x44e   : > { %6354 = vrot.lane.b32.xlu1 %v6353_v11, %s6487_s30  ;;  %v4586_v34 = vsel %vm680_vm2, %v11358_v38, %v6277_v54  ;;  %v11367_v54 = vld [vmem:[#allocation8_spill] sm:$0xff] }
 0x450   : > { %v5090_v60 = vpop.permute.xlu2 %5089 }
 0x451   : > { %5073 = vrot.lane.b32.xlu2 %v4852_v12, %s6486_s29  ;;  %v11356_v12 = vld [vmem:[#allocation78_spill] sm:$0xff] }
 0x452   : > { %v4233_v18 = vrot.slane %v11356_v12, 4 }
 0x454   : > { %6349 = vrot.lane.b32.xlu0 %v6348_v61, %s6488_s4  ;;  %v4962_v61 = vsel %vm232_vm0, %v4961_v63, %v4924_v19  ;;  %v4234_v19 = vsel %vm232_vm0, %v4233_v18, %v11357_v21  ;;  %v11368_v21 = vld [vmem:[#allocation10_spill] sm:$0xff] }
 0x455   : > { %v6368_v0 = vpack.i.bf16 %v4962_v61, %v4794_v16  ;;  %v4585_v35 = vsel %vm680_vm2, %v4234_v19, %v6276_v49  ;;  %v5467_v49 = vunpack.i.h.bf16 %v11367_v54  ;;  %v5457_v19 = vunpack.i.h.bf16 %v11368_v21 }
 0x456   : > { %6359 = vrot.lane.b32.xlu1 %v6358_v31, %s6486_s29 }
 0x459   : > { %6364 = vrot.lane.b32.xlu2 %v6363_v1, %s6486_s29 }
 0x45c   : > { %5129 = vrot.lane.b32.xlu0 %v5020_v14, %s6486_s29 }
 0x45e   : > { %6374 = vrot.lane.b32.xlu1 %v6373_v59, %s6486_s29 }
 0x462   : > { %v5082_v1 = vpop.permute.xlu1 %5081 }
 0x463   : > { %v5148_v2 = vsel %vm680_vm2, %v11353_v48, %v5082_v1 }
 0x464   : > { %6369 = vrot.lane.b32.xlu0 %v6368_v0, %s6488_s4  ;;  %v10479_v42 = vsel %vm683_vm3, %v5148_v2, %v5090_v60 }
 0x46d   : > { %v6295_v62 = vpop.permute.xlu2 %6294 }
 0x46e   : > { %v6297_v56 = vunpack.i.h.bf16 %v6295_v62  ;;  %v6296_v7 = vunpack.i.l.bf16 %v6295_v62  ;;  %v11359_v62 = vld [vmem:[#allocation3_spill] sm:$0xff] }
 0x470   : > { %v10488_v51 = vsel %vm680_vm2, %v4950_v24, %v6297_v56  ;;  %v10491_v23 = vsel %vm680_vm2, %v4782_v8, %v6296_v7  ;;  %v328_v56 = vrot.slane %v11359_v62, 4  ;;  %v11360_v8 = vld [vmem:[#allocation6_spill] sm:$0xff] }
 0x471   : > { %v496_v24 = vrot.slane %v11360_v8, 4 }
 0x475   : > { %v6300_v22 = vpop.permute.xlu2 %6299 }
 0x476   : > { %v6302_v17 = vunpack.i.h.bf16 %v6300_v22  ;;  %v6301_v55 = vunpack.i.l.bf16 %v6300_v22  ;;  %v11361_v22 = vld [vmem:[#allocation9_spill] sm:$0xff] }
 0x477   : > { %v5447_v50 = vunpack.i.h.bf16 %v11361_v22 }
 0x478   : > { %v10493_v33 = vpop.permute.xlu1 %5033 }
 0x479   : > { %v5026_v5 = vpop.permute.xlu0 %5025 }
 0x481   : > { %v6280_v9 = vpop.permute.xlu0 %6279  ;;  %v10498_v41 = vpop.permute.xlu2 %5049 }
 0x482   : > { %v6282_v20 = vunpack.i.h.bf16 %v6280_v9  ;;  %v6281_v36 = vunpack.i.l.bf16 %v6280_v9  ;;  %v5446_v9 = vunpack.i.l.bf16 %v11361_v22 }
 0x484   : > { %v6290_v28 = vpop.permute.xlu1 %6289  ;;  %v4600_v6 = vsel %vm680_vm2, %v11355_v43, %v6282_v20  ;;  %v4599_v58 = vsel %vm680_vm2, %v4402_v13, %v6281_v36  ;;  %v11363_v36 = vld [vmem:[#allocation12_spill] sm:$0xff]  ;;  %v11365_v13 = vld [vmem:[#allocation17_spill] sm:$0xff] }
 0x485   : > { %v6292_v40 = vunpack.i.h.bf16 %v6290_v28  ;;  %v6291_v11 = vunpack.i.l.bf16 %v6290_v28  ;;  %v11362_v28 = vld [vmem:[#allocation2_spill] sm:$0xff]  ;;  %v5482_v43 = vunpack.i.h.bf16 %v11365_v13 }
 0x486   : > { %v329_v20 = vsel %vm232_vm0, %v328_v56, %v11362_v28  ;;  %v11373_v28 = vld [vmem:[#allocation7_spill] sm:$0xff] }
 0x487   : > { %v10504_v45 = vsel %vm683_vm3, %v4599_v58, %v6291_v11  ;;  %v10507_v46 = vsel %vm683_vm3, %v4600_v6, %v6292_v40  ;;  %v5452_v40 = vunpack.i.h.bf16 %v11363_v36  ;;  %v11364_v11 = vld [vmem:[#allocation5_spill] sm:$0xff]  ;;  %v5481_v6 = vunpack.i.l.bf16 %v11365_v13 }
 0x488   : > { %v497_v15 = vsel %vm232_vm0, %v496_v24, %v11364_v11  ;;  %v11366_v58 = vld [vmem:[#allocation89_spill] sm:$0xff]  ;;  %v11374_v11 = vld [vmem:[#allocation18_spill] sm:$0xff] }
 0x489   : > { %v6285_v53 = vpop.permute.xlu0 %6284  ;;  %v10525_v63 = vpop.permute.xlu2 %6319  ;;  %v5134_v12 = vsel %vm680_vm2, %v11366_v58, %v5026_v5  ;;  %v11370_v5 = vld [vmem:[#allocation11_spill] sm:$0xff]  ;;  %v11372_v24 = vld [vmem:[#allocation13_spill] sm:$0xff]  ;;  %v5492_v13 = vunpack.i.h.bf16 %v11374_v11  ;;  %v5491_v58 = vunpack.i.l.bf16 %v11374_v11 }
 0x48a   : > { %v6287_v31 = vunpack.i.h.bf16 %v6285_v53  ;;  %v6286_v47 = vunpack.i.l.bf16 %v6285_v53  ;;  %v5136_v8 = vsel %vm683_vm3, %v5134_v12, %v10493_v33  ;;  %v5462_v22 = vunpack.i.h.bf16 %v11372_v24  ;;  %v11375_v12 = vld [vmem:[#allocation16_spill] sm:$0xff] }
 0x48c   : > { %v10512_v25 = vpop.permute.xlu1 %5097  ;;  %v4587_v4 = vsel %vm683_vm3, %v4585_v35, %v6286_v47  ;;  %v4588_v59 = vsel %vm683_vm3, %v4586_v34, %v6287_v31  ;;  %v5451_v31 = vunpack.i.l.bf16 %v11363_v36  ;;  %v11369_v34 = vld [vmem:[#allocation4_spill] sm:$0xff]  ;;  %v702_v36 = vsel %vm680_vm2, %v11373_v28, %v5482_v43  ;;  %v11376_v43 = vld [vmem:[#allocation15_spill] sm:$0xff]  ;;  %v11383_v28 = vld [vmem:[#allocation22_spill] sm:$0xff] }
 0x48d   : > { %v10520_v14 = vsel %vm686_vm4, %v4587_v4, %v6301_v55  ;;  %v10523_v32 = vsel %vm686_vm4, %v4588_v59, %v6302_v17  ;;  %v682_v35 = vsel %vm680_vm2, %v11369_v34, %v5447_v50  ;;  %v681_v17 = vsel %vm680_vm2, %v329_v20, %v5446_v9  ;;  %v11371_v59 = vld [vmem:[#allocation14_spill] sm:$0xff] }
 0x48e   : > { %v685_v4 = vsel %vm683_vm3, %v682_v35, %v5452_v40  ;;  %v5487_v62 = vunpack.i.h.bf16 %v11371_v59  ;;  %v5486_v56 = vunpack.i.l.bf16 %v11371_v59  ;;  %v701_v50 = vsel %vm680_vm2, %v497_v15, %v5481_v6 }
 0x48f   : > { %v10583_v40 = vsel %vm683_vm3, %v681_v17, %v5451_v31  ;;  %v10588_v33 = vsel %vm686_vm4, %v685_v4, %v5457_v19 }
 0x490   : > { %v704_v31 = vsel %vm683_vm3, %v702_v36, %v5487_v62 }
 0x491   : > { %v10603_v15 = vsel %vm686_vm4, %v704_v31, %v5492_v13  ;;  %v11381_v31 = vld [vmem:[#allocation29_spill] sm:$0xff] }
 0x492   : > { %v1455_v20 = vrot.slane %v11381_v31, 4 }
 0x493   : > { %v5042_v16 = vpop.permute.xlu0 %5041  ;;  %v10529_v57 = vpop.permute.xlu2 %5113 }
 0x494   : > { %v10527_v61 = vpop.permute.xlu1 %6309  ;;  %v5138_v9 = vsel %vm686_vm4, %v5136_v8, %v5042_v16  ;;  %v11377_v16 = vld [vmem:[#allocation19_spill] sm:$0xff]  ;;  %v703_v8 = vsel %vm683_vm3, %v701_v50, %v5486_v56  ;;  %v11378_v56 = vld [vmem:[#allocation20_spill] sm:$0xff]  ;;  %v6321_v50 = vunpack.i.l.bf16 %v10525_v63 }
 0x495   : > { %v5140_v17 = vsel %vm689_vm5, %v5138_v9, %v10498_v41  ;;  %v10606_v53 = vsel %vm686_vm4, %v703_v8, %v5491_v58  ;;  %v11379_v9 = vld [vmem:[#allocation23_spill] sm:$0xff]  ;;  %v11382_v58 = vld [vmem:[#allocation33_spill] sm:$0xff] }
 0x496   : > { %v907_v55 = vrot.slane %v11379_v9, 4  ;;  %v5637_v8 = vunpack.i.h.bf16 %v11382_v58 }
 0x49b   : > { %v10531_v0 = vpop.permute.xlu0 %6304  ;;  %v10537_v48 = vpop.permute.xlu2 %6339 }
 0x49c   : > { %v6307_v19 = vunpack.i.h.bf16 %v10531_v0  ;;  %v6306_v4 = vunpack.i.l.bf16 %v10531_v0 }
 0x4a0   : > { %v10533_v1 = vpop.permute.xlu1 %6314 }
 0x4a1   : > { %v6316_v0 = vunpack.i.l.bf16 %v10533_v1  ;;  %v6317_v62 = vunpack.i.h.bf16 %v10533_v1 }
 0x4a3   : > { %v10544_v7 = vpop.permute.xlu2 %6344 }
 0x4a4   : > { %v10535_v60 = vpop.permute.xlu0 %5105  ;;  %v6346_v38 = vunpack.i.l.bf16 %v10544_v7 }
 0x4a8   : > { %v5058_v2 = vpop.permute.xlu1 %5057 }
 0x4a9   : > { %v5142_v11 = vsel %vm692_vm6, %v5140_v17, %v5058_v2  ;;  %v11380_v17 = vld [vmem:[#allocation26_spill] sm:$0xff] }
 0x4aa   : > { %v1075_v13 = vrot.slane %v11380_v17, 4  ;;  %v11396_v17 = vld [vmem:[#allocation43_spill] sm:$0xff] }
 0x4ab   : > { %v5074_v34 = vpop.permute.xlu2 %5073 }
 0x4ae   : > { %v10539_v30 = vpop.permute.xlu0 %6324 }
 0x4b0   : > { %v10541_v10 = vpop.permute.xlu1 %6334 }
 0x4b1   : > { %v6337_v59 = vunpack.i.h.bf16 %v10541_v10  ;;  %v6336_v1 = vunpack.i.l.bf16 %v10541_v10 }
 0x4b6   : > { %v10558_v18 = vpop.permute.xlu0 %6329 }
 0x4b7   : > { %v6332_v9 = vunpack.i.h.bf16 %v10558_v18 }
 0x4b8   : > { %v10564_v47 = vpop.permute.xlu1 %5121 }
 0x4be   : > { %v5066_v35 = vpop.permute.xlu0 %5065 }
 0x4bf   : > { %v5144_v41 = vsel %vm695_vm7, %v5142_v11, %v5066_v35  ;;  %v4604_v35 = vsel %vm686_vm4, %v10507_v46, %v6307_v19  ;;  %v4603_v11 = vsel %vm686_vm4, %v10504_v45, %v6306_v4  ;;  %v908_v46 = vsel %vm232_vm0, %v907_v55, %v11383_v28 }
 0x4c0   : > { %v10609_v36 = vpop.permute.xlu1 %6354  ;;  %v5146_v2 = vsel %vm698_vm8, %v5144_v41, %v5074_v34  ;;  %v6331_v34 = vunpack.i.l.bf16 %v10558_v18  ;;  %v6322_v41 = vunpack.i.h.bf16 %v10525_v63  ;;  %v5152_v45 = vsel %vm686_vm4, %v10479_v42, %v10512_v25 }
 0x4c1   : > { %5384 = vmatpush.msk.msra.mxu0 %vm5165_vm9, %v5146_v2  ;;  %v5636_v2 = vunpack.i.l.bf16 %v11382_v58  ;;  %v4591_v18 = vsel %vm689_vm5, %v10520_v14, %v6316_v0  ;;  %v4592_v19 = vsel %vm689_vm5, %v10523_v32, %v6317_v62  ;;  %v6347_v63 = vunpack.i.h.bf16 %v10544_v7  ;;  %v6365_v58 = vpop.permute.xlu2 %6364 }
 0x4c2   : > { %v4605_v4 = vsel %vm689_vm5, %v4603_v11, %v6321_v50  ;;  %v4606_v10 = vsel %vm689_vm5, %v4604_v35, %v6322_v41  ;;  %v5154_v55 = vsel %vm689_vm5, %v5152_v45, %v10535_v60  ;;  %v4593_v42 = vsel %vm692_vm6, %v4591_v18, %v6331_v34 }
 0x4c3   : > { %v4594_v25 = vsel %vm692_vm6, %v4592_v19, %v6332_v9  ;;  %v4607_v28 = vsel %vm692_vm6, %v4605_v4, %v6336_v1  ;;  %v4608_v32 = vsel %vm692_vm6, %v4606_v10, %v6337_v59  ;;  %v6367_v11 = vunpack.i.h.bf16 %v6365_v58 }
 0x4c4   : > { %v6366_v35 = vunpack.i.l.bf16 %v6365_v58  ;;  %v4595_v34 = vsel %vm695_vm7, %v4593_v42, %v6346_v38  ;;  %v4596_v9 = vsel %vm695_vm7, %v4594_v25, %v6347_v63 }
 0x4c6   : > { %v6350_v14 = vpop.permute.xlu0 %6349 }
 0x4c7   : > { %v6352_v0 = vunpack.i.h.bf16 %v6350_v14  ;;  %v6351_v50 = vunpack.i.l.bf16 %v6350_v14  ;;  %v11384_v14 = vld [vmem:[#allocation24_spill] sm:$0xff] }
 0x4c8   : > { %v6360_v62 = vpop.permute.xlu1 %6359 }
 0x4c9   : > { %v6362_v41 = vunpack.i.h.bf16 %v6360_v62  ;;  %v6361_v6 = vunpack.i.l.bf16 %v6360_v62  ;;  %v4609_v7 = vsel %vm695_vm7, %v4607_v28, %v6351_v50  ;;  %v4610_v60 = vsel %vm695_vm7, %v4608_v32, %v6352_v0  ;;  %v11385_v32 = vld [vmem:[#allocation35_spill] sm:$0xff]  ;;  %v11386_v0 = vld [vmem:[#allocation36_spill] sm:$0xff] }
 0x4ca   : > { %v4611_v59 = vsel %vm698_vm8, %v4609_v7, %v6366_v35  ;;  %v4612_v18 = vsel %vm698_vm8, %v4610_v60, %v6367_v11  ;;  %v1260_v28 = vsel %vm680_vm2, %v11384_v14, %v5637_v8  ;;  %v5642_v62 = vunpack.i.h.bf16 %v11385_v32 }
 0x4cb   : > { %v4597_v45 = vsel %vm698_vm8, %v4595_v34, %v6361_v6  ;;  %v4598_v1 = vsel %vm698_vm8, %v4596_v9, %v6362_v41  ;;  %v5209_v10 = vrot.slane %v4611_v59, 4  ;;  %v5212_v58 = vrot.slane %v4612_v18, 4 }
 0x4cc   : > { %v5208_v19 = vrot.slane %v4597_v45, 4  ;;  %v5210_v4 = vrot.slane %v4598_v1, 4  ;;  %v5641_v38 = vunpack.i.l.bf16 %v11385_v32  ;;  %v5156_v6 = vsel %vm692_vm6, %v5154_v55, %v10529_v57  ;;  %v11388_v45 = vld [vmem:[#allocation37_spill] sm:$0xff] }
 0x4cd   : > { %v10669_v42 = vsel %vm5165_vm9, %v5209_v10, %v5212_v58  ;;  %v10677_v8 = vsel %vm5165_vm9, %v10419_v39, %v5209_v10  ;;  %v5647_v50 = vunpack.i.h.bf16 %v11386_v0  ;;  %v5646_v11 = vunpack.i.l.bf16 %v11386_v0  ;;  %v11387_v39 = vld [vmem:[#allocation34_spill] sm:$0xff] }
 0x4ce   : > { %v10666_v63 = vsel %vm5165_vm9, %v5208_v19, %v5210_v4  ;;  %v10673_v25 = vsel %vm5165_vm9, %v10278_v44, %v5208_v19  ;;  %v6311_v57 = vunpack.i.l.bf16 %v10527_v61  ;;  %v5158_v55 = vsel %vm695_vm7, %v5156_v6, %v10564_v47  ;;  %v5130_v35 = vpop.permute.xlu0 %5129  ;;  %v11390_v10 = vld [vmem:[#allocation38_spill] sm:$0xff] }
 0x4cf   : > { %v1259_v41 = vsel %vm680_vm2, %v908_v46, %v5636_v2  ;;  %v6312_v7 = vunpack.i.h.bf16 %v10527_v61  ;;  %v6326_v44 = vunpack.i.l.bf16 %v10539_v30  ;;  %v5160_v60 = vsel %vm698_vm8, %v5158_v55, %v5130_v35  ;;  %v11389_v46 = vld [vmem:[#allocation40_spill] sm:$0xff] }
 0x4d0   : > { %v5652_v34 = vunpack.i.h.bf16 %v11387_v39  ;;  %v5651_v9 = vunpack.i.l.bf16 %v11387_v39  ;;  %v5667_v1 = vunpack.i.h.bf16 %v11388_v45  ;;  %v6327_v59 = vunpack.i.h.bf16 %v10539_v30  ;;  %5386 = vmatpush.msk.msra.mxu1 %vm5165_vm9, %v5160_v60  ;;  %v6375_v55 = vpop.permute.xlu1 %6374  ;;  %v11392_v60 = vld [vmem:[#allocation42_spill] sm:$0xff] }
 0x4d1   : > { %v5666_v47 = vunpack.i.l.bf16 %v11388_v45  ;;  %v1261_v2 = vsel %vm683_vm3, %v1259_v41, %v5641_v38  ;;  %v1262_v61 = vsel %vm683_vm3, %v1260_v28, %v5642_v62  ;;  %v5682_v18 = vunpack.i.h.bf16 %v11389_v46 }
 0x4d2   : > { %v1263_v19 = vsel %vm686_vm4, %v1261_v2, %v5646_v11  ;;  %v1264_v4 = vsel %vm686_vm4, %v1262_v61, %v5647_v50  ;;  %v5656_v58 = vunpack.i.l.bf16 %v11390_v10  ;;  %v5135_v14 = vsel %vm683_vm3, %v10491_v23, %v6311_v57  ;;  %v5227_v50 = vld [vmem:[%s10909_s2] sm:$0xff] }
 0x4d3   : > { %v5681_v30 = vunpack.i.l.bf16 %v11389_v46  ;;  %v5657_v32 = vunpack.i.h.bf16 %v11390_v10  ;;  %v5149_v38 = vsel %vm683_vm3, %v10488_v51, %v6312_v7  ;;  %v5137_v28 = vsel %vm686_vm4, %v5135_v14, %v6326_v44  ;;  %v11405_v46 = vld [vmem:[#allocation48_spill] sm:$0xff] }
 0x4d4   : > { %v5151_v62 = vsel %vm686_vm4, %v5149_v38, %v6327_v59  ;;  %v6357_v6 = vunpack.i.h.bf16 %v10609_v36  ;;  %v6356_v0 = vunpack.i.l.bf16 %v10609_v36  ;;  %v1265_v23 = vsel %vm689_vm5, %v1263_v19, %v5651_v9  ;;  %v11391_v36 = vld [vmem:[#allocation41_spill] sm:$0xff] }
 0x4d5   : > { %v1266_v11 = vsel %vm689_vm5, %v1264_v4, %v5652_v34  ;;  %v6342_v57 = vunpack.i.h.bf16 %v10537_v48  ;;  %v6341_v51 = vunpack.i.l.bf16 %v10537_v48  ;;  %v6491_v35 = vmov 0  }
 0x4d6   : > { %6378 = vset.pattern.permute.xlu2 %v6491_v35  ;;  %6379 = vset.pattern.permute.xlu0 %v6491_v35  ;;  %v10718_v41 = vsel %vm692_vm6, %v1265_v23, %v5656_v58  ;;  %v5672_v7 = vunpack.i.h.bf16 %v11391_v36  ;;  %v5671_v44 = vunpack.i.l.bf16 %v11391_v36  ;;  %v5676_v39 = vunpack.i.l.bf16 %v11392_v60  ;;  %v6370_v9 = vpop.permute.xlu0 %6369  ;;  %v11393_v23 = vld [vmem:[#allocation39_spill] sm:$0xff]  ;;  %v11394_v36 = vld [vmem:[#allocation25_spill] sm:$0xff] }
 0x4d7   : > { %5230 = vperm.xlu2 %6378, %v5227_v50   ;;  %v6372_v34 = vunpack.i.h.bf16 %v6370_v9  ;;  %v6371_v59 = vunpack.i.l.bf16 %v6370_v9  ;;  %v5139_v2 = vsel %vm689_vm5, %v5137_v28, %v6341_v51  ;;  %v5153_v48 = vsel %vm689_vm5, %v5151_v62, %v6342_v57 }
 0x4d8   : > { %v6377_v61 = vunpack.i.h.bf16 %v6375_v55  ;;  %v6376_v19 = vunpack.i.l.bf16 %v6375_v55  ;;  %v5141_v4 = vsel %vm692_vm6, %v5139_v2, %v6356_v0  ;;  %v5155_v10 = vsel %vm692_vm6, %v5153_v48, %v6357_v6  ;;  %v11399_v48 = vld [vmem:[#allocation45_spill] sm:$0xff] }
 0x4d9   : > { %v1268_v58 = vsel %vm692_vm6, %v1266_v11, %v5657_v32  ;;  %v5677_v14 = vunpack.i.h.bf16 %v11392_v60  ;;  %v5143_v38 = vsel %vm695_vm7, %v5141_v4, %v6371_v59  ;;  %v5157_v50 = vsel %vm695_vm7, %v5155_v10, %v6372_v34  ;;  %v11395_v11 = vld [vmem:[#allocation49_spill] sm:$0xff]  ;;  %v11398_v34 = vld [vmem:[#allocation44_spill] sm:$0xff]  ;;  %v11401_v10 = vld [vmem:[#allocation47_spill] sm:$0xff] }
 0x4da   : > { %v5662_v35 = vunpack.i.h.bf16 %v11393_v23  ;;  %v1076_v28 = vsel %vm232_vm0, %v1075_v13, %v11394_v36  ;;  %v5145_v62 = vsel %vm698_vm8, %v5143_v38, %v6376_v19  ;;  %v5159_v0 = vsel %vm698_vm8, %v5157_v50, %v6377_v61  ;;  %v11397_v13 = vld [vmem:[#allocation27_spill] sm:$0xff]  ;;  %v11402_v38 = vld [vmem:[#allocation30_spill] sm:$0xff] }
 0x4db   : > { %v5661_v6 = vunpack.i.l.bf16 %v11393_v23  ;;  %v1273_v32 = vsel %vm680_vm2, %v1076_v28, %v5671_v44  ;;  %v5707_v57 = vunpack.i.h.bf16 %v11395_v11  ;;  %5246 = vmatpush.msra.mxu0 %v5145_v62  ;;  %5266 = vmatpush.msra.mxu1 %v5159_v0  ;;  %v691_v51 = vsel %vm689_vm5, %v10588_v33, %v5462_v22  ;;  %v11403_v50 = vld [vmem:[#allocation51_spill] sm:$0xff]  ;;  %v11404_v36 = vld [vmem:[#allocation54_spill] sm:$0xff] }
 0x4dc   : > { %v5697_v55 = vunpack.i.h.bf16 %v11396_v17  ;;  %v1274_v60 = vsel %vm680_vm2, %v11397_v13, %v5672_v7  ;;  %v1275_v9 = vsel %vm683_vm3, %v1273_v32, %v5676_v39  ;;  %v5686_v59 = vunpack.i.l.bf16 %v11398_v34  ;;  %v11400_v7 = vld [vmem:[#allocation28_spill] sm:$0xff] }
 0x4dd   : > { %v1276_v44 = vsel %vm683_vm3, %v1274_v60, %v5677_v14  ;;  %v5687_v2 = vunpack.i.h.bf16 %v11398_v34  ;;  %v5691_v61 = vunpack.i.l.bf16 %v11399_v48  ;;  %v5706_v19 = vunpack.i.l.bf16 %v11395_v11  ;;  %5247 = vmatpush.msra.mxu0 %v10666_v63  ;;  %5267 = vmatpush.msra.mxu1 %v10669_v42  ;;  %v11406_v60 = vld [vmem:[#allocation55_spill] sm:$0xff] }
 0x4de   : > { %v5696_v22 = vunpack.i.l.bf16 %v11396_v17  ;;  %v5692_v33 = vunpack.i.h.bf16 %v11399_v48  ;;  %v1456_v39 = vsel %vm232_vm0, %v1455_v20, %v11400_v7  ;;  %v10765_v4 = vsel %vm692_vm6, %v691_v51, %v5467_v49 }
 0x4df   : > { %v5712_v14 = vunpack.i.h.bf16 %v11401_v10  ;;  %v1277_v63 = vsel %vm686_vm4, %v1275_v9, %v5681_v30  ;;  %v1808_v42 = vsel %vm680_vm2, %v11402_v38, %v5707_v57  ;;  %v5717_v23 = vunpack.i.h.bf16 %v11403_v50  ;;  %5248 = vmatpush.msra.mxu0 %v10673_v25  ;;  %5268 = vmatpush.msra.mxu1 %v10677_v8 }
 0x4e0   : > { %v5711_v20 = vunpack.i.l.bf16 %v11401_v10  ;;  %v1278_v49 = vsel %vm686_vm4, %v1276_v44, %v5682_v18  ;;  %v1279_v31 = vsel %vm689_vm5, %v1277_v63, %v5686_v59  ;;  %v5722_v28 = vunpack.i.h.bf16 %v11404_v36  ;;  %v11408_v44 = vld [vmem:[#allocation52_spill] sm:$0xff]  ;;  %v11414_v10 = vld [vmem:[#allocation53_spill] sm:$0xff] }
 0x4e1   : > { %v1280_v30 = vsel %vm689_vm5, %v1278_v49, %v5687_v2  ;;  %v1281_v62 = vsel %vm692_vm6, %v1279_v31, %v5691_v61  ;;  %v1807_v0 = vsel %vm680_vm2, %v1456_v39, %v5706_v19  ;;  %v5716_v25 = vunpack.i.l.bf16 %v11403_v50  ;;  %5249 = vmatpush.msra.mxu0 %v10283_v37  ;;  %5269 = vmatpush.msra.mxu1 %v10422_v27  ;;  %v11409_v2 = vld [vmem:[#allocation56_spill] sm:$0xff]  ;;  %v11410_v19 = vld [vmem:[#allocation66_spill] sm:$0xff] }
 0x4e2   : > { %v1282_v8 = vsel %vm692_vm6, %v1280_v30, %v5692_v33  ;;  %v5702_v18 = vunpack.i.h.bf16 %v11405_v46  ;;  %v5701_v32 = vunpack.i.l.bf16 %v11405_v46  ;;  %v1810_v11 = vsel %vm683_vm3, %v1808_v42, %v5712_v14  ;;  %v11413_v39 = vld [vmem:[#allocation46_spill] sm:$0xff] }
 0x4e3   : > { %v1812_v57 = vsel %vm686_vm4, %v1810_v11, %v5717_v23  ;;  %v5721_v51 = vunpack.i.l.bf16 %v11404_v36  ;;  %5250 = vmatpush.msra.mxu0 %v10255_v3  ;;  %5270 = vmatpush.msra.mxu1 %v10271_v26  ;;  %v1269_v37 = vsel %vm695_vm7, %v10718_v41, %v5661_v6  ;;  %v1270_v27 = vsel %vm695_vm7, %v1268_v58, %v5662_v35  ;;  %v11416_v23 = vld [vmem:[#allocation32_spill] sm:$0xff]  ;;  %v11418_v36 = vld [vmem:[#allocation21_spill] sm:$0xff]  ;;  %v11419_v30 = vld [vmem:[#allocation50_spill] sm:$0xff] }
 0x4e4   : > { %v1809_v17 = vsel %vm683_vm3, %v1807_v0, %v5711_v20  ;;  %v1814_v13 = vsel %vm689_vm5, %v1812_v57, %v5722_v28  ;;  %v5732_v9 = vunpack.i.h.bf16 %v11406_v60  ;;  %v11407_v34 = vunpack.i.h.bf16 %v11377_v16 }
 0x4e5   : > { %v5727_v3 = vunpack.i.h.bf16 %v11408_v44  ;;  %v1811_v26 = vsel %vm686_vm4, %v1809_v17, %v5716_v25  ;;  %v5737_v48 = vunpack.i.h.bf16 %v11409_v2  ;;  %5251 = vmatpush.msra.mxu0 %v10248_v52  ;;  %5271 = vmatpush.msra.mxu1 %v10259_v29  ;;  %v1283_v41 = vsel %vm695_vm7, %v1281_v62, %v5696_v22  ;;  %v11411_v52 = vld [vmem:[#allocation68_spill] sm:$0xff] }
 0x4e6   : > { %v708_v59 = vsel %vm689_vm5, %v10603_v15, %v11407_v34  ;;  %v1271_v58 = vsel %vm698_vm8, %v1269_v37, %v5666_v47  ;;  %v1272_v15 = vsel %vm698_vm8, %v1270_v27, %v5667_v1  ;;  %v1284_v35 = vsel %vm695_vm7, %v1282_v8, %v5697_v55 }
 0x4e7   : > { %v1285_v6 = vsel %vm698_vm8, %v1283_v41, %v5701_v32  ;;  %v5731_v61 = vunpack.i.l.bf16 %v11406_v60  ;;  %5252 = vmatpush.msra.mxu0 %v11410_v19  ;;  %5272 = vmatpush.msra.mxu1 %v11411_v52  ;;  %v1816_v29 = vsel %vm692_vm6, %v1814_v13, %v5727_v3  ;;  %v1813_v22 = vsel %vm689_vm5, %v1811_v26, %v5721_v51  ;;  %v11423_v51 = vld [vmem:[#allocation31_spill] sm:$0xff] }
 0x4e8   : > { %v1286_v47 = vsel %vm698_vm8, %v1284_v35, %v5702_v18  ;;  %v5726_v45 = vunpack.i.l.bf16 %v11408_v44  ;;  %v5736_v1 = vunpack.i.l.bf16 %v11409_v2  ;;  %v1818_v55 = vsel %vm695_vm7, %v1816_v29, %v5732_v9 }
 0x4e9   : > { %v11412_v33 = vunpack.i.l.bf16 %v11368_v21  ;;  %5253 = vmatpush.msra.mxu0 %v11413_v39  ;;  %5273 = vmatpush.msra.mxu1 %v11414_v10  ;;  %v1820_v14 = vsel %vm698_vm8, %v1818_v55, %v5737_v48  ;;  %v5166_v63 = vrot.slane %v1271_v58, 4  ;;  %v5168_v38 = vrot.slane %v1272_v15, 4 }
 0x4ea   : > { %v11415_v42 = vunpack.i.l.bf16 %v11377_v16  ;;  %v11417_v20 = vrot.slane %v11416_v23, 4  ;;  %v1815_v49 = vsel %vm692_vm6, %v1813_v22, %v5726_v45  ;;  %v5170_v31 = vrot.slane %v1286_v47, 4 }
 0x4eb   : > { %v687_v7 = vsel %vm686_vm4, %v10583_v40, %v11412_v33  ;;  %v5167_v40 = vrot.slane %v1285_v6, 4  ;;  %v5512_v28 = vunpack.i.h.bf16 %v11418_v36  ;;  %5274 = vmatpush.msra.mxu1 %v11419_v30  ;;  %v1817_v62 = vsel %vm695_vm7, %v1815_v49, %v5731_v61 }
 0x4ec   : > { %v707_v50 = vsel %vm689_vm5, %v10606_v53, %v11415_v42  ;;  %v5220_v21 = vsel %vm5165_vm9, %v1820_v14, %v11417_v20  ;;  %v11420_v16 = vunpack.i.h.bf16 %v11376_v43  ;;  %v11421_v53 = vunpack.i.l.bf16 %v11372_v24 }
 0x4ed   : > { %5254 = vmatpush.msra.mxu0 %v5220_v21  ;;  %v1819_v8 = vsel %vm698_vm8, %v1817_v62, %v5736_v1  ;;  %v11422_v46 = vunpack.i.h.bf16 %v11378_v56  ;;  %v5471_v32 = vunpack.i.l.bf16 %v11370_v5  ;;  %v5476_v11 = vunpack.i.l.bf16 %v11375_v12  ;;  %5275 = vmatpush.msra.mxu1 %v11423_v51 }
 0x4ee   : > { %v710_v0 = vsel %vm692_vm6, %v708_v59, %v11420_v16  ;;  %v690_v25 = vsel %vm689_vm5, %v687_v7, %v11421_v53  ;;  %v5511_v57 = vunpack.i.l.bf16 %v11418_v36  ;;  %v11424_v37 = vunpack.i.h.bf16 %v11370_v5 }
 0x4ef   : > { %v712_v18 = vsel %vm695_vm7, %v710_v0, %v11422_v46  ;;  %5255 = vmatpush.msra.mxu0 %v1819_v8  ;;  %v5169_v27 = vsel %vm5165_vm9, %v5166_v63, %v5168_v38  ;;  %v5171_v17 = vsel %vm5165_vm9, %v5167_v40, %v5170_v31  ;;  %v11425_v13 = vunpack.i.l.bf16 %v11367_v54 }
 0x4f0   : > { %v697_v24 = vsel %vm695_vm7, %v10765_v4, %v11424_v37  ;;  %v11426_v9 = vunpack.i.l.bf16 %v11376_v43  ;;  %5276 = vmatpush.msra.mxu1 %v5171_v17  ;;  %v11427_v59 = vunpack.i.h.bf16 %v11375_v12  ;;  %v714_v4 = vsel %vm698_vm8, %v712_v18, %v5512_v28  ;;  %v5226_v12 = vld [vmem:[%s10908_s1] sm:$0xff] }
 0x4f1   : > { %v693_v60 = vsel %vm692_vm6, %v690_v25, %v11425_v13  ;;  %5256 = vmatpush.msra.mxu0 %v5169_v27  ;;  %v11428_v44 = vunpack.i.l.bf16 %v11378_v56  ;;  %v5219_v43 = vsel %vm5165_vm9, %v714_v4, %v5167_v40 }
 0x4f2   : > { %v709_v34 = vsel %vm692_vm6, %v707_v50, %v11426_v9  ;;  %v700_v5 = vsel %vm698_vm8, %v697_v24, %v11427_v59  ;;  %5277 = vmatpush.msra.mxu1 %v5219_v43  ;;  %v696_v26 = vsel %vm695_vm7, %v693_v60, %v5471_v32 }
 0x4f3   : > { %v711_v54 = vsel %vm695_vm7, %v709_v34, %v11428_v44  ;;  %v5218_v3 = vsel %vm5165_vm9, %v700_v5, %v5166_v63  ;;  %v699_v2 = vsel %vm698_vm8, %v696_v26, %v5476_v11 }
 0x4f4   : > { %5257 = vmatpush.msra.mxu0 %v5218_v3  ;;  %v713_v56 = vsel %vm698_vm8, %v711_v54, %v5511_v57 }
 0x4f5   : > { %5278 = vmatpush.msra.mxu1 %v713_v56 }
 0x4f6   : > { %5258 = vmatpush.msra.mxu0 %v699_v2  ;;  %5387 = vmatmul.msk.f32.vlgmr.msra.gmra.mxu1 %vm5233_vm11, %v5226_v12 }
 0x4f7   : > { %5385 = vmatmul.msk.f32.vlgmr.msra.gmra.mxu0 %vm5233_vm11, %v5226_v12 }
 0x531   : > { %v5231_v48 = vpop.permute.xlu2 %5230 }
 0x573   : > { %v5280_v58 = vpop.f32.mrf.mxu1 }
 0x574   : > { %v5260_v41 = vpop.f32.mrf.mxu0  ;;  %v5281_v35 = vadd.f32 %v5280_v58, %v5231_v48 }
 0x575   : > { %v5261_v15 = vadd.f32 %v5260_v41, %v5231_v48 }
 0x576   : > { %v5284_v61 = vmax.f32 %v5281_v35, 0.0 }
 0x577   : > { %v5283_v6 = vmax.f32 %v5261_v15, 0.0 }
 0x578   : > { %5286 = vst [vmem:[%s192_s24 + $0x8] sm:$0xff] %v5284_v61 }
 0x579   : > { %5285 = vst [vmem:[%s192_s24] sm:$0xff] %v5283_v6 }
 0x57a PF: > { %s13_s16 = sadd.s32 1, %s6478_s16   ;;  %s11429_s12 = smov %s6470_s14 }
 0x57b   : > { %p10_p7 = scmp.ge.s32.totalorder %s13_s16, 18   ;;  %s11430_s13 = smov %s6474_s15 }
 0x57c   : > { %s11431_s14 = smov %s11434_s17  ;;  %s11432_s15 = smov %s11438_s18 }
 0x57d   :  { %12 = sbr.rel (!%p10_p7) target bundleno = 3 (0x3), region = 63 }

</bundles_post_ra>
